<compile_context>
chip_gen: v7x
topology: tpu7x:2x2x1
jax: 0.10.0
libtpu: 0.0.40
codegen_flags: <defaults>
</compile_context>

<pallas_src>
import math
import functools
import numpy as np

import jax
import jax.numpy as jnp
from jax.experimental import pallas as pl
from jax.experimental.pallas import tpu as pltpu


# ----------------------------- configuration -------------------------------
HIDDEN = 32          # args['hidden_dim']
JOINT_DIM = 8        # args['joint_dim']
GRIPPER_DIM = 1      # args['gripper_dim']
NHEAD = 4            # args['nheads']
DIM_FF = 64          # args['dim_feedforward']
ENC_LAYERS = 2       # args['enc_layers']
XPOS_DIM = 7
SEQ = 1 + JOINT_DIM
NUM_DEC = JOINT_DIM - GRIPPER_DIM
HEAD_DIM = HIDDEN // NHEAD
LN_EPS = 1e-5
SLAB_LANES = 128     # weight slab lane width
NEG_INF = -1e9


# ----------------------------- helpers --------------------------------------
def _layernorm(x, g, b):
    mu = jnp.mean(x, axis=-1, keepdims=True)
    xc = x - mu
    var = jnp.mean(xc * xc, axis=-1, keepdims=True)
    return xc * jax.lax.rsqrt(var + LN_EPS) * g + b


def _round8(n):
    return -(-n // 8) * 8


def _section_specs(batch):
    """Ordered (name, rows, cols) of the packed weight slab."""
    bs = batch * SEQ
    specs = [
        ("in_w", 1 + XPOS_DIM, HIDDEN),        # row 0: qpos weight; rows 1..7: xpos weight
        ("in_bias", bs, HIDDEN),               # per-row input bias (xpos row / qpos rows), tiled over batch
        ("mask", bs, bs),                      # block-diagonal additive attention mask
    ]
    for l in range(ENC_LAYERS):
        specs += [
            (f"wqkv{l}", HIDDEN, 3 * HIDDEN),  # [Wq*scale | Wk | Wv]
            (f"bqkv{l}", bs, 3 * HIDDEN),      # [pos@Wq*s + bq*s | pos@Wk + bk | bv] tiled over batch
            (f"wo{l}", HIDDEN, HIDDEN),
            (f"w1{l}", HIDDEN, DIM_FF),
            (f"w2{l}", DIM_FF, HIDDEN),
            (f"vec{l}", 7, DIM_FF),            # rows: bo, b1, b2, g1, be1, g2, be2
        ]
    specs += [
        ("dec_tok", NUM_DEC * HIDDEN, NUM_DEC * XPOS_DIM),   # folded per-token decoder weights
        ("dec_x0", XPOS_DIM, NUM_DEC * XPOS_DIM),            # folded x0 -> all outputs weight
        ("dec_b", 1, NUM_DEC * XPOS_DIM),                    # folded decoder bias
    ]
    return specs


def _slab_offsets(batch):
    offs, r = {}, 0
    for name, rows, _ in _section_specs(batch):
        offs[name] = r
        r += _round8(rows)          # keep every section sublane-aligned
    return offs, r


# ----------------------------- fused kernel ----------------------------------
def _fused_kernel(jq_ref, x0_ref, slab_ref, out_ref, *, batch, offs):
    """Entire forward pass (input proj + 2 encoder layers + folded decoder).

    jq:(B,J,1)  x0:(B,7)  slab:(rows,128)  out:(B,(NUM_DEC+1)*7)
    """
    f32 = jnp.float32
    bs = batch * SEQ

    x0 = x0_ref[...]                                                   # (B,7)

    # ---------------- input embeddings -> flat (B*S, H) ---------------------
    o = offs["in_w"]
    in_w = slab_ref[o:o + 1 + XPOS_DIM, :HIDDEN]                       # (8,32)
    wq_row = in_w[0:1, :]                                              # (1,32)
    Wx = in_w[1:, :]                                                   # (7,32)
    o = offs["in_bias"]
    in_bias = slab_ref[o:o + bs, :HIDDEN]                              # (18,32)
    o = offs["mask"]
    mask = slab_ref[o:o + bs, :bs]                                     # (18,18)

    xe = jnp.dot(x0, Wx, preferred_element_type=f32)                   # (B,32)
    qe = jq_ref[...] * wq_row                                          # (B,J,32)
    rows = []
    for b in range(batch):                                             # static
        rows.append(xe[b:b + 1, :])                                    # token 0
        rows.append(qe[b])                                             # tokens 1..8
    x3 = jnp.concatenate(rows, axis=0) + in_bias                       # (B*S,32)

    # ---------------- encoder layers (post-norm, dropout=identity) ----------
    for l in range(ENC_LAYERS):                                        # static unroll
        o = offs[f"wqkv{l}"]
        Wqkv = slab_ref[o:o + HIDDEN, :3 * HIDDEN]                     # (32,96)
        o = offs[f"bqkv{l}"]
        bqkv = slab_ref[o:o + bs, :3 * HIDDEN]                         # (18,96)
        o = offs[f"wo{l}"]
        Wo = slab_ref[o:o + HIDDEN, :HIDDEN]                           # (32,32)
        o = offs[f"w1{l}"]
        W1 = slab_ref[o:o + HIDDEN, :DIM_FF]                           # (32,64)
        o = offs[f"w2{l}"]
        W2 = slab_ref[o:o + DIM_FF, :HIDDEN]                           # (64,32)
        o = offs[f"vec{l}"]
        vec = slab_ref[o:o + 7, :DIM_FF]                               # (7,64)
        bo = vec[0:1, :HIDDEN]
        b1 = vec[1:2, :]
        b2 = vec[2:3, :HIDDEN]
        g1 = vec[3:4, :HIDDEN]
        be1 = vec[4:5, :HIDDEN]
        g2 = vec[5:6, :HIDDEN]
        be2 = vec[6:7, :HIDDEN]

        # single Q|K|V projection; pos embedding & scale folded into bqkv/Wqkv
        qkv = jnp.dot(x3, Wqkv, preferred_element_type=f32) + bqkv     # (18,96)

        attn = jnp.zeros((bs, HIDDEN), f32)
        for h in range(NHEAD):                                         # static unroll
            lo = h * HEAD_DIM
            q = qkv[:, lo:lo + HEAD_DIM]                               # (18,8)
            k = qkv[:, HIDDEN + lo:HIDDEN + lo + HEAD_DIM]             # (18,8)
            v = qkv[:, 2 * HIDDEN + lo:2 * HIDDEN + lo + HEAD_DIM]     # (18,8)
            s = jax.lax.dot_general(q, k, (((1,), (1,)), ((), ())),
                                    preferred_element_type=f32) + mask  # (18,18)
            s = s - jnp.max(s, axis=-1, keepdims=True)
            pexp = jnp.exp(s)
            pattn = pexp * pl.reciprocal(
                jnp.sum(pexp, axis=-1, keepdims=True), approx=True)
            pv = jnp.dot(pattn, v, preferred_element_type=f32)         # (18,8)
            attn = attn + jnp.dot(pv, Wo[lo:lo + HEAD_DIM, :],
                                  preferred_element_type=f32)          # per-head Wo accumulate
        attn = attn + bo

        y = _layernorm(x3 + attn, g1, be1)
        ffn = jnp.maximum(jnp.dot(y, W1, preferred_element_type=f32) + b1, 0.0)
        ffn = jnp.dot(ffn, W2, preferred_element_type=f32) + b2
        x3 = _layernorm(y + ffn, g2, be2)

    # ---------------- decoder: recurrence folded at pack time ---------------
    o = offs["dec_x0"]
    M_all = slab_ref[o:o + XPOS_DIM, :NUM_DEC * XPOS_DIM]              # (7,49)
    o = offs["dec_b"]
    b_all = slab_ref[o:o + 1, :NUM_DEC * XPOS_DIM]                     # (1,49)
    dec = jnp.dot(x0, M_all, preferred_element_type=f32) + b_all       # (B,49)
    for i in range(NUM_DEC):                                           # independent matmuls
        o = offs["dec_tok"] + i * HIDDEN
        Wt = slab_ref[o:o + HIDDEN, :NUM_DEC * XPOS_DIM]               # (32,49)
        tok = jnp.concatenate(
            [x3[b * SEQ + i:b * SEQ + i + 1, :] for b in range(batch)], axis=0)
        dec = dec + jnp.dot(tok, Wt, preferred_element_type=f32)

    out_ref[...] = jnp.concatenate([x0, dec], axis=1)                  # (B,56)


# ----------------------------- parameters ------------------------------------
def get_sinusoid_encoding_table(n_position, d_hid):
    pos = np.arange(n_position, dtype=np.float64)[:, None]
    j = np.arange(d_hid, dtype=np.float64)[None, :]
    angle = pos / np.power(10000.0, 2.0 * (j // 2) / d_hid)
    table = np.zeros((n_position, d_hid), dtype=np.float32)
    table[:, 0::2] = np.sin(angle[:, 0::2])
    table[:, 1::2] = np.cos(angle[:, 1::2])
    return jnp.asarray(table)            # (S, H)


def init_params(key):
    keys = list(jax.random.split(key, 48))
    it = iter(keys)

    def nrm(shape, scale=0.05):
        return scale * jax.random.normal(next(it), shape, dtype=jnp.float32)

    p = {
        'enc_qpos_w': nrm((1, HIDDEN)),
        'enc_qpos_b': nrm((1, HIDDEN)),
        'enc_xpos_w': nrm((XPOS_DIM, HIDDEN)),
        'enc_xpos_b': nrm((1, HIDDEN)),
        'dec_xpos_w': nrm((XPOS_DIM, HIDDEN)),
        'dec_xpos_b': nrm((1, HIDDEN)),
        'pos_table': get_sinusoid_encoding_table(SEQ, HIDDEN),
        'dec_w': nrm((NUM_DEC, 2 * HIDDEN, XPOS_DIM)),
        'dec_b': nrm((NUM_DEC, 1, XPOS_DIM)),
        'layers': [],
    }
    for _ in range(ENC_LAYERS):
        lyr = {
            'wq': nrm((HIDDEN, HIDDEN)), 'bq': nrm((1, HIDDEN)),
            'wk': nrm((HIDDEN, HIDDEN)), 'bk': nrm((1, HIDDEN)),
            'wv': nrm((HIDDEN, HIDDEN)), 'bv': nrm((1, HIDDEN)),
            'wo': nrm((HIDDEN, HIDDEN)), 'bo': nrm((1, HIDDEN)),
            'w1': nrm((HIDDEN, DIM_FF)), 'b1': nrm((1, DIM_FF)),
            'w2': nrm((DIM_FF, HIDDEN)), 'b2': nrm((1, HIDDEN)),
            'g1': jnp.ones((1, HIDDEN), jnp.float32),
            'be1': jnp.zeros((1, HIDDEN), jnp.float32),
            'g2': jnp.ones((1, HIDDEN), jnp.float32),
            'be2': jnp.zeros((1, HIDDEN), jnp.float32),
        }
        p['layers'].append(lyr)
    return p


def pack_params(p, batch):
    """Host-side packing into ONE lane-padded (rows,128) f32 slab.

    Folds: 1/sqrt(head_dim) into Wq/bq; pos_table@Wq/Wk + all projection biases
    into per-layer (B*S,3H) biases; the serial decoder recurrence into
    per-token (H,49) weights + an x0 weight + a single bias.  The slab is
    packed for a fixed batch size (bias tiling / block-diagonal mask).
    """
    bs = batch * SEQ
    scale = 1.0 / math.sqrt(HEAD_DIM)
    blocks = {}

    # input projection weights / tiled biases
    blocks['in_w'] = jnp.concatenate([p['enc_qpos_w'], p['enc_xpos_w']], axis=0)  # (8,32)
    in_bias_seq = jnp.concatenate(
        [p['enc_xpos_b'], jnp.tile(p['enc_qpos_b'], (JOINT_DIM, 1))], axis=0)     # (9,32)
    blocks['in_bias'] = jnp.tile(in_bias_seq, (batch, 1))                         # (18,32)

    # block-diagonal additive attention mask over the flattened (B*S) rows
    bid = np.repeat(np.arange(batch), SEQ)
    blocks['mask'] = jnp.asarray(
        np.where(bid[:, None] == bid[None, :], 0.0, NEG_INF).astype(np.float32))

    pos = p['pos_table']                                                          # (9,32)
    for l, lyr in enumerate(p['layers']):
        wq_s = lyr['wq'] * scale
        bq_s = lyr['bq'] * scale
        blocks[f'wqkv{l}'] = jnp.concatenate([wq_s, lyr['wk'], lyr['wv']], axis=1)  # (32,96)
        posq = pos @ wq_s + bq_s
        posk = pos @ lyr['wk'] + lyr['bk']
        bv = jnp.tile(lyr['bv'], (SEQ, 1))
        bqkv_seq = jnp.concatenate([posq, posk, bv], axis=1)                      # (9,96)
        blocks[f'bqkv{l}'] = jnp.tile(bqkv_seq, (batch, 1))                       # (18,96)
        blocks[f'wo{l}'] = lyr['wo']
        blocks[f'w1{l}'] = lyr['w1']
        blocks[f'w2{l}'] = lyr['w2']

        def padff(v):
            return jnp.pad(v, ((0, 0), (0, DIM_FF - v.shape[1])))

        blocks[f'vec{l}'] = jnp.concatenate(
            [padff(lyr['bo']), lyr['b1'], padff(lyr['b2']), padff(lyr['g1']),
             padff(lyr['be1']), padff(lyr['g2']), padff(lyr['be2'])], axis=0)     # (7,64)

    # ---------------- decoder recurrence fold --------------------------------
    dxw, dxb = p['dec_xpos_w'], p['dec_xpos_b']
    A = [dxw @ p['dec_w'][j, HIDDEN:, :] for j in range(NUM_DEC)]                 # (7,7)
    cvecs = [dxb @ p['dec_w'][j, HIDDEN:, :] + p['dec_b'][j] for j in range(NUM_DEC)]
    E = [p['dec_w'][j, :HIDDEN, :] for j in range(NUM_DEC)]                       # (32,7)

    eye = jnp.eye(XPOS_DIM, dtype=jnp.float32)
    M_blocks, M = [], eye
    for j in range(NUM_DEC):
        M = M @ A[j]
        M_blocks.append(M)                                                        # A_0..A_j
    M_all = jnp.concatenate(M_blocks, axis=1)                                     # (7,49)

    W_tok_rows = []
    b_blocks = [jnp.zeros((1, XPOS_DIM), jnp.float32) for _ in range(NUM_DEC)]
    for i in range(NUM_DEC):
        blocks_i = [jnp.zeros((HIDDEN, XPOS_DIM), jnp.float32)] * i
        P = eye                                                                   # P_{i,i}
        for j in range(i, NUM_DEC):
            if j > i:
                P = P @ A[j]                                                      # A_{i+1}..A_j
            blocks_i.append(E[i] @ P)
            b_blocks[j] = b_blocks[j] + cvecs[i] @ P
        W_tok_rows.append(jnp.concatenate(blocks_i, axis=1))                      # (32,49)
    blocks['dec_tok'] = jnp.concatenate(W_tok_rows, axis=0)                       # (224,49)
    blocks['dec_x0'] = M_all
    blocks['dec_b'] = jnp.concatenate(b_blocks, axis=1)                           # (1,49)

    # ---------------- assemble the slab ---------------------------------------
    offs, total = _slab_offsets(batch)
    slab = np.zeros((total, SLAB_LANES), np.float32)
    for name, rows, cols in _section_specs(batch):
        arr = np.asarray(blocks[name], np.float32)
        assert arr.shape == (rows, cols), (name, arr.shape, (rows, cols))
        slab[offs[name]:offs[name] + rows, :cols] = arr
    return jnp.asarray(slab)


# ----------------------------- forward ----------------------------------------
@jax.jit
def forward(slab, joint_qpos, joint0_xpos):
    B = joint_qpos.shape[0]
    offs, total_rows = _slab_offsets(B)
    assert slab.shape == (total_rows, SLAB_LANES), (
        "weight slab was packed for a different batch size")
    jq3 = joint_qpos[:, :, None]          # free bitcast-reshape outside the kernel
    kernel = functools.partial(_fused_kernel, batch=B, offs=offs)
    out_flat = pl.pallas_call(
        kernel,
        out_shape=jax.ShapeDtypeStruct((B, (NUM_DEC + 1) * XPOS_DIM), jnp.float32),
        in_specs=[pl.BlockSpec(memory_space=pltpu.MemorySpace.VMEM)] * 3,
        out_specs=pl.BlockSpec(memory_space=pltpu.MemorySpace.VMEM),
    )(jq3, joint0_xpos, slab)
    return out_flat.reshape(B, NUM_DEC + 1, XPOS_DIM)   # bitcast reshape


# ----------------------------- pure-JAX reference ------------------------------
def forward_ref(params, joint_qpos, joint0_xpos):
    B = joint_qpos.shape[0]
    qe = joint_qpos[:, :, None] * params['enc_qpos_w'] + params['enc_qpos_b']
    xe = joint0_xpos @ params['enc_xpos_w'] + params['enc_xpos_b']
    src = jnp.concatenate([xe[:, None, :], qe], axis=1)
    pos = params['pos_table']
    for lyr in params['layers']:
        qk = src + pos
        q = (qk @ lyr['wq'] + lyr['bq']).reshape(B, SEQ, NHEAD, HEAD_DIM)
        k = (qk @ lyr['wk'] + lyr['bk']).reshape(B, SEQ, NHEAD, HEAD_DIM)
        v = (src @ lyr['wv'] + lyr['bv']).reshape(B, SEQ, NHEAD, HEAD_DIM)
        s = jnp.einsum('bqnd,bknd->bnqk', q, k) / math.sqrt(HEAD_DIM)
        p = jax.nn.softmax(s, axis=-1)
        o = jnp.einsum('bnqk,bknd->bqnd', p, v).reshape(B, SEQ, HIDDEN)
        attn = o @ lyr['wo'] + lyr['bo']
        x = _layernorm(src + attn, lyr['g1'], lyr['be1'])
        ffn = jnp.maximum(x @ lyr['w1'] + lyr['b1'], 0.0) @ lyr['w2'] + lyr['b2']
        src = _layernorm(x + ffn, lyr['g2'], lyr['be2'])
    decoded = [joint0_xpos]
    cur = joint0_xpos
    for j in range(NUM_DEC):
        xemb = cur @ params['dec_xpos_w'] + params['dec_xpos_b']
        joint_input = jnp.concatenate([src[:, j, :], xemb], axis=1)
        dec = joint_input @ params['dec_w'][j] + params['dec_b'][j]
        decoded.append(dec)
        cur = dec
    return jnp.stack(decoded, axis=1)


# ----------------------------- main --------------------------------------------
if __name__ == "__main__":
    key = jax.random.PRNGKey(0)
    kp, kq, kx = jax.random.split(key, 3)

    params = init_params(kp)
    B = 2
    slab = pack_params(params, B)
    joint_qpos = jax.random.normal(kq, (B, JOINT_DIM), dtype=jnp.float32)
    joint0_xpos = jax.random.normal(kx, (B, XPOS_DIM), dtype=jnp.float32)

    out = jax.block_until_ready(forward(slab, joint_qpos, joint0_xpos))

    ref = jax.block_until_ready(forward_ref(params, joint_qpos, joint0_xpos))
    assert out.shape == (B, NUM_DEC + 1, XPOS_DIM), out.shape
    np.testing.assert_allclose(np.asarray(out), np.asarray(ref),
                               rtol=1e-2, atol=2e-3)

    print("KERNEL_OK")
</pallas_src>

<mosaic_0001>
module attributes {stable_mosaic.version = 11 : i64} {
  func.func @_fused_kernel(%arg0: memref<2x8x1xf32, #tpu.memory_space<vmem>>, %arg1: memref<2x7xf32, #tpu.memory_space<vmem>>, %arg2: memref<680x128xf32, #tpu.memory_space<vmem>>, %arg3: memref<2x56xf32, #tpu.memory_space<vmem>>) attributes {dimension_semantics = [], scalar_prefetch = 0 : i64, scratch_operands = 0 : i64, tpu.core_type = #tpu.core_type<tc>} {
    %c0 = arith.constant 0 : index
    %c0_0 = arith.constant 0 : index
    %0 = vector.load %arg1[%c0, %c0_0] : memref<2x7xf32, #tpu.memory_space<vmem>>, vector<2x7xf32>
    %c0_1 = arith.constant 0 : index
    %c0_2 = arith.constant 0 : index
    %1 = vector.load %arg2[%c0_1, %c0_2] : memref<680x128xf32, #tpu.memory_space<vmem>>, vector<8x32xf32>
    %2 = vector.extract_strided_slice %1 {offsets = [0, 0], sizes = [1, 32], strides = [1, 1]} : vector<8x32xf32> to vector<1x32xf32>
    %3 = vector.extract_strided_slice %1 {offsets = [1, 0], sizes = [7, 32], strides = [1, 1]} : vector<8x32xf32> to vector<7x32xf32>
    %c8 = arith.constant 8 : index
    %c0_3 = arith.constant 0 : index
    %4 = vector.load %arg2[%c8, %c0_3] : memref<680x128xf32, #tpu.memory_space<vmem>>, vector<18x32xf32>
    %c32 = arith.constant 32 : index
    %c0_4 = arith.constant 0 : index
    %5 = vector.load %arg2[%c32, %c0_4] : memref<680x128xf32, #tpu.memory_space<vmem>>, vector<18x18xf32>
    %cst = arith.constant dense<0.000000e+00> : vector<2x32xf32>
    %6 = tpu.matmul %0, %3, %cst {dimension_numbers = #tpu.dot_dimension_numbers<[1], [0], [0], [1], [0, 0, 1, 1], [], []>} : vector<2x7xf32>, vector<7x32xf32>, vector<2x32xf32> -> vector<2x32xf32>
    %c0_5 = arith.constant 0 : index
    %c0_6 = arith.constant 0 : index
    %c0_7 = arith.constant 0 : index
    %7 = vector.load %arg0[%c0_5, %c0_6, %c0_7] : memref<2x8x1xf32, #tpu.memory_space<vmem>>, vector<2x8x1xf32>
    %8 = vector.shape_cast %2 : vector<1x32xf32> to vector<1x1x32xf32>
    %9 = vector.broadcast %7 : vector<2x8x1xf32> to vector<2x8x32xf32>
    %10 = vector.broadcast %8 : vector<1x1x32xf32> to vector<2x8x32xf32>
    %11 = arith.mulf %9, %10 : vector<2x8x32xf32>
    %12 = vector.extract_strided_slice %6 {offsets = [0, 0], sizes = [1, 32], strides = [1, 1]} : vector<2x32xf32> to vector<1x32xf32>
    %13 = vector.extract_strided_slice %11 {offsets = [0, 0, 0], sizes = [1, 8, 32], strides = [1, 1, 1]} : vector<2x8x32xf32> to vector<1x8x32xf32>
    %14 = vector.shape_cast %13 : vector<1x8x32xf32> to vector<8x32xf32>
    %15 = vector.extract_strided_slice %6 {offsets = [1, 0], sizes = [1, 32], strides = [1, 1]} : vector<2x32xf32> to vector<1x32xf32>
    %16 = vector.extract_strided_slice %11 {offsets = [1, 0, 0], sizes = [1, 8, 32], strides = [1, 1, 1]} : vector<2x8x32xf32> to vector<1x8x32xf32>
    %17 = vector.shape_cast %16 : vector<1x8x32xf32> to vector<8x32xf32>
    %18 = tpu.concatenate %12, %14, %15, %17 in 0 : vector<1x32xf32>, vector<8x32xf32>, vector<1x32xf32>, vector<8x32xf32> -> vector<18x32xf32>
    %19 = arith.addf %18, %4 : vector<18x32xf32>
    %c56 = arith.constant 56 : index
    %c0_8 = arith.constant 0 : index
    %20 = vector.load %arg2[%c56, %c0_8] : memref<680x128xf32, #tpu.memory_space<vmem>>, vector<32x96xf32>
    %c88 = arith.constant 88 : index
    %c0_9 = arith.constant 0 : index
    %21 = vector.load %arg2[%c88, %c0_9] : memref<680x128xf32, #tpu.memory_space<vmem>>, vector<18x96xf32>
    %c112 = arith.constant 112 : index
    %c0_10 = arith.constant 0 : index
    %22 = vector.load %arg2[%c112, %c0_10] : memref<680x128xf32, #tpu.memory_space<vmem>>, vector<32x32xf32>
    %c144 = arith.constant 144 : index
    %c0_11 = arith.constant 0 : index
    %23 = vector.load %arg2[%c144, %c0_11] : memref<680x128xf32, #tpu.memory_space<vmem>>, vector<32x64xf32>
    %c176 = arith.constant 176 : index
    %c0_12 = arith.constant 0 : index
    %24 = vector.load %arg2[%c176, %c0_12] : memref<680x128xf32, #tpu.memory_space<vmem>>, vector<64x32xf32>
    %c240 = arith.constant 240 : index
    %c0_13 = arith.constant 0 : index
    %25 = vector.load %arg2[%c240, %c0_13] : memref<680x128xf32, #tpu.memory_space<vmem>>, vector<7x64xf32>
    %26 = vector.extract_strided_slice %25 {offsets = [0, 0], sizes = [1, 32], strides = [1, 1]} : vector<7x64xf32> to vector<1x32xf32>
    %27 = vector.extract_strided_slice %25 {offsets = [1, 0], sizes = [1, 64], strides = [1, 1]} : vector<7x64xf32> to vector<1x64xf32>
    %28 = vector.extract_strided_slice %25 {offsets = [2, 0], sizes = [1, 32], strides = [1, 1]} : vector<7x64xf32> to vector<1x32xf32>
    %29 = vector.extract_strided_slice %25 {offsets = [3, 0], sizes = [1, 32], strides = [1, 1]} : vector<7x64xf32> to vector<1x32xf32>
    %30 = vector.extract_strided_slice %25 {offsets = [4, 0], sizes = [1, 32], strides = [1, 1]} : vector<7x64xf32> to vector<1x32xf32>
    %31 = vector.extract_strided_slice %25 {offsets = [5, 0], sizes = [1, 32], strides = [1, 1]} : vector<7x64xf32> to vector<1x32xf32>
    %32 = vector.extract_strided_slice %25 {offsets = [6, 0], sizes = [1, 32], strides = [1, 1]} : vector<7x64xf32> to vector<1x32xf32>
    %cst_14 = arith.constant dense<0.000000e+00> : vector<18x96xf32>
    %33 = tpu.matmul %19, %20, %cst_14 {dimension_numbers = #tpu.dot_dimension_numbers<[1], [0], [0], [1], [0, 0, 1, 1], [], []>} : vector<18x32xf32>, vector<32x96xf32>, vector<18x96xf32> -> vector<18x96xf32>
    %34 = arith.addf %33, %21 : vector<18x96xf32>
    %cst_15 = arith.constant 0.000000e+00 : f32
    %35 = vector.broadcast %cst_15 : f32 to vector<18x32xf32>
    %36 = vector.extract_strided_slice %34 {offsets = [0, 0], sizes = [18, 8], strides = [1, 1]} : vector<18x96xf32> to vector<18x8xf32>
    %37 = vector.extract_strided_slice %34 {offsets = [0, 32], sizes = [18, 8], strides = [1, 1]} : vector<18x96xf32> to vector<18x8xf32>
    %38 = vector.extract_strided_slice %34 {offsets = [0, 64], sizes = [18, 8], strides = [1, 1]} : vector<18x96xf32> to vector<18x8xf32>
    %cst_16 = arith.constant dense<0.000000e+00> : vector<18x18xf32>
    %39 = tpu.matmul %36, %37, %cst_16 {dimension_numbers = #tpu.dot_dimension_numbers<[1], [1], [0], [0], [0, 0, 1, 0], [], []>} : vector<18x8xf32>, vector<18x8xf32>, vector<18x18xf32> -> vector<18x18xf32>
    %40 = arith.addf %39, %5 : vector<18x18xf32>
    %cst_17 = arith.constant dense<0xFF800000> : vector<18xf32>
    %41 = vector.multi_reduction <maximumf>, %40, %cst_17 [1] : vector<18x18xf32> to vector<18xf32>
    %42 = vector.shape_cast %41 : vector<18xf32> to vector<18x1xf32>
    %43 = vector.broadcast %42 : vector<18x1xf32> to vector<18x18xf32>
    %44 = arith.subf %40, %43 : vector<18x18xf32>
    %45 = math.exp %44 : vector<18x18xf32>
    %cst_18 = arith.constant dense<0.000000e+00> : vector<18xf32>
    %46 = vector.multi_reduction <add>, %45, %cst_18 [1] : vector<18x18xf32> to vector<18xf32>
    %47 = vector.shape_cast %46 : vector<18xf32> to vector<18x1xf32>
    %48 = tpu.reciprocal %47 {approx = true} : vector<18x1xf32> -> vector<18x1xf32>
    %49 = vector.broadcast %48 : vector<18x1xf32> to vector<18x18xf32>
    %50 = arith.mulf %45, %49 : vector<18x18xf32>
    %cst_19 = arith.constant dense<0.000000e+00> : vector<18x8xf32>
    %51 = tpu.matmul %50, %38, %cst_19 {dimension_numbers = #tpu.dot_dimension_numbers<[1], [0], [0], [1], [0, 0, 1, 1], [], []>} : vector<18x18xf32>, vector<18x8xf32>, vector<18x8xf32> -> vector<18x8xf32>
    %52 = vector.extract_strided_slice %22 {offsets = [0, 0], sizes = [8, 32], strides = [1, 1]} : vector<32x32xf32> to vector<8x32xf32>
    %cst_20 = arith.constant dense<0.000000e+00> : vector<18x32xf32>
    %53 = tpu.matmul %51, %52, %cst_20 {dimension_numbers = #tpu.dot_dimension_numbers<[1], [0], [0], [1], [0, 0, 1, 1], [], []>} : vector<18x8xf32>, vector<8x32xf32>, vector<18x32xf32> -> vector<18x32xf32>
    %54 = arith.addf %35, %53 : vector<18x32xf32>
    %55 = vector.extract_strided_slice %34 {offsets = [0, 8], sizes = [18, 8], strides = [1, 1]} : vector<18x96xf32> to vector<18x8xf32>
    %56 = vector.extract_strided_slice %34 {offsets = [0, 40], sizes = [18, 8], strides = [1, 1]} : vector<18x96xf32> to vector<18x8xf32>
    %57 = vector.extract_strided_slice %34 {offsets = [0, 72], sizes = [18, 8], strides = [1, 1]} : vector<18x96xf32> to vector<18x8xf32>
    %cst_21 = arith.constant dense<0.000000e+00> : vector<18x18xf32>
    %58 = tpu.matmul %55, %56, %cst_21 {dimension_numbers = #tpu.dot_dimension_numbers<[1], [1], [0], [0], [0, 0, 1, 0], [], []>} : vector<18x8xf32>, vector<18x8xf32>, vector<18x18xf32> -> vector<18x18xf32>
    %59 = arith.addf %58, %5 : vector<18x18xf32>
    %cst_22 = arith.constant dense<0xFF800000> : vector<18xf32>
    %60 = vector.multi_reduction <maximumf>, %59, %cst_22 [1] : vector<18x18xf32> to vector<18xf32>
    %61 = vector.shape_cast %60 : vector<18xf32> to vector<18x1xf32>
    %62 = vector.broadcast %61 : vector<18x1xf32> to vector<18x18xf32>
    %63 = arith.subf %59, %62 : vector<18x18xf32>
    %64 = math.exp %63 : vector<18x18xf32>
    %cst_23 = arith.constant dense<0.000000e+00> : vector<18xf32>
    %65 = vector.multi_reduction <add>, %64, %cst_23 [1] : vector<18x18xf32> to vector<18xf32>
    %66 = vector.shape_cast %65 : vector<18xf32> to vector<18x1xf32>
    %67 = tpu.reciprocal %66 {approx = true} : vector<18x1xf32> -> vector<18x1xf32>
    %68 = vector.broadcast %67 : vector<18x1xf32> to vector<18x18xf32>
    %69 = arith.mulf %64, %68 : vector<18x18xf32>
    %cst_24 = arith.constant dense<0.000000e+00> : vector<18x8xf32>
    %70 = tpu.matmul %69, %57, %cst_24 {dimension_numbers = #tpu.dot_dimension_numbers<[1], [0], [0], [1], [0, 0, 1, 1], [], []>} : vector<18x18xf32>, vector<18x8xf32>, vector<18x8xf32> -> vector<18x8xf32>
    %71 = vector.extract_strided_slice %22 {offsets = [8, 0], sizes = [8, 32], strides = [1, 1]} : vector<32x32xf32> to vector<8x32xf32>
    %cst_25 = arith.constant dense<0.000000e+00> : vector<18x32xf32>
    %72 = tpu.matmul %70, %71, %cst_25 {dimension_numbers = #tpu.dot_dimension_numbers<[1], [0], [0], [1], [0, 0, 1, 1], [], []>} : vector<18x8xf32>, vector<8x32xf32>, vector<18x32xf32> -> vector<18x32xf32>
    %73 = arith.addf %54, %72 : vector<18x32xf32>
    %74 = vector.extract_strided_slice %34 {offsets = [0, 16], sizes = [18, 8], strides = [1, 1]} : vector<18x96xf32> to vector<18x8xf32>
    %75 = vector.extract_strided_slice %34 {offsets = [0, 48], sizes = [18, 8], strides = [1, 1]} : vector<18x96xf32> to vector<18x8xf32>
    %76 = vector.extract_strided_slice %34 {offsets = [0, 80], sizes = [18, 8], strides = [1, 1]} : vector<18x96xf32> to vector<18x8xf32>
    %cst_26 = arith.constant dense<0.000000e+00> : vector<18x18xf32>
    %77 = tpu.matmul %74, %75, %cst_26 {dimension_numbers = #tpu.dot_dimension_numbers<[1], [1], [0], [0], [0, 0, 1, 0], [], []>} : vector<18x8xf32>, vector<18x8xf32>, vector<18x18xf32> -> vector<18x18xf32>
    %78 = arith.addf %77, %5 : vector<18x18xf32>
    %cst_27 = arith.constant dense<0xFF800000> : vector<18xf32>
    %79 = vector.multi_reduction <maximumf>, %78, %cst_27 [1] : vector<18x18xf32> to vector<18xf32>
    %80 = vector.shape_cast %79 : vector<18xf32> to vector<18x1xf32>
    %81 = vector.broadcast %80 : vector<18x1xf32> to vector<18x18xf32>
    %82 = arith.subf %78, %81 : vector<18x18xf32>
    %83 = math.exp %82 : vector<18x18xf32>
    %cst_28 = arith.constant dense<0.000000e+00> : vector<18xf32>
    %84 = vector.multi_reduction <add>, %83, %cst_28 [1] : vector<18x18xf32> to vector<18xf32>
    %85 = vector.shape_cast %84 : vector<18xf32> to vector<18x1xf32>
    %86 = tpu.reciprocal %85 {approx = true} : vector<18x1xf32> -> vector<18x1xf32>
    %87 = vector.broadcast %86 : vector<18x1xf32> to vector<18x18xf32>
    %88 = arith.mulf %83, %87 : vector<18x18xf32>
    %cst_29 = arith.constant dense<0.000000e+00> : vector<18x8xf32>
    %89 = tpu.matmul %88, %76, %cst_29 {dimension_numbers = #tpu.dot_dimension_numbers<[1], [0], [0], [1], [0, 0, 1, 1], [], []>} : vector<18x18xf32>, vector<18x8xf32>, vector<18x8xf32> -> vector<18x8xf32>
    %90 = vector.extract_strided_slice %22 {offsets = [16, 0], sizes = [8, 32], strides = [1, 1]} : vector<32x32xf32> to vector<8x32xf32>
    %cst_30 = arith.constant dense<0.000000e+00> : vector<18x32xf32>
    %91 = tpu.matmul %89, %90, %cst_30 {dimension_numbers = #tpu.dot_dimension_numbers<[1], [0], [0], [1], [0, 0, 1, 1], [], []>} : vector<18x8xf32>, vector<8x32xf32>, vector<18x32xf32> -> vector<18x32xf32>
    %92 = arith.addf %73, %91 : vector<18x32xf32>
    %93 = vector.extract_strided_slice %34 {offsets = [0, 24], sizes = [18, 8], strides = [1, 1]} : vector<18x96xf32> to vector<18x8xf32>
    %94 = vector.extract_strided_slice %34 {offsets = [0, 56], sizes = [18, 8], strides = [1, 1]} : vector<18x96xf32> to vector<18x8xf32>
    %95 = vector.extract_strided_slice %34 {offsets = [0, 88], sizes = [18, 8], strides = [1, 1]} : vector<18x96xf32> to vector<18x8xf32>
    %cst_31 = arith.constant dense<0.000000e+00> : vector<18x18xf32>
    %96 = tpu.matmul %93, %94, %cst_31 {dimension_numbers = #tpu.dot_dimension_numbers<[1], [1], [0], [0], [0, 0, 1, 0], [], []>} : vector<18x8xf32>, vector<18x8xf32>, vector<18x18xf32> -> vector<18x18xf32>
    %97 = arith.addf %96, %5 : vector<18x18xf32>
    %cst_32 = arith.constant dense<0xFF800000> : vector<18xf32>
    %98 = vector.multi_reduction <maximumf>, %97, %cst_32 [1] : vector<18x18xf32> to vector<18xf32>
    %99 = vector.shape_cast %98 : vector<18xf32> to vector<18x1xf32>
    %100 = vector.broadcast %99 : vector<18x1xf32> to vector<18x18xf32>
    %101 = arith.subf %97, %100 : vector<18x18xf32>
    %102 = math.exp %101 : vector<18x18xf32>
    %cst_33 = arith.constant dense<0.000000e+00> : vector<18xf32>
    %103 = vector.multi_reduction <add>, %102, %cst_33 [1] : vector<18x18xf32> to vector<18xf32>
    %104 = vector.shape_cast %103 : vector<18xf32> to vector<18x1xf32>
    %105 = tpu.reciprocal %104 {approx = true} : vector<18x1xf32> -> vector<18x1xf32>
    %106 = vector.broadcast %105 : vector<18x1xf32> to vector<18x18xf32>
    %107 = arith.mulf %102, %106 : vector<18x18xf32>
    %cst_34 = arith.constant dense<0.000000e+00> : vector<18x8xf32>
    %108 = tpu.matmul %107, %95, %cst_34 {dimension_numbers = #tpu.dot_dimension_numbers<[1], [0], [0], [1], [0, 0, 1, 1], [], []>} : vector<18x18xf32>, vector<18x8xf32>, vector<18x8xf32> -> vector<18x8xf32>
    %109 = vector.extract_strided_slice %22 {offsets = [24, 0], sizes = [8, 32], strides = [1, 1]} : vector<32x32xf32> to vector<8x32xf32>
    %cst_35 = arith.constant dense<0.000000e+00> : vector<18x32xf32>
    %110 = tpu.matmul %108, %109, %cst_35 {dimension_numbers = #tpu.dot_dimension_numbers<[1], [0], [0], [1], [0, 0, 1, 1], [], []>} : vector<18x8xf32>, vector<8x32xf32>, vector<18x32xf32> -> vector<18x32xf32>
    %111 = arith.addf %92, %110 : vector<18x32xf32>
    %112 = vector.broadcast %26 : vector<1x32xf32> to vector<18x32xf32>
    %113 = arith.addf %111, %112 : vector<18x32xf32>
    %114 = arith.addf %19, %113 : vector<18x32xf32>
    %cst_36 = arith.constant dense<0.000000e+00> : vector<18xf32>
    %115 = vector.multi_reduction <add>, %114, %cst_36 [1] : vector<18x32xf32> to vector<18xf32>
    %116 = vector.shape_cast %115 : vector<18xf32> to vector<18x1xf32>
    %cst_37 = arith.constant 3.200000e+01 : f32
    %117 = vector.broadcast %cst_37 : f32 to vector<18x1xf32>
    %118 = arith.divf %116, %117 : vector<18x1xf32>
    %119 = vector.broadcast %118 : vector<18x1xf32> to vector<18x32xf32>
    %120 = arith.subf %114, %119 : vector<18x32xf32>
    %121 = arith.mulf %120, %120 : vector<18x32xf32>
    %cst_38 = arith.constant dense<0.000000e+00> : vector<18xf32>
    %122 = vector.multi_reduction <add>, %121, %cst_38 [1] : vector<18x32xf32> to vector<18xf32>
    %123 = vector.shape_cast %122 : vector<18xf32> to vector<18x1xf32>
    %cst_39 = arith.constant 3.200000e+01 : f32
    %124 = vector.broadcast %cst_39 : f32 to vector<18x1xf32>
    %125 = arith.divf %123, %124 : vector<18x1xf32>
    %cst_40 = arith.constant 9.99999974E-6 : f32
    %126 = vector.broadcast %cst_40 : f32 to vector<18x1xf32>
    %127 = arith.addf %125, %126 : vector<18x1xf32>
    %128 = math.rsqrt %127 : vector<18x1xf32>
    %129 = vector.broadcast %128 : vector<18x1xf32> to vector<18x32xf32>
    %130 = arith.mulf %120, %129 : vector<18x32xf32>
    %131 = vector.broadcast %29 : vector<1x32xf32> to vector<18x32xf32>
    %132 = arith.mulf %130, %131 : vector<18x32xf32>
    %133 = vector.broadcast %30 : vector<1x32xf32> to vector<18x32xf32>
    %134 = arith.addf %132, %133 : vector<18x32xf32>
    %cst_41 = arith.constant dense<0.000000e+00> : vector<18x64xf32>
    %135 = tpu.matmul %134, %23, %cst_41 {dimension_numbers = #tpu.dot_dimension_numbers<[1], [0], [0], [1], [0, 0, 1, 1], [], []>} : vector<18x32xf32>, vector<32x64xf32>, vector<18x64xf32> -> vector<18x64xf32>
    %136 = vector.broadcast %27 : vector<1x64xf32> to vector<18x64xf32>
    %137 = arith.addf %135, %136 : vector<18x64xf32>
    %cst_42 = arith.constant 0.000000e+00 : f32
    %138 = vector.broadcast %cst_42 : f32 to vector<18x64xf32>
    %139 = arith.maximumf %137, %138 : vector<18x64xf32>
    %cst_43 = arith.constant dense<0.000000e+00> : vector<18x32xf32>
    %140 = tpu.matmul %139, %24, %cst_43 {dimension_numbers = #tpu.dot_dimension_numbers<[1], [0], [0], [1], [0, 0, 1, 1], [], []>} : vector<18x64xf32>, vector<64x32xf32>, vector<18x32xf32> -> vector<18x32xf32>
    %141 = vector.broadcast %28 : vector<1x32xf32> to vector<18x32xf32>
    %142 = arith.addf %140, %141 : vector<18x32xf32>
    %143 = arith.addf %134, %142 : vector<18x32xf32>
    %cst_44 = arith.constant dense<0.000000e+00> : vector<18xf32>
    %144 = vector.multi_reduction <add>, %143, %cst_44 [1] : vector<18x32xf32> to vector<18xf32>
    %145 = vector.shape_cast %144 : vector<18xf32> to vector<18x1xf32>
    %cst_45 = arith.constant 3.200000e+01 : f32
    %146 = vector.broadcast %cst_45 : f32 to vector<18x1xf32>
    %147 = arith.divf %145, %146 : vector<18x1xf32>
    %148 = vector.broadcast %147 : vector<18x1xf32> to vector<18x32xf32>
    %149 = arith.subf %143, %148 : vector<18x32xf32>
    %150 = arith.mulf %149, %149 : vector<18x32xf32>
    %cst_46 = arith.constant dense<0.000000e+00> : vector<18xf32>
    %151 = vector.multi_reduction <add>, %150, %cst_46 [1] : vector<18x32xf32> to vector<18xf32>
    %152 = vector.shape_cast %151 : vector<18xf32> to vector<18x1xf32>
    %cst_47 = arith.constant 3.200000e+01 : f32
    %153 = vector.broadcast %cst_47 : f32 to vector<18x1xf32>
    %154 = arith.divf %152, %153 : vector<18x1xf32>
    %cst_48 = arith.constant 9.99999974E-6 : f32
    %155 = vector.broadcast %cst_48 : f32 to vector<18x1xf32>
    %156 = arith.addf %154, %155 : vector<18x1xf32>
    %157 = math.rsqrt %156 : vector<18x1xf32>
    %158 = vector.broadcast %157 : vector<18x1xf32> to vector<18x32xf32>
    %159 = arith.mulf %149, %158 : vector<18x32xf32>
    %160 = vector.broadcast %31 : vector<1x32xf32> to vector<18x32xf32>
    %161 = arith.mulf %159, %160 : vector<18x32xf32>
    %162 = vector.broadcast %32 : vector<1x32xf32> to vector<18x32xf32>
    %163 = arith.addf %161, %162 : vector<18x32xf32>
    %c248 = arith.constant 248 : index
    %c0_49 = arith.constant 0 : index
    %164 = vector.load %arg2[%c248, %c0_49] : memref<680x128xf32, #tpu.memory_space<vmem>>, vector<32x96xf32>
    %c280 = arith.constant 280 : index
    %c0_50 = arith.constant 0 : index
    %165 = vector.load %arg2[%c280, %c0_50] : memref<680x128xf32, #tpu.memory_space<vmem>>, vector<18x96xf32>
    %c304 = arith.constant 304 : index
    %c0_51 = arith.constant 0 : index
    %166 = vector.load %arg2[%c304, %c0_51] : memref<680x128xf32, #tpu.memory_space<vmem>>, vector<32x32xf32>
    %c336 = arith.constant 336 : index
    %c0_52 = arith.constant 0 : index
    %167 = vector.load %arg2[%c336, %c0_52] : memref<680x128xf32, #tpu.memory_space<vmem>>, vector<32x64xf32>
    %c368 = arith.constant 368 : index
    %c0_53 = arith.constant 0 : index
    %168 = vector.load %arg2[%c368, %c0_53] : memref<680x128xf32, #tpu.memory_space<vmem>>, vector<64x32xf32>
    %c432 = arith.constant 432 : index
    %c0_54 = arith.constant 0 : index
    %169 = vector.load %arg2[%c432, %c0_54] : memref<680x128xf32, #tpu.memory_space<vmem>>, vector<7x64xf32>
    %170 = vector.extract_strided_slice %169 {offsets = [0, 0], sizes = [1, 32], strides = [1, 1]} : vector<7x64xf32> to vector<1x32xf32>
    %171 = vector.extract_strided_slice %169 {offsets = [1, 0], sizes = [1, 64], strides = [1, 1]} : vector<7x64xf32> to vector<1x64xf32>
    %172 = vector.extract_strided_slice %169 {offsets = [2, 0], sizes = [1, 32], strides = [1, 1]} : vector<7x64xf32> to vector<1x32xf32>
    %173 = vector.extract_strided_slice %169 {offsets = [3, 0], sizes = [1, 32], strides = [1, 1]} : vector<7x64xf32> to vector<1x32xf32>
    %174 = vector.extract_strided_slice %169 {offsets = [4, 0], sizes = [1, 32], strides = [1, 1]} : vector<7x64xf32> to vector<1x32xf32>
    %175 = vector.extract_strided_slice %169 {offsets = [5, 0], sizes = [1, 32], strides = [1, 1]} : vector<7x64xf32> to vector<1x32xf32>
    %176 = vector.extract_strided_slice %169 {offsets = [6, 0], sizes = [1, 32], strides = [1, 1]} : vector<7x64xf32> to vector<1x32xf32>
    %cst_55 = arith.constant dense<0.000000e+00> : vector<18x96xf32>
    %177 = tpu.matmul %163, %164, %cst_55 {dimension_numbers = #tpu.dot_dimension_numbers<[1], [0], [0], [1], [0, 0, 1, 1], [], []>} : vector<18x32xf32>, vector<32x96xf32>, vector<18x96xf32> -> vector<18x96xf32>
    %178 = arith.addf %177, %165 : vector<18x96xf32>
    %cst_56 = arith.constant 0.000000e+00 : f32
    %179 = vector.broadcast %cst_56 : f32 to vector<18x32xf32>
    %180 = vector.extract_strided_slice %178 {offsets = [0, 0], sizes = [18, 8], strides = [1, 1]} : vector<18x96xf32> to vector<18x8xf32>
    %181 = vector.extract_strided_slice %178 {offsets = [0, 32], sizes = [18, 8], strides = [1, 1]} : vector<18x96xf32> to vector<18x8xf32>
    %182 = vector.extract_strided_slice %178 {offsets = [0, 64], sizes = [18, 8], strides = [1, 1]} : vector<18x96xf32> to vector<18x8xf32>
    %cst_57 = arith.constant dense<0.000000e+00> : vector<18x18xf32>
    %183 = tpu.matmul %180, %181, %cst_57 {dimension_numbers = #tpu.dot_dimension_numbers<[1], [1], [0], [0], [0, 0, 1, 0], [], []>} : vector<18x8xf32>, vector<18x8xf32>, vector<18x18xf32> -> vector<18x18xf32>
    %184 = arith.addf %183, %5 : vector<18x18xf32>
    %cst_58 = arith.constant dense<0xFF800000> : vector<18xf32>
    %185 = vector.multi_reduction <maximumf>, %184, %cst_58 [1] : vector<18x18xf32> to vector<18xf32>
    %186 = vector.shape_cast %185 : vector<18xf32> to vector<18x1xf32>
    %187 = vector.broadcast %186 : vector<18x1xf32> to vector<18x18xf32>
    %188 = arith.subf %184, %187 : vector<18x18xf32>
    %189 = math.exp %188 : vector<18x18xf32>
    %cst_59 = arith.constant dense<0.000000e+00> : vector<18xf32>
    %190 = vector.multi_reduction <add>, %189, %cst_59 [1] : vector<18x18xf32> to vector<18xf32>
    %191 = vector.shape_cast %190 : vector<18xf32> to vector<18x1xf32>
    %192 = tpu.reciprocal %191 {approx = true} : vector<18x1xf32> -> vector<18x1xf32>
    %193 = vector.broadcast %192 : vector<18x1xf32> to vector<18x18xf32>
    %194 = arith.mulf %189, %193 : vector<18x18xf32>
    %cst_60 = arith.constant dense<0.000000e+00> : vector<18x8xf32>
    %195 = tpu.matmul %194, %182, %cst_60 {dimension_numbers = #tpu.dot_dimension_numbers<[1], [0], [0], [1], [0, 0, 1, 1], [], []>} : vector<18x18xf32>, vector<18x8xf32>, vector<18x8xf32> -> vector<18x8xf32>
    %196 = vector.extract_strided_slice %166 {offsets = [0, 0], sizes = [8, 32], strides = [1, 1]} : vector<32x32xf32> to vector<8x32xf32>
    %cst_61 = arith.constant dense<0.000000e+00> : vector<18x32xf32>
    %197 = tpu.matmul %195, %196, %cst_61 {dimension_numbers = #tpu.dot_dimension_numbers<[1], [0], [0], [1], [0, 0, 1, 1], [], []>} : vector<18x8xf32>, vector<8x32xf32>, vector<18x32xf32> -> vector<18x32xf32>
    %198 = arith.addf %179, %197 : vector<18x32xf32>
    %199 = vector.extract_strided_slice %178 {offsets = [0, 8], sizes = [18, 8], strides = [1, 1]} : vector<18x96xf32> to vector<18x8xf32>
    %200 = vector.extract_strided_slice %178 {offsets = [0, 40], sizes = [18, 8], strides = [1, 1]} : vector<18x96xf32> to vector<18x8xf32>
    %201 = vector.extract_strided_slice %178 {offsets = [0, 72], sizes = [18, 8], strides = [1, 1]} : vector<18x96xf32> to vector<18x8xf32>
    %cst_62 = arith.constant dense<0.000000e+00> : vector<18x18xf32>
    %202 = tpu.matmul %199, %200, %cst_62 {dimension_numbers = #tpu.dot_dimension_numbers<[1], [1], [0], [0], [0, 0, 1, 0], [], []>} : vector<18x8xf32>, vector<18x8xf32>, vector<18x18xf32> -> vector<18x18xf32>
    %203 = arith.addf %202, %5 : vector<18x18xf32>
    %cst_63 = arith.constant dense<0xFF800000> : vector<18xf32>
    %204 = vector.multi_reduction <maximumf>, %203, %cst_63 [1] : vector<18x18xf32> to vector<18xf32>
    %205 = vector.shape_cast %204 : vector<18xf32> to vector<18x1xf32>
    %206 = vector.broadcast %205 : vector<18x1xf32> to vector<18x18xf32>
    %207 = arith.subf %203, %206 : vector<18x18xf32>
    %208 = math.exp %207 : vector<18x18xf32>
    %cst_64 = arith.constant dense<0.000000e+00> : vector<18xf32>
    %209 = vector.multi_reduction <add>, %208, %cst_64 [1] : vector<18x18xf32> to vector<18xf32>
    %210 = vector.shape_cast %209 : vector<18xf32> to vector<18x1xf32>
    %211 = tpu.reciprocal %210 {approx = true} : vector<18x1xf32> -> vector<18x1xf32>
    %212 = vector.broadcast %211 : vector<18x1xf32> to vector<18x18xf32>
    %213 = arith.mulf %208, %212 : vector<18x18xf32>
    %cst_65 = arith.constant dense<0.000000e+00> : vector<18x8xf32>
    %214 = tpu.matmul %213, %201, %cst_65 {dimension_numbers = #tpu.dot_dimension_numbers<[1], [0], [0], [1], [0, 0, 1, 1], [], []>} : vector<18x18xf32>, vector<18x8xf32>, vector<18x8xf32> -> vector<18x8xf32>
    %215 = vector.extract_strided_slice %166 {offsets = [8, 0], sizes = [8, 32], strides = [1, 1]} : vector<32x32xf32> to vector<8x32xf32>
    %cst_66 = arith.constant dense<0.000000e+00> : vector<18x32xf32>
    %216 = tpu.matmul %214, %215, %cst_66 {dimension_numbers = #tpu.dot_dimension_numbers<[1], [0], [0], [1], [0, 0, 1, 1], [], []>} : vector<18x8xf32>, vector<8x32xf32>, vector<18x32xf32> -> vector<18x32xf32>
    %217 = arith.addf %198, %216 : vector<18x32xf32>
    %218 = vector.extract_strided_slice %178 {offsets = [0, 16], sizes = [18, 8], strides = [1, 1]} : vector<18x96xf32> to vector<18x8xf32>
    %219 = vector.extract_strided_slice %178 {offsets = [0, 48], sizes = [18, 8], strides = [1, 1]} : vector<18x96xf32> to vector<18x8xf32>
    %220 = vector.extract_strided_slice %178 {offsets = [0, 80], sizes = [18, 8], strides = [1, 1]} : vector<18x96xf32> to vector<18x8xf32>
    %cst_67 = arith.constant dense<0.000000e+00> : vector<18x18xf32>
    %221 = tpu.matmul %218, %219, %cst_67 {dimension_numbers = #tpu.dot_dimension_numbers<[1], [1], [0], [0], [0, 0, 1, 0], [], []>} : vector<18x8xf32>, vector<18x8xf32>, vector<18x18xf32> -> vector<18x18xf32>
    %222 = arith.addf %221, %5 : vector<18x18xf32>
    %cst_68 = arith.constant dense<0xFF800000> : vector<18xf32>
    %223 = vector.multi_reduction <maximumf>, %222, %cst_68 [1] : vector<18x18xf32> to vector<18xf32>
    %224 = vector.shape_cast %223 : vector<18xf32> to vector<18x1xf32>
    %225 = vector.broadcast %224 : vector<18x1xf32> to vector<18x18xf32>
    %226 = arith.subf %222, %225 : vector<18x18xf32>
    %227 = math.exp %226 : vector<18x18xf32>
    %cst_69 = arith.constant dense<0.000000e+00> : vector<18xf32>
    %228 = vector.multi_reduction <add>, %227, %cst_69 [1] : vector<18x18xf32> to vector<18xf32>
    %229 = vector.shape_cast %228 : vector<18xf32> to vector<18x1xf32>
    %230 = tpu.reciprocal %229 {approx = true} : vector<18x1xf32> -> vector<18x1xf32>
    %231 = vector.broadcast %230 : vector<18x1xf32> to vector<18x18xf32>
    %232 = arith.mulf %227, %231 : vector<18x18xf32>
    %cst_70 = arith.constant dense<0.000000e+00> : vector<18x8xf32>
    %233 = tpu.matmul %232, %220, %cst_70 {dimension_numbers = #tpu.dot_dimension_numbers<[1], [0], [0], [1], [0, 0, 1, 1], [], []>} : vector<18x18xf32>, vector<18x8xf32>, vector<18x8xf32> -> vector<18x8xf32>
    %234 = vector.extract_strided_slice %166 {offsets = [16, 0], sizes = [8, 32], strides = [1, 1]} : vector<32x32xf32> to vector<8x32xf32>
    %cst_71 = arith.constant dense<0.000000e+00> : vector<18x32xf32>
    %235 = tpu.matmul %233, %234, %cst_71 {dimension_numbers = #tpu.dot_dimension_numbers<[1], [0], [0], [1], [0, 0, 1, 1], [], []>} : vector<18x8xf32>, vector<8x32xf32>, vector<18x32xf32> -> vector<18x32xf32>
    %236 = arith.addf %217, %235 : vector<18x32xf32>
    %237 = vector.extract_strided_slice %178 {offsets = [0, 24], sizes = [18, 8], strides = [1, 1]} : vector<18x96xf32> to vector<18x8xf32>
    %238 = vector.extract_strided_slice %178 {offsets = [0, 56], sizes = [18, 8], strides = [1, 1]} : vector<18x96xf32> to vector<18x8xf32>
    %239 = vector.extract_strided_slice %178 {offsets = [0, 88], sizes = [18, 8], strides = [1, 1]} : vector<18x96xf32> to vector<18x8xf32>
    %cst_72 = arith.constant dense<0.000000e+00> : vector<18x18xf32>
    %240 = tpu.matmul %237, %238, %cst_72 {dimension_numbers = #tpu.dot_dimension_numbers<[1], [1], [0], [0], [0, 0, 1, 0], [], []>} : vector<18x8xf32>, vector<18x8xf32>, vector<18x18xf32> -> vector<18x18xf32>
    %241 = arith.addf %240, %5 : vector<18x18xf32>
    %cst_73 = arith.constant dense<0xFF800000> : vector<18xf32>
    %242 = vector.multi_reduction <maximumf>, %241, %cst_73 [1] : vector<18x18xf32> to vector<18xf32>
    %243 = vector.shape_cast %242 : vector<18xf32> to vector<18x1xf32>
    %244 = vector.broadcast %243 : vector<18x1xf32> to vector<18x18xf32>
    %245 = arith.subf %241, %244 : vector<18x18xf32>
    %246 = math.exp %245 : vector<18x18xf32>
    %cst_74 = arith.constant dense<0.000000e+00> : vector<18xf32>
    %247 = vector.multi_reduction <add>, %246, %cst_74 [1] : vector<18x18xf32> to vector<18xf32>
    %248 = vector.shape_cast %247 : vector<18xf32> to vector<18x1xf32>
    %249 = tpu.reciprocal %248 {approx = true} : vector<18x1xf32> -> vector<18x1xf32>
    %250 = vector.broadcast %249 : vector<18x1xf32> to vector<18x18xf32>
    %251 = arith.mulf %246, %250 : vector<18x18xf32>
    %cst_75 = arith.constant dense<0.000000e+00> : vector<18x8xf32>
    %252 = tpu.matmul %251, %239, %cst_75 {dimension_numbers = #tpu.dot_dimension_numbers<[1], [0], [0], [1], [0, 0, 1, 1], [], []>} : vector<18x18xf32>, vector<18x8xf32>, vector<18x8xf32> -> vector<18x8xf32>
    %253 = vector.extract_strided_slice %166 {offsets = [24, 0], sizes = [8, 32], strides = [1, 1]} : vector<32x32xf32> to vector<8x32xf32>
    %cst_76 = arith.constant dense<0.000000e+00> : vector<18x32xf32>
    %254 = tpu.matmul %252, %253, %cst_76 {dimension_numbers = #tpu.dot_dimension_numbers<[1], [0], [0], [1], [0, 0, 1, 1], [], []>} : vector<18x8xf32>, vector<8x32xf32>, vector<18x32xf32> -> vector<18x32xf32>
    %255 = arith.addf %236, %254 : vector<18x32xf32>
    %256 = vector.broadcast %170 : vector<1x32xf32> to vector<18x32xf32>
    %257 = arith.addf %255, %256 : vector<18x32xf32>
    %258 = arith.addf %163, %257 : vector<18x32xf32>
    %cst_77 = arith.constant dense<0.000000e+00> : vector<18xf32>
    %259 = vector.multi_reduction <add>, %258, %cst_77 [1] : vector<18x32xf32> to vector<18xf32>
    %260 = vector.shape_cast %259 : vector<18xf32> to vector<18x1xf32>
    %cst_78 = arith.constant 3.200000e+01 : f32
    %261 = vector.broadcast %cst_78 : f32 to vector<18x1xf32>
    %262 = arith.divf %260, %261 : vector<18x1xf32>
    %263 = vector.broadcast %262 : vector<18x1xf32> to vector<18x32xf32>
    %264 = arith.subf %258, %263 : vector<18x32xf32>
    %265 = arith.mulf %264, %264 : vector<18x32xf32>
    %cst_79 = arith.constant dense<0.000000e+00> : vector<18xf32>
    %266 = vector.multi_reduction <add>, %265, %cst_79 [1] : vector<18x32xf32> to vector<18xf32>
    %267 = vector.shape_cast %266 : vector<18xf32> to vector<18x1xf32>
    %cst_80 = arith.constant 3.200000e+01 : f32
    %268 = vector.broadcast %cst_80 : f32 to vector<18x1xf32>
    %269 = arith.divf %267, %268 : vector<18x1xf32>
    %cst_81 = arith.constant 9.99999974E-6 : f32
    %270 = vector.broadcast %cst_81 : f32 to vector<18x1xf32>
    %271 = arith.addf %269, %270 : vector<18x1xf32>
    %272 = math.rsqrt %271 : vector<18x1xf32>
    %273 = vector.broadcast %272 : vector<18x1xf32> to vector<18x32xf32>
    %274 = arith.mulf %264, %273 : vector<18x32xf32>
    %275 = vector.broadcast %173 : vector<1x32xf32> to vector<18x32xf32>
    %276 = arith.mulf %274, %275 : vector<18x32xf32>
    %277 = vector.broadcast %174 : vector<1x32xf32> to vector<18x32xf32>
    %278 = arith.addf %276, %277 : vector<18x32xf32>
    %cst_82 = arith.constant dense<0.000000e+00> : vector<18x64xf32>
    %279 = tpu.matmul %278, %167, %cst_82 {dimension_numbers = #tpu.dot_dimension_numbers<[1], [0], [0], [1], [0, 0, 1, 1], [], []>} : vector<18x32xf32>, vector<32x64xf32>, vector<18x64xf32> -> vector<18x64xf32>
    %280 = vector.broadcast %171 : vector<1x64xf32> to vector<18x64xf32>
    %281 = arith.addf %279, %280 : vector<18x64xf32>
    %cst_83 = arith.constant 0.000000e+00 : f32
    %282 = vector.broadcast %cst_83 : f32 to vector<18x64xf32>
    %283 = arith.maximumf %281, %282 : vector<18x64xf32>
    %cst_84 = arith.constant dense<0.000000e+00> : vector<18x32xf32>
    %284 = tpu.matmul %283, %168, %cst_84 {dimension_numbers = #tpu.dot_dimension_numbers<[1], [0], [0], [1], [0, 0, 1, 1], [], []>} : vector<18x64xf32>, vector<64x32xf32>, vector<18x32xf32> -> vector<18x32xf32>
    %285 = vector.broadcast %172 : vector<1x32xf32> to vector<18x32xf32>
    %286 = arith.addf %284, %285 : vector<18x32xf32>
    %287 = arith.addf %278, %286 : vector<18x32xf32>
    %cst_85 = arith.constant dense<0.000000e+00> : vector<18xf32>
    %288 = vector.multi_reduction <add>, %287, %cst_85 [1] : vector<18x32xf32> to vector<18xf32>
    %289 = vector.shape_cast %288 : vector<18xf32> to vector<18x1xf32>
    %cst_86 = arith.constant 3.200000e+01 : f32
    %290 = vector.broadcast %cst_86 : f32 to vector<18x1xf32>
    %291 = arith.divf %289, %290 : vector<18x1xf32>
    %292 = vector.broadcast %291 : vector<18x1xf32> to vector<18x32xf32>
    %293 = arith.subf %287, %292 : vector<18x32xf32>
    %294 = arith.mulf %293, %293 : vector<18x32xf32>
    %cst_87 = arith.constant dense<0.000000e+00> : vector<18xf32>
    %295 = vector.multi_reduction <add>, %294, %cst_87 [1] : vector<18x32xf32> to vector<18xf32>
    %296 = vector.shape_cast %295 : vector<18xf32> to vector<18x1xf32>
    %cst_88 = arith.constant 3.200000e+01 : f32
    %297 = vector.broadcast %cst_88 : f32 to vector<18x1xf32>
    %298 = arith.divf %296, %297 : vector<18x1xf32>
    %cst_89 = arith.constant 9.99999974E-6 : f32
    %299 = vector.broadcast %cst_89 : f32 to vector<18x1xf32>
    %300 = arith.addf %298, %299 : vector<18x1xf32>
    %301 = math.rsqrt %300 : vector<18x1xf32>
    %302 = vector.broadcast %301 : vector<18x1xf32> to vector<18x32xf32>
    %303 = arith.mulf %293, %302 : vector<18x32xf32>
    %304 = vector.broadcast %175 : vector<1x32xf32> to vector<18x32xf32>
    %305 = arith.mulf %303, %304 : vector<18x32xf32>
    %306 = vector.broadcast %176 : vector<1x32xf32> to vector<18x32xf32>
    %307 = arith.addf %305, %306 : vector<18x32xf32>
    %c664 = arith.constant 664 : index
    %c0_90 = arith.constant 0 : index
    %308 = vector.load %arg2[%c664, %c0_90] : memref<680x128xf32, #tpu.memory_space<vmem>>, vector<7x49xf32>
    %c672 = arith.constant 672 : index
    %c0_91 = arith.constant 0 : index
    %309 = vector.load %arg2[%c672, %c0_91] : memref<680x128xf32, #tpu.memory_space<vmem>>, vector<1x49xf32>
    %cst_92 = arith.constant dense<0.000000e+00> : vector<2x49xf32>
    %310 = tpu.matmul %0, %308, %cst_92 {dimension_numbers = #tpu.dot_dimension_numbers<[1], [0], [0], [1], [0, 0, 1, 1], [], []>} : vector<2x7xf32>, vector<7x49xf32>, vector<2x49xf32> -> vector<2x49xf32>
    %311 = vector.broadcast %309 : vector<1x49xf32> to vector<2x49xf32>
    %312 = arith.addf %310, %311 : vector<2x49xf32>
    %c440 = arith.constant 440 : index
    %c0_93 = arith.constant 0 : index
    %313 = vector.load %arg2[%c440, %c0_93] : memref<680x128xf32, #tpu.memory_space<vmem>>, vector<32x49xf32>
    %314 = vector.extract_strided_slice %307 {offsets = [0, 0], sizes = [1, 32], strides = [1, 1]} : vector<18x32xf32> to vector<1x32xf32>
    %315 = vector.extract_strided_slice %307 {offsets = [9, 0], sizes = [1, 32], strides = [1, 1]} : vector<18x32xf32> to vector<1x32xf32>
    %316 = tpu.concatenate %314, %315 in 0 : vector<1x32xf32>, vector<1x32xf32> -> vector<2x32xf32>
    %cst_94 = arith.constant dense<0.000000e+00> : vector<2x49xf32>
    %317 = tpu.matmul %316, %313, %cst_94 {dimension_numbers = #tpu.dot_dimension_numbers<[1], [0], [0], [1], [0, 0, 1, 1], [], []>} : vector<2x32xf32>, vector<32x49xf32>, vector<2x49xf32> -> vector<2x49xf32>
    %318 = arith.addf %312, %317 : vector<2x49xf32>
    %c472 = arith.constant 472 : index
    %c0_95 = arith.constant 0 : index
    %319 = vector.load %arg2[%c472, %c0_95] : memref<680x128xf32, #tpu.memory_space<vmem>>, vector<32x49xf32>
    %320 = vector.extract_strided_slice %307 {offsets = [1, 0], sizes = [1, 32], strides = [1, 1]} : vector<18x32xf32> to vector<1x32xf32>
    %321 = vector.extract_strided_slice %307 {offsets = [10, 0], sizes = [1, 32], strides = [1, 1]} : vector<18x32xf32> to vector<1x32xf32>
    %322 = tpu.concatenate %320, %321 in 0 : vector<1x32xf32>, vector<1x32xf32> -> vector<2x32xf32>
    %cst_96 = arith.constant dense<0.000000e+00> : vector<2x49xf32>
    %323 = tpu.matmul %322, %319, %cst_96 {dimension_numbers = #tpu.dot_dimension_numbers<[1], [0], [0], [1], [0, 0, 1, 1], [], []>} : vector<2x32xf32>, vector<32x49xf32>, vector<2x49xf32> -> vector<2x49xf32>
    %324 = arith.addf %318, %323 : vector<2x49xf32>
    %c504 = arith.constant 504 : index
    %c0_97 = arith.constant 0 : index
    %325 = vector.load %arg2[%c504, %c0_97] : memref<680x128xf32, #tpu.memory_space<vmem>>, vector<32x49xf32>
    %326 = vector.extract_strided_slice %307 {offsets = [2, 0], sizes = [1, 32], strides = [1, 1]} : vector<18x32xf32> to vector<1x32xf32>
    %327 = vector.extract_strided_slice %307 {offsets = [11, 0], sizes = [1, 32], strides = [1, 1]} : vector<18x32xf32> to vector<1x32xf32>
    %328 = tpu.concatenate %326, %327 in 0 : vector<1x32xf32>, vector<1x32xf32> -> vector<2x32xf32>
    %cst_98 = arith.constant dense<0.000000e+00> : vector<2x49xf32>
    %329 = tpu.matmul %328, %325, %cst_98 {dimension_numbers = #tpu.dot_dimension_numbers<[1], [0], [0], [1], [0, 0, 1, 1], [], []>} : vector<2x32xf32>, vector<32x49xf32>, vector<2x49xf32> -> vector<2x49xf32>
    %330 = arith.addf %324, %329 : vector<2x49xf32>
    %c536 = arith.constant 536 : index
    %c0_99 = arith.constant 0 : index
    %331 = vector.load %arg2[%c536, %c0_99] : memref<680x128xf32, #tpu.memory_space<vmem>>, vector<32x49xf32>
    %332 = vector.extract_strided_slice %307 {offsets = [3, 0], sizes = [1, 32], strides = [1, 1]} : vector<18x32xf32> to vector<1x32xf32>
    %333 = vector.extract_strided_slice %307 {offsets = [12, 0], sizes = [1, 32], strides = [1, 1]} : vector<18x32xf32> to vector<1x32xf32>
    %334 = tpu.concatenate %332, %333 in 0 : vector<1x32xf32>, vector<1x32xf32> -> vector<2x32xf32>
    %cst_100 = arith.constant dense<0.000000e+00> : vector<2x49xf32>
    %335 = tpu.matmul %334, %331, %cst_100 {dimension_numbers = #tpu.dot_dimension_numbers<[1], [0], [0], [1], [0, 0, 1, 1], [], []>} : vector<2x32xf32>, vector<32x49xf32>, vector<2x49xf32> -> vector<2x49xf32>
    %336 = arith.addf %330, %335 : vector<2x49xf32>
    %c568 = arith.constant 568 : index
    %c0_101 = arith.constant 0 : index
    %337 = vector.load %arg2[%c568, %c0_101] : memref<680x128xf32, #tpu.memory_space<vmem>>, vector<32x49xf32>
    %338 = vector.extract_strided_slice %307 {offsets = [4, 0], sizes = [1, 32], strides = [1, 1]} : vector<18x32xf32> to vector<1x32xf32>
    %339 = vector.extract_strided_slice %307 {offsets = [13, 0], sizes = [1, 32], strides = [1, 1]} : vector<18x32xf32> to vector<1x32xf32>
    %340 = tpu.concatenate %338, %339 in 0 : vector<1x32xf32>, vector<1x32xf32> -> vector<2x32xf32>
    %cst_102 = arith.constant dense<0.000000e+00> : vector<2x49xf32>
    %341 = tpu.matmul %340, %337, %cst_102 {dimension_numbers = #tpu.dot_dimension_numbers<[1], [0], [0], [1], [0, 0, 1, 1], [], []>} : vector<2x32xf32>, vector<32x49xf32>, vector<2x49xf32> -> vector<2x49xf32>
    %342 = arith.addf %336, %341 : vector<2x49xf32>
    %c600 = arith.constant 600 : index
    %c0_103 = arith.constant 0 : index
    %343 = vector.load %arg2[%c600, %c0_103] : memref<680x128xf32, #tpu.memory_space<vmem>>, vector<32x49xf32>
    %344 = vector.extract_strided_slice %307 {offsets = [5, 0], sizes = [1, 32], strides = [1, 1]} : vector<18x32xf32> to vector<1x32xf32>
    %345 = vector.extract_strided_slice %307 {offsets = [14, 0], sizes = [1, 32], strides = [1, 1]} : vector<18x32xf32> to vector<1x32xf32>
    %346 = tpu.concatenate %344, %345 in 0 : vector<1x32xf32>, vector<1x32xf32> -> vector<2x32xf32>
    %cst_104 = arith.constant dense<0.000000e+00> : vector<2x49xf32>
    %347 = tpu.matmul %346, %343, %cst_104 {dimension_numbers = #tpu.dot_dimension_numbers<[1], [0], [0], [1], [0, 0, 1, 1], [], []>} : vector<2x32xf32>, vector<32x49xf32>, vector<2x49xf32> -> vector<2x49xf32>
    %348 = arith.addf %342, %347 : vector<2x49xf32>
    %c632 = arith.constant 632 : index
    %c0_105 = arith.constant 0 : index
    %349 = vector.load %arg2[%c632, %c0_105] : memref<680x128xf32, #tpu.memory_space<vmem>>, vector<32x49xf32>
    %350 = vector.extract_strided_slice %307 {offsets = [6, 0], sizes = [1, 32], strides = [1, 1]} : vector<18x32xf32> to vector<1x32xf32>
    %351 = vector.extract_strided_slice %307 {offsets = [15, 0], sizes = [1, 32], strides = [1, 1]} : vector<18x32xf32> to vector<1x32xf32>
    %352 = tpu.concatenate %350, %351 in 0 : vector<1x32xf32>, vector<1x32xf32> -> vector<2x32xf32>
    %cst_106 = arith.constant dense<0.000000e+00> : vector<2x49xf32>
    %353 = tpu.matmul %352, %349, %cst_106 {dimension_numbers = #tpu.dot_dimension_numbers<[1], [0], [0], [1], [0, 0, 1, 1], [], []>} : vector<2x32xf32>, vector<32x49xf32>, vector<2x49xf32> -> vector<2x49xf32>
    %354 = arith.addf %348, %353 : vector<2x49xf32>
    %355 = tpu.concatenate %0, %354 in 1 : vector<2x7xf32>, vector<2x49xf32> -> vector<2x56xf32>
    %c0_107 = arith.constant 0 : index
    %c0_108 = arith.constant 0 : index
    %356 = vector.load %arg3[%c0_107, %c0_108] : memref<2x56xf32, #tpu.memory_space<vmem>>, vector<2x56xf32>
    tpu.vector_store %arg3[%c0_107, %c0_108], %355 {strides = array<i32>} : memref<2x56xf32, #tpu.memory_space<vmem>>, vector<2x56xf32>,
    return
  }
}

</mosaic_0001>

<bundles_post_ra>
// kernel: forward.1
= control target key start
LH: loop header
LB: loop body
LE: loop exit
PB: predicated region body
PF: predicated region fallthrough
CT: control target
= control target key end

     0   :  { %8 = vsyncpa [#allocation3], 0  ;;  %s5546_s12 = smov [#allocation2]   ;;  %s6423_s0 = inlined_call_operand.vmem [shape: f32[2,8,1], index: 0, kind: input, shape index: {}]   ;;  %s6424_s1 = inlined_call_operand.vmem [shape: f32[2,7], index: 1, kind: input, shape index: {}]   ;;  %s6425_s2 = inlined_call_operand.hbm [shape: f32[680,128], index: 2, kind: input, shape index: {}]   ;;  %s6426_s3 = inlined_call_operand.vmem [shape: f32[2,56], index: 3, kind: output, shape index: {}]  }
   0x1   :  { %s18_s13 = sshll.u32 %s5546_s12, 4  ;;  %s5522_s16 = scalar_lea.hbm %s6425_s2, 10880  ;;  %s19_s13 = int_to_ptr.vmem [resolvable:$true] %s18_s13 }
   0x2   :  { %p5523_p0 = scmp.ne.s32.totalorder %s6425_s2, %s5522_s16  ;;  %p5526_p1 = scmp.lt.u32.totalorder %s5522_s16, %s6425_s2 }
   0x4   :  { %p5528_p2 = pnand %p5526_p1, %p5523_p0 }
   0x6   :  { %5531 = shalt.err (!%p5528_p2)
}
   0x7   :  { %s5532_s21 = scalar_lea.vmem %s19_s13, 10880  ;;  %p5537_p4 = scmp.lt.s32.totalorder %s19_s13, %s19_s13 }
   0x8   :  { %p5533_p3 = scmp.ne.s32.totalorder %s19_s13, %s5532_s21  ;;  %p5538_p5 = scmp.lt.s32.totalorder %s5532_s21, %s5532_s21 }
   0xa   :  { %p5539_p6 = por %p5538_p5, %p5537_p4 }
   0xc   :  { %p5540_p7 = pnand %p5539_p6, %p5533_p3 }
   0xe   :  { %5543 = shalt.err (!%p5540_p7)
}
   0xf   :  { %s5547_s22 = smov 128   ;;  %s5548_s23 = smov 8  }
  0x10   :  { %24 = dma.hbm_to_vmem [thread:$0]  %s6425_s2, 10880, %s19_s13, [#allocation3], %s5547_s22, %s5547_s22, %s5548_s23  }
  0x11   :  { %5544 = dma.done.wait [#allocation3], 10880  }
  0x12   :  { %5545 = vsyncadd [#allocation3], 4294956416  ;;  %v5549_v0 = vmov 0.0   ;;  %vm5550_vm0 = vmmov 0   ;;  %v5551_v1 = vmov 0   ;;  %v29_v2 = vld [vmem:[#allocation2] sm:$0xff]  ;;  %v127_v14 = vlaneseq }
  0x13   :  { %4606 = vmatprep.subr.mxu0 %v5549_v0  ;;  %4608 = vmatprep.mubr.msk.f32.mxu0 %vm5550_vm0, %v5549_v0  ;;  %vm42_vm1 = vcmask 1046528   ;;  %v115_v3 = vld [vmem:[%s6423_s0] sm:$0xff]  ;;  %v37_v4 = vrot.slane %v29_v2, 1  ;;  %vm38_vm2 = vcmask 56320   ;;  %v116_v6 = vld [vmem:[%s6423_s0 + $0x8] sm:$0xff]  ;;  %v147_v7 = vld [vmem:[#allocation2 + $0x38] sm:$0xff] }
  0x14   :  { %5319 = vset.pattern.permute.xlu0 %v5551_v1  ;;  %4649 = vmatprep.mubr.msk.f32.mxu1 %vm5550_vm0, %v5549_v0  ;;  %v28_v5 = vld [vmem:[%s6424_s1] sm:$0x3]  ;;  %v5552_v9 = vmov 0.0|0.0   ;;  %v149_v11 = vld [vmem:[#allocation2 + $0x48] sm:$0xff]  ;;  %v150_v12 = vld [vmem:[#allocation2 + $0x50] sm:$0xff]  ;;  %v5619_v15 = vshrl.u32 %v127_v14, 7 }
  0x15   :  { %119 = vperm.xlu0 %5319, %v115_v3   ;;  %4607 = vmatpush3.msk.msra.mxu0 %vm42_vm1, %v37_v4  ;;  %v148_v8 = vld [vmem:[#allocation2 + $0x40] sm:$0xff]  ;;  %v5143_v13 = vpack.c.bf16 %v150_v12, %v149_v11  ;;  %vm139_vm3 = vcmask 1040384   ;;  %v30_v24 = vld [vmem:[#allocation2 + $0x8] sm:$0xff]  ;;  %vm142_vm4 = vcmask 1041408   ;;  %vm171_vm5 = vcmask 261120   ;;  %v31_v31 = vld [vmem:[#allocation2 + $0x10] sm:$0xff] }
  0x16   :  { %4609 = vmatmul.mubr.msk.f32.vlgmr.msra.gmra.mrb[0].mxu0 %vm38_vm2, %v28_v5  ;;  %5139 = vmatprep.subr.bf16.mxu0 %v5552_v9  ;;  %v5140_v10 = vpack.c.bf16 %v148_v8, %v147_v7  ;;  %v5622_v16 = vsub.s32 0, %v5619_v15  ;;  %v32_v33 = vld [vmem:[#allocation2 + $0x18] sm:$0x3]  ;;  %v152_v38 = vld [vmem:[#allocation2 + $0x60] sm:$0xff]  ;;  %v153_v44 = vld [vmem:[#allocation2 + $0x68] sm:$0x3] }
  0x17   :  { %4619 = vmatprep.mubr.msk.f32.mxu0 %vm5550_vm0, %v5549_v0  ;;  %5149 = vmatprep.subr.bf16.mxu1 %v5552_v9  ;;  %v151_v37 = vld [vmem:[#allocation2 + $0x58] sm:$0xff]  ;;  %s5553_s0 = smov 88   ;;  %s5554_s4 = smov 96   ;;  %vm270_vm6 = vcmask 64512   ;;  %v5707_v62 = vld [vmem:[#allocation2 + $0x20] sm:$0xff]  ;;  %vm363_vm8 = vcmask 146432  }
  0x18   :  { %5141 = vmatpush3.bf16.msra.mxu0 %v5140_v10  ;;  %v130_v18 = vrot.slane %v29_v2, %v5622_v16  ;;  %s5555_s5 = smov 120   ;;  %vm5672_vm7 = vmpackc.low %vm270_vm6, %vm270_vm6  ;;  %v5710_v3 = vld [vmem:[#allocation2 + $0x28] sm:$0xff]  ;;  %v5714_v8 = vld [vmem:[#allocation2 + $0x30] sm:$0x3]  ;;  %vm370_vm9 = vcmask 140288   ;;  %s5556_s6 = smov 64  }
  0x19   :  { %124 = vperm.xlu0 %5319, %v116_v6   ;;  %5142 = vmatprep.subr.bf16.mxu0 %v5552_v9  ;;  %s5557_s7 = smov 56   ;;  %s5558_s8 = smov 80   ;;  %vm1583_vm10 = vcmask 254976   ;;  %vm1732_vm11 = vcmask 523264   ;;  %vm4248_vm12 = vcmask 451584  }
  0x1a   :  { %s5559_s9 = smov 112   ;;  %s5560_s10 = smov 48  }
  0x1b   :  { %s5561_s11 = smov 72   ;;  %s5562_s12 = smov 104  }
  0x1c   :  { %5144 = vmatpush3.bf16.msra.mxu0 %v5143_v13  ;;  %s5563_s13 = smov 40  }
  0x1d   :  { %5145 = vmatprep.subr.bf16.mxu0 %v5552_v9 }
  0x94   :  { %v120_v17 = vpop.permute.xlu0 %119 }
  0x95   :  { %v131_v20 = vmul.f32 %v130_v18, %v120_v17 }
  0x97   :  { %v134_v22 = vrot.slane %v131_v20, 7 }
  0x98   :  { %v125_v19 = vpop.permute.xlu0 %124 }
  0x99   :  { %v132_v21 = vmul.f32 %v130_v18, %v125_v19 }
  0x9b   :  { %v137_v23 = vrot.slane %v132_v21, 6 }
  0x9d   :  { %v5640_v34 = vadd.f32 %v137_v23, %v32_v33 }
  0xe9   :  { %v111_v25 = vpop.f32.mrb[0].mxu0 }
  0xea   :  { %v140_v26 = vsel %vm139_vm3, %v111_v25, %v134_v22  ;;  %v141_v27 = vsel %vm139_vm3, %v134_v22, %v111_v25  ;;  %v4610_v28 = vpop.f32.mrb[1].mxu0 }
  0xeb   :  { %v143_v29 = vsel %vm142_vm4, %v141_v27, %v137_v23  ;;  %v5628_v30 = vadd.f32 %v140_v26, %v30_v24 }
  0xec   :  { %v5634_v32 = vadd.f32 %v143_v29, %v31_v31 }
  0xed   :  { %4620 = vmatmul.mubr.msk.f32.vlgmr.msra.gmra.mrb[2].mxu0 %vm171_vm5, %v5628_v30 }
  0xee   :  { %4622 = vmatprep.mubr.msk.f32.mxu0 %vm5550_vm0, %v5549_v0 }
  0xf1   :  { %4623 = vmatmul.mubr.msk.f32.gmra.mrb[4].mxu0 %vm171_vm5, %v5634_v32 }
  0xf2   :  { %4625 = vmatprep.mubr.msk.f32.mxu0 %vm5550_vm0, %v5549_v0 }
  0xf5   :  { %4626 = vmatmul.mubr.msk.f32.gmra.mrb[6].mxu0 %vm171_vm5, %v5640_v34 }
  0xf6   :  { %4634 = vmatprep.mubr.msk.f32.mxu0 %vm5550_vm0, %v5549_v0 }
 0x1c0   :  { %v247_v35 = vpop.f32.mrb[2].mxu0 }
 0x1c1   :  { %v4621_v36 = vpop.f32.mrb[3].mxu0  ;;  %v5646_v40 = vadd.f32 %v247_v35, %v151_v37 }
 0x1c4   :  { %v252_v39 = vpop.f32.mrb[4].mxu0 }
 0x1c5   :  { %v5648_v41 = vadd.f32 %v252_v39, %v152_v38  ;;  %v4624_v42 = vpop.f32.mrb[5].mxu0 }
 0x1c7   :  { %v5652_v43 = vpack.i.bf16 %v5648_v41, %v5646_v40 }
 0x1c8   :  { %v257_v45 = vpop.f32.mrb[6].mxu0 }
 0x1c9   :  { %5326 = vrot.lane.b32.xlu0 %v5652_v43, %s5553_s0  ;;  %5321 = vrot.lane.b32.xlu1 %v5652_v43, %s5554_s4  ;;  %v4627_v46 = vpop.f32.mrb[7].mxu0  ;;  %v5658_v47 = vadd.f32 %v257_v45, %v153_v44 }
 0x1cd   :  { %497 = vrot.lane.b32.xlu0 %v5646_v40, %s5555_s5  ;;  %268 = vrot.lane.b32.xlu1 %v5658_v47, %s5554_s4 }
 0x1d1   :  { %501 = vrot.lane.b32.xlu0 %v5658_v47, %s5555_s5  ;;  %507 = vrot.lane.b32.xlu1 %v5658_v47, %s5553_s0 }
 0x1d5   :  { %499 = vrot.lane.b32.xlu1 %v5648_v41, %s5555_s5 }
 0x23b   :  { %v5322_v48 = vpop.permute.xlu1 %5321  ;;  %v5327_v53 = vpop.permute.xlu0 %5326 }
 0x23c   :  { %v5324_v49 = vunpack.i.h.bf16 %v5322_v48  ;;  %v5323_v50 = vunpack.i.l.bf16 %v5322_v48  ;;  %v5329_v54 = vunpack.i.h.bf16 %v5327_v53  ;;  %v5328_v55 = vunpack.i.l.bf16 %v5327_v53 }
 0x23e   :  { %v5146_v52 = vpack.c.bf16 %v5324_v49, %v5323_v50  ;;  %v5153_v57 = vpack.c.bf16 %v5329_v54, %v5328_v55 }
 0x23f   :  { %v269_v56 = vpop.permute.xlu1 %268  ;;  %v498_v59 = vpop.permute.xlu0 %497 }
 0x240   :  { %5148 = vmatpush3.bf16.xpose.msk.msra.mxu0 %vm5672_vm7, %v5146_v52 }
 0x241   :  { %4632 = vmatprep.subr.mxu0 %v5549_v0 }
 0x243   :  { %v508_v58 = vpop.permute.xlu1 %507  ;;  %v502_v61 = vpop.permute.xlu0 %501 }
 0x247   :  { %v500_v60 = vpop.permute.xlu1 %499 }
 0x248   :  { %4633 = vmatpush3.xpose.msk.msra.mxu0 %vm270_vm6, %v269_v56 }
 0x249   :  { %5152 = vmatprep.subr.bf16.mxu0 %v5552_v9 }
 0x24b   :  { %4635 = vmatmul.mubr.msk.f32.vlgmr.msra.gmra.mrb[8].mxu0 %vm270_vm6, %v5646_v40 }
 0x24c   :  { %5155 = vmatpush3.bf16.xpose.msk.msra.mxu0 %vm5672_vm7, %v5153_v57  ;;  %4637 = vmatprep.mubr.msk.f32.mxu0 %vm5550_vm0, %v5549_v0 }
 0x24d   :  { %4662 = vmatprep.subr.mxu0 %v5549_v0 }
 0x24f   :  { %4638 = vmatmul.mubr.msk.f32.gmra.mrb[10].mxu0 %vm270_vm6, %v5648_v41 }
 0x250   :  { %4640 = vmatprep.mubr.msk.f32.mxu0 %vm5550_vm0, %v5549_v0 }
 0x253   :  { %4641 = vmatmul.mubr.msk.f32.gmra.mrb[12].mxu0 %vm270_vm6, %v5658_v47 }
 0x254   :  { %4663 = vmatpush3.xpose.msk.msra.mxu0 %vm270_vm6, %v508_v58  ;;  %4664 = vmatprep.mubr.msk.f32.mxu0 %vm5550_vm0, %v5549_v0 }
 0x255   :  { %4688 = vmatprep.subr.mxu0 %v5549_v0 }
 0x257   :  { %4665 = vmatmul.mubr.msk.f32.vlgmr.msra.gmra.mrb[14].mxu0 %vm270_vm6, %v498_v59 }
 0x258   :  { %4667 = vmatprep.mubr.msk.f32.mxu0 %vm5550_vm0, %v5549_v0 }
 0x25b   :  { %4668 = vmatmul.mubr.msk.f32.gmra.mrb[16].mxu0 %vm270_vm6, %v500_v60 }
 0x25c   :  { %4670 = vmatprep.mubr.msk.f32.mxu0 %vm5550_vm0, %v5549_v0 }
 0x25f   :  { %4671 = vmatmul.mubr.msk.f32.gmra.mrb[18].mxu0 %vm270_vm6, %v502_v61 }
 0x260   :  { %4690 = vmatprep.mubr.msk.f32.mxu0 %vm5550_vm0, %v5549_v0 }
 0x31e   :  { %v349_v63 = vpop.f32.mrb[8].mxu0 }
 0x31f   :  { %v350_v1 = vadd.f32 %v349_v63, %v5707_v62  ;;  %v4636_v2 = vpop.f32.mrb[9].mxu0 }
 0x321   :  { %v364_v4 = vsel %vm363_vm8, %v350_v1, -inf }
 0x322   :  { %365 = vmax.xlane.f32.xlu1 %v364_v4  ;;  %v354_v5 = vpop.f32.mrb[10].mxu0 }
 0x323   :  { %v355_v6 = vadd.f32 %v354_v5, %v5710_v3  ;;  %v4639_v7 = vpop.f32.mrb[11].mxu0 }
 0x325   :  { %v367_v10 = vsel %vm363_vm8, %v355_v6, -inf }
 0x326   :  { %368 = vmax.xlane.f32.xlu0 %v367_v10  ;;  %v359_v11 = vpop.f32.mrb[12].mxu0 }
 0x327   :  { %v360_v12 = vadd.f32 %v359_v11, %v5714_v8  ;;  %v4642_v13 = vpop.f32.mrb[13].mxu0 }
 0x329   :  { %v371_v14 = vsel %vm370_vm9, %v360_v12, -inf }
 0x32a   :  { %372 = vmax.xlane.f32.xlu0 %v371_v14  ;;  %v587_v17 = vpop.f32.mrb[14].mxu0 }
 0x32b   :  { %v588_v18 = vadd.f32 %v587_v17, %v5707_v62  ;;  %v4666_v19 = vpop.f32.mrb[15].mxu0 }
 0x32d   :  { %v601_v20 = vsel %vm363_vm8, %v588_v18, -inf }
 0x32e   :  { %602 = vmax.xlane.f32.xlu1 %v601_v20  ;;  %v592_v21 = vpop.f32.mrb[16].mxu0 }
 0x32f   :  { %v593_v22 = vadd.f32 %v592_v21, %v5710_v3  ;;  %v4669_v23 = vpop.f32.mrb[17].mxu0 }
 0x331   :  { %v604_v24 = vsel %vm363_vm8, %v593_v22, -inf }
 0x332   :  { %605 = vmax.xlane.f32.xlu0 %v604_v24  ;;  %v597_v25 = vpop.f32.mrb[18].mxu0 }
 0x333   :  { %v598_v26 = vadd.f32 %v597_v25, %v5714_v8  ;;  %v4672_v27 = vpop.f32.mrb[19].mxu0 }
 0x335   :  { %v607_v28 = vsel %vm370_vm9, %v598_v26, -inf }
 0x336   :  { %608 = vmax.xlane.f32.xlu1 %v607_v28 }
 0x347   :  { %5331 = vrot.lane.b32.xlu1 %v5652_v43, %s5556_s6 }
 0x3af   :  { %v366_v29 = vpop.xlane.xlu1 %365 }
 0x3b0   :  { %v374_v31 = vsub.f32 %v350_v1, %v366_v29 }
 0x3b2   :  { %v377_v33 = vmul.f32 1.442695, %v374_v31 }
 0x3b3   :  { %v369_v35 = vpop.xlane.xlu0 %368 }
 0x3b4   :  { %5400 = vpow2.f32 %v377_v33  ;;  %v375_v36 = vsub.f32 %v355_v6, %v369_v35 }
 0x3b6   :  { %v379_v37 = vmul.f32 1.442695, %v375_v36 }
 0x3b7   :  { %v373_v38 = vpop.xlane.xlu0 %372 }
 0x3b8   :  { %5402 = vpow2.f32 %v379_v37  ;;  %v376_v39 = vsub.f32 %v360_v12, %v373_v38 }
 0x3ba   :  { %v381_v42 = vmul.f32 1.442695, %v376_v39 }
 0x3bb   :  { %v603_v44 = vpop.xlane.xlu1 %602 }
 0x3bc   :  { %5404 = vpow2.f32 %v381_v42  ;;  %v610_v45 = vsub.f32 %v588_v18, %v603_v44  ;;  %v154_v44 = vld [vmem:[#allocation2 + $0x70] sm:$0xff] }
 0x3be   :  { %v5401_v46 = vpop.eup %5400  ;;  %v613_v48 = vmul.f32 1.442695, %v610_v45  ;;  %v155_v45 = vld [vmem:[#allocation2 + $0x78] sm:$0xff] }
 0x3bf   :  { %v606_v49 = vpop.xlane.xlu0 %605  ;;  %v383_v50 = vsel %vm363_vm8, %v5401_v46, 0.0  ;;  %4689 = vmatpush3.msra.mxu0 %v155_v45 }
 0x3c0   :  { %5406 = vpow2.f32 %v613_v48  ;;  %v611_v52 = vsub.f32 %v593_v22, %v606_v49  ;;  %384 = vadd.xlane.f32.xlu0 %v383_v50  ;;  %5159 = vmatprep.subr.bf16.mxu0 %v5552_v9 }
 0x3c2   :  { %v5403_v53 = vpop.eup %5402  ;;  %v615_v54 = vmul.f32 1.442695, %v611_v52 }
 0x3c3   :  { %v609_v55 = vpop.xlane.xlu1 %608  ;;  %v386_v56 = vsel %vm363_vm8, %v5403_v53, 0.0 }
 0x3c4   :  { %5408 = vpow2.f32 %v615_v54  ;;  %v612_v57 = vsub.f32 %v598_v26, %v609_v55  ;;  %387 = vadd.xlane.f32.xlu1 %v386_v56 }
 0x3c6   :  { %v5729_v58 = vpop.eup %5404  ;;  %v617_v59 = vmul.f32 1.442695, %v612_v57 }
 0x3c7   :  { %v5332_v60 = vpop.permute.xlu1 %5331  ;;  %v389_v61 = vsel %vm370_vm9, %v5729_v58, 0.0 }
 0x3c8   :  { %5410 = vpow2.f32 %v617_v59  ;;  %390 = vadd.xlane.f32.xlu0 %v389_v61  ;;  %v5334_v63 = vunpack.i.h.bf16 %v5332_v60  ;;  %v5333_v1 = vunpack.i.l.bf16 %v5332_v60 }
 0x3ca   :  { %v5407_v2 = vpop.eup %5406  ;;  %v5150_v4 = vpack.c.bf16 %v5334_v63, %v5333_v1 }
 0x3cb   :  { %v619_v5 = vsel %vm363_vm8, %v5407_v2, 0.0 }
 0x3cc   :  { %620 = vadd.xlane.f32.xlu1 %v619_v5  ;;  %5151 = vmatpush3.bf16.msra.mxu1 %v5150_v4 }
 0x3cd   :  { %4647 = vmatprep.subr.mxu1 %v5549_v0 }
 0x3ce   :  { %v5409_v6 = vpop.eup %5408 }
 0x3cf   :  { %v622_v7 = vsel %vm363_vm8, %v5409_v6, 0.0 }
 0x3d0   :  { %623 = vadd.xlane.f32.xlu0 %v622_v7 }
 0x3d2   :  { %v5411_v10 = vpop.eup %5410 }
 0x3d3   :  { %v625_v11 = vsel %vm370_vm9, %v5411_v10, 0.0 }
 0x3d4   :  { %626 = vadd.xlane.f32.xlu0 %v625_v11 }
 0x3dd   :  { %5336 = vrot.lane.b32.xlu1 %v5652_v43, %s5557_s7 }
 0x3e1   :  { %638 = vrot.lane.b32.xlu1 %v5658_v47, %s5557_s7 }
 0x3e5   :  { %5341 = vrot.lane.b32.xlu1 %v5652_v43, %s5558_s8 }
 0x3e9   :  { %911 = vrot.lane.b32.xlu1 %v5646_v40, %s5559_s9 }
 0x3ea   :  { %402 = vrot.lane.b32.xlu0 %v5658_v47, %s5556_s6 }
 0x3ed   :  { %915 = vrot.lane.b32.xlu1 %v5658_v47, %s5559_s9 }
 0x3ee   :  { %921 = vrot.lane.b32.xlu0 %v5658_v47, %s5558_s8 }
 0x3f2   :  { %913 = vrot.lane.b32.xlu0 %v5648_v41, %s5559_s9 }
 0x44d   :  { %v385_v12 = vpop.xlane.xlu0 %384 }
 0x44e   :  { %5412 = vrcp.f32 %v385_v12 }
 0x451   :  { %v388_v13 = vpop.xlane.xlu1 %387 }
 0x452   :  { %5414 = vrcp.f32 %v388_v13 }
 0x455   :  { %v391_v14 = vpop.xlane.xlu0 %390 }
 0x456   :  { %5416 = vrcp.f32 %v391_v14 }
 0x458   :  { %v5413_v21 = vpop.eup %5412 }
 0x459   :  { %v621_v17 = vpop.xlane.xlu1 %620  ;;  %v395_v25 = vmul.f32 %v5413_v21, %v5401_v46 }
 0x45a   :  { %5418 = vrcp.f32 %v621_v17 }
 0x45c   :  { %v5415_v26 = vpop.eup %5414 }
 0x45d   :  { %v624_v18 = vpop.xlane.xlu0 %623  ;;  %v5337_v19 = vpop.permute.xlu1 %5336  ;;  %v396_v28 = vmul.f32 %v5415_v26, %v5403_v53 }
 0x45e   :  { %v5339_v22 = vunpack.i.h.bf16 %v5337_v19  ;;  %v5338_v23 = vunpack.i.l.bf16 %v5337_v19  ;;  %5420 = vrcp.f32 %v624_v18 }
 0x460   :  { %v5157_v27 = vpack.c.bf16 %v5339_v22, %v5338_v23  ;;  %v5417_v29 = vpop.eup %5416 }
 0x461   :  { %v627_v20 = vpop.xlane.xlu0 %626  ;;  %v639_v31 = vpop.permute.xlu1 %638  ;;  %v397_v33 = vmul.f32 %v5417_v29, %v5729_v58 }
 0x462   :  { %5422 = vrcp.f32 %v627_v20 }
 0x464   :  { %v5419_v35 = vpop.eup %5418 }
 0x465   :  { %v403_v24 = vpop.permute.xlu0 %402  ;;  %v631_v36 = vmul.f32 %v5419_v35, %v5407_v2  ;;  %v5342_v50 = vpop.permute.xlu1 %5341 }
 0x466   :  { %4648 = vmatpush3.msk.msra.mxu1 %vm142_vm4, %v403_v24  ;;  %v5344_v53 = vunpack.i.h.bf16 %v5342_v50  ;;  %v5343_v54 = vunpack.i.l.bf16 %v5342_v50 }
 0x467   :  { %4650 = vmatmul.mubr.msk.f32.vlgmr.msra.gmra.mrb[0].mxu1 %vm363_vm8, %v395_v25  ;;  %5156 = vmatprep.subr.bf16.mxu1 %v5552_v9 }
 0x468   :  { %5158 = vmatpush3.bf16.msra.mxu1 %v5157_v27  ;;  %4652 = vmatprep.mubr.msk.f32.mxu1 %vm5550_vm0, %v5549_v0  ;;  %v5421_v37 = vpop.eup %5420  ;;  %v5160_v57 = vpack.c.bf16 %v5344_v53, %v5343_v54 }
 0x469   :  { %4677 = vmatprep.subr.mxu1 %v5549_v0  ;;  %v632_v38 = vmul.f32 %v5421_v37, %v5409_v6  ;;  %v922_v1 = vpop.permute.xlu0 %921  ;;  %v912_v4 = vpop.permute.xlu1 %911 }
 0x46b   :  { %4653 = vmatmul.mubr.msk.f32.gmra.mrb[2].mxu1 %vm363_vm8, %v396_v28 }
 0x46c   :  { %4678 = vmatpush3.msk.msra.mxu1 %vm142_vm4, %v639_v31  ;;  %4655 = vmatprep.mubr.msk.f32.mxu1 %vm5550_vm0, %v5549_v0  ;;  %v5423_v39 = vpop.eup %5422 }
 0x46d   :  { %4699 = vmatprep.subr.mxu1 %v5549_v0  ;;  %v633_v42 = vmul.f32 %v5423_v39, %v5411_v10  ;;  %v914_v5 = vpop.permute.xlu0 %913  ;;  %v916_v6 = vpop.permute.xlu1 %915 }
 0x46f   :  { %4656 = vmatmul.mubr.msk.f32.gmra.mrb[4].mxu1 %vm363_vm8, %v397_v33 }
 0x470   :  { %4679 = vmatprep.mubr.msk.f32.mxu1 %vm5550_vm0, %v5549_v0 }
 0x473   :  { %4680 = vmatmul.mubr.msk.f32.vlgmr.msra.gmra.mrb[6].mxu1 %vm363_vm8, %v631_v36 }
 0x474   :  { %4682 = vmatprep.mubr.msk.f32.mxu1 %vm5550_vm0, %v5549_v0  ;;  %4700 = vmatpush3.msra.mxu1 %v154_v44 }
 0x475   :  { %5163 = vmatprep.subr.bf16.mxu1 %v5552_v9 }
 0x477   :  { %4683 = vmatmul.mubr.msk.f32.gmra.mrb[8].mxu1 %vm363_vm8, %v632_v38 }
 0x478   :  { %4685 = vmatprep.mubr.msk.f32.mxu1 %vm5550_vm0, %v5549_v0 }
 0x47b   :  { %4686 = vmatmul.mubr.msk.f32.gmra.mrb[10].mxu1 %vm363_vm8, %v633_v42 }
 0x47c   :  { %4701 = vmatprep.mubr.msk.f32.mxu1 %vm5550_vm0, %v5549_v0 }
 0x53a   :  { %v483_v46 = vpop.f32.mrb[0].mxu1 }
 0x53b   :  { %v4651_v48 = vpop.f32.mrb[1].mxu1  ;;  %4702 = vmatmul.mubr.msk.f32.vlgmr.msra.gmra.mrb[12].mxu1 %vm270_vm6, %v483_v46 }
 0x53c   :  { %4704 = vmatprep.mubr.msk.f32.mxu1 %vm5550_vm0, %v5549_v0 }
 0x53e   :  { %v488_v49 = vpop.f32.mrb[2].mxu1 }
 0x53f   :  { %v4654_v52 = vpop.f32.mrb[3].mxu1  ;;  %4705 = vmatmul.mubr.msk.f32.gmra.mrb[14].mxu1 %vm270_vm6, %v488_v49 }
 0x540   :  { %4707 = vmatprep.mubr.msk.f32.mxu1 %vm5550_vm0, %v5549_v0 }
 0x542   :  { %v493_v55 = vpop.f32.mrb[4].mxu1 }
 0x543   :  { %v4657_v56 = vpop.f32.mrb[5].mxu1  ;;  %4708 = vmatmul.mubr.msk.f32.gmra.mrb[16].mxu1 %vm270_vm6, %v493_v55 }
 0x544   :  { %4731 = vmatprep.mubr.msk.f32.mxu1 %vm5550_vm0, %v5549_v0 }
 0x546   :  { %v719_v58 = vpop.f32.mrb[6].mxu1 }
 0x547   :  { %v4681_v59 = vpop.f32.mrb[7].mxu1  ;;  %4691 = vmatmul.mubr.msk.f32.vlgmr.msra.gmra.mrb[20].mxu0 %vm270_vm6, %v719_v58 }
 0x548   :  { %5162 = vmatpush3.bf16.xpose.msk.msra.mxu0 %vm5672_vm7, %v5160_v57  ;;  %4693 = vmatprep.mubr.msk.f32.mxu0 %vm5550_vm0, %v5549_v0 }
 0x549   :  { %4714 = vmatprep.subr.mxu0 %v5549_v0 }
 0x54a   :  { %v724_v60 = vpop.f32.mrb[8].mxu1 }
 0x54b   :  { %v4684_v61 = vpop.f32.mrb[9].mxu1  ;;  %4694 = vmatmul.mubr.msk.f32.gmra.mrb[22].mxu0 %vm270_vm6, %v724_v60 }
 0x54c   :  { %4696 = vmatprep.mubr.msk.f32.mxu0 %vm5550_vm0, %v5549_v0 }
 0x54e   :  { %v729_v63 = vpop.f32.mrb[10].mxu1 }
 0x54f   :  { %v4687_v2 = vpop.f32.mrb[11].mxu1  ;;  %4697 = vmatmul.mubr.msk.f32.gmra.mrb[24].mxu0 %vm270_vm6, %v729_v63 }
 0x550   :  { %4715 = vmatpush3.xpose.msk.msra.mxu0 %vm270_vm6, %v922_v1  ;;  %4716 = vmatprep.mubr.msk.f32.mxu0 %vm5550_vm0, %v5549_v0 }
 0x551   :  { %4740 = vmatprep.subr.mxu0 %v5549_v0 }
 0x553   :  { %4717 = vmatmul.mubr.msk.f32.vlgmr.msra.gmra.mrb[26].mxu0 %vm270_vm6, %v912_v4 }
 0x554   :  { %4719 = vmatprep.mubr.msk.f32.mxu0 %vm5550_vm0, %v5549_v0 }
 0x557   :  { %4720 = vmatmul.mubr.msk.f32.gmra.mrb[28].mxu0 %vm270_vm6, %v914_v5 }
 0x558   :  { %4722 = vmatprep.mubr.msk.f32.mxu0 %vm5550_vm0, %v5549_v0 }
 0x55b   :  { %4723 = vmatmul.mubr.msk.f32.gmra.mrb[30].mxu0 %vm270_vm6, %v916_v6 }
 0x55c   :  { %4742 = vmatprep.mubr.msk.f32.mxu0 %vm5550_vm0, %v5549_v0 }
 0x60e   :  { %v897_v7 = vpop.f32.mrb[12].mxu1 }
 0x60f   :  { %v4703_v10 = vpop.f32.mrb[13].mxu1 }
 0x612   :  { %v902_v11 = vpop.f32.mrb[14].mxu1 }
 0x613   :  { %v4706_v12 = vpop.f32.mrb[15].mxu1 }
 0x616   :  { %v907_v13 = vpop.f32.mrb[16].mxu1 }
 0x617   :  { %v4709_v14 = vpop.f32.mrb[17].mxu1 }
 0x61a   :  { %v808_v17 = vpop.f32.mrb[20].mxu0 }
 0x61b   :  { %v5811_v18 = vadd.f32 %v897_v7, %v808_v17  ;;  %v4692_v19 = vpop.f32.mrb[21].mxu0 }
 0x61e   :  { %v813_v20 = vpop.f32.mrb[22].mxu0 }
 0x61f   :  { %v5813_v21 = vadd.f32 %v902_v11, %v813_v20  ;;  %v4695_v22 = vpop.f32.mrb[23].mxu0 }
 0x622   :  { %v818_v23 = vpop.f32.mrb[24].mxu0 }
 0x623   :  { %v5815_v24 = vadd.f32 %v907_v13, %v818_v23  ;;  %v4698_v25 = vpop.f32.mrb[25].mxu0 }
 0x626   :  { %v1001_v26 = vpop.f32.mrb[26].mxu0 }
 0x627   :  { %v1002_v27 = vadd.f32 %v1001_v26, %v5707_v62  ;;  %v4718_v28 = vpop.f32.mrb[27].mxu0 }
 0x629   :  { %v1015_v29 = vsel %vm363_vm8, %v1002_v27, -inf }
 0x62a   :  { %1016 = vmax.xlane.f32.xlu0 %v1015_v29  ;;  %v1006_v31 = vpop.f32.mrb[28].mxu0 }
 0x62b   :  { %v1007_v33 = vadd.f32 %v1006_v31, %v5710_v3  ;;  %v4721_v35 = vpop.f32.mrb[29].mxu0 }
 0x62d   :  { %v1018_v36 = vsel %vm363_vm8, %v1007_v33, -inf }
 0x62e   :  { %1019 = vmax.xlane.f32.xlu1 %v1018_v36  ;;  %v1011_v37 = vpop.f32.mrb[30].mxu0 }
 0x62f   :  { %v1012_v38 = vadd.f32 %v1011_v37, %v5714_v8  ;;  %v4724_v39 = vpop.f32.mrb[31].mxu0 }
 0x631   :  { %v1021_v42 = vsel %vm370_vm9, %v1012_v38, -inf }
 0x632   :  { %1022 = vmax.xlane.f32.xlu0 %v1021_v42 }
 0x63f   :  { %5346 = vrot.lane.b32.xlu1 %v5652_v43, %s5560_s10 }
 0x643   :  { %5351 = vrot.lane.b32.xlu1 %v5652_v43, %s5561_s11 }
 0x6b7   :  { %v1017_v44 = vpop.xlane.xlu0 %1016 }
 0x6b8   :  { %v1024_v45 = vsub.f32 %v1002_v27, %v1017_v44  ;;  %v156_v27 = vld [vmem:[#allocation2 + $0x80] sm:$0xff] }
 0x6b9   :  { %4741 = vmatpush3.msra.mxu0 %v156_v27 }
 0x6ba   :  { %v1027_v46 = vmul.f32 1.442695, %v1024_v45  ;;  %5170 = vmatprep.subr.bf16.mxu0 %v5552_v9 }
 0x6bb   :  { %v1020_v48 = vpop.xlane.xlu1 %1019 }
 0x6bc   :  { %5424 = vpow2.f32 %v1027_v46  ;;  %v1025_v49 = vsub.f32 %v1007_v33, %v1020_v48 }
 0x6be   :  { %v1029_v50 = vmul.f32 1.442695, %v1025_v49 }
 0x6bf   :  { %v5347_v52 = vpop.permute.xlu1 %5346  ;;  %v1023_v60 = vpop.xlane.xlu0 %1022 }
 0x6c0   :  { %5426 = vpow2.f32 %v1029_v50  ;;  %v5349_v53 = vunpack.i.h.bf16 %v5347_v52  ;;  %v5348_v54 = vunpack.i.l.bf16 %v5347_v52  ;;  %v1026_v61 = vsub.f32 %v1012_v38, %v1023_v60 }
 0x6c2   :  { %v5164_v55 = vpack.c.bf16 %v5349_v53, %v5348_v54  ;;  %v1031_v63 = vmul.f32 1.442695, %v1026_v61 }
 0x6c3   :  { %v5352_v4 = vpop.permute.xlu1 %5351 }
 0x6c4   :  { %5165 = vmatpush3.bf16.msra.mxu1 %v5164_v55  ;;  %5428 = vpow2.f32 %v1031_v63  ;;  %v5353_v10 = vunpack.i.l.bf16 %v5352_v4 }
 0x6c5   :  { %4729 = vmatprep.subr.mxu1 %v5549_v0 }
 0x6c6   :  { %v5425_v56 = vpop.eup %5424 }
 0x6c7   :  { %v1033_v57 = vsel %vm363_vm8, %v5425_v56, 0.0 }
 0x6c8   :  { %1034 = vadd.xlane.f32.xlu0 %v1033_v57 }
 0x6ca   :  { %v5427_v58 = vpop.eup %5426 }
 0x6cb   :  { %v1036_v59 = vsel %vm363_vm8, %v5427_v58, 0.0 }
 0x6cc   :  { %1037 = vadd.xlane.f32.xlu1 %v1036_v59 }
 0x6ce   :  { %v5429_v1 = vpop.eup %5428 }
 0x6cf   :  { %v1039_v2 = vsel %vm370_vm9, %v5429_v1, 0.0 }
 0x6dd   :  { %1249 = vrot.lane.b32.xlu1 %v5658_v47, %s5561_s11 }
 0x6de   :  { %1052 = vrot.lane.b32.xlu0 %v5658_v47, %s5560_s10 }
 0x6e1   :  { %1241 = vrot.lane.b32.xlu1 %v5648_v41, %s5562_s12  ;;  %v5354_v41 = vunpack.i.h.bf16 %v5352_v4 }
 0x6e3   :  { %v5167_v13 = vpack.c.bf16 %v5354_v41, %v5353_v10 }
 0x6fd   :  { %1040 = vadd.xlane.f32.xlu0 %v1039_v2 }
 0x713   :  { %1239 = vrot.lane.b32.xlu0 %v5646_v40, %s5562_s12 }
 0x717   :  { %1243 = vrot.lane.b32.xlu0 %v5658_v47, %s5562_s12 }
 0x755   :  { %v1035_v5 = vpop.xlane.xlu0 %1034 }
 0x756   :  { %5430 = vrcp.f32 %v1035_v5 }
 0x759   :  { %v1038_v6 = vpop.xlane.xlu1 %1037  ;;  %v1053_v7 = vpop.permute.xlu0 %1052 }
 0x75a   :  { %5432 = vrcp.f32 %v1038_v6  ;;  %4730 = vmatpush3.msk.msra.mxu1 %vm142_vm4, %v1053_v7 }
 0x75b   :  { %5166 = vmatprep.subr.bf16.mxu1 %v5552_v9 }
 0x75d   :  { %v1250_v17 = vpop.permute.xlu1 %1249 }
 0x760   :  { %v5431_v11 = vpop.eup %5430 }
 0x761   :  { %v1045_v12 = vmul.f32 %v5431_v11, %v5425_v56  ;;  %v1242_v25 = vpop.permute.xlu1 %1241 }
 0x763   :  { %4732 = vmatmul.mubr.msk.f32.vlgmr.msra.gmra.mrb[18].mxu1 %vm363_vm8, %v1045_v12 }
 0x764   :  { %v5433_v40 = vpop.eup %5432  ;;  %5169 = vmatpush3.bf16.xpose.msk.msra.mxu1 %vm5672_vm7, %v5167_v13  ;;  %4734 = vmatprep.mubr.msk.f32.mxu1 %vm5550_vm0, %v5549_v0 }
 0x765   :  { %v1046_v14 = vmul.f32 %v5433_v40, %v5427_v58  ;;  %4755 = vmatprep.subr.mxu1 %v5549_v0 }
 0x767   :  { %4735 = vmatmul.mubr.msk.f32.gmra.mrb[20].mxu1 %vm363_vm8, %v1046_v14 }
 0x768   :  { %4737 = vmatprep.mubr.msk.f32.mxu1 %vm5550_vm0, %v5549_v0 }
 0x76c   :  { %4756 = vmatpush3.xpose.msk.msra.mxu1 %vm270_vm6, %v1250_v17 }
 0x76d   :  { %4781 = vmatprep.subr.mxu1 %v5549_v0 }
 0x78a   :  { %v1041_v19 = vpop.xlane.xlu0 %1040 }
 0x78b   :  { %5434 = vrcp.f32 %v1041_v19 }
 0x78e   :  { %v1240_v23 = vpop.permute.xlu0 %1239 }
 0x792   :  { %v1244_v26 = vpop.permute.xlu0 %1243 }
 0x795   :  { %v5435_v20 = vpop.eup %5434 }
 0x796   :  { %v1047_v22 = vmul.f32 %v5435_v20, %v5429_v1 }
 0x798   :  { %4738 = vmatmul.mubr.msk.f32.gmra.mrb[22].mxu1 %vm363_vm8, %v1047_v22 }
 0x799   :  { %4757 = vmatprep.mubr.msk.f32.mxu1 %vm5550_vm0, %v5549_v0 }
 0x79c   :  { %4758 = vmatmul.mubr.msk.f32.vlgmr.msra.gmra.mrb[24].mxu1 %vm270_vm6, %v1240_v23 }
 0x79d   :  { %4760 = vmatprep.mubr.msk.f32.mxu1 %vm5550_vm0, %v5549_v0 }
 0x7a0   :  { %4761 = vmatmul.mubr.msk.f32.gmra.mrb[26].mxu1 %vm270_vm6, %v1242_v25 }
 0x7a1   :  { %4763 = vmatprep.mubr.msk.f32.mxu1 %vm5550_vm0, %v5549_v0 }
 0x7a4   :  { %4764 = vmatmul.mubr.msk.f32.gmra.mrb[28].mxu1 %vm270_vm6, %v1244_v26 }
 0x7a5   :  { %4783 = vmatprep.mubr.msk.f32.mxu1 %vm5550_vm0, %v5549_v0 }
 0x836   :  { %v1133_v28 = vpop.f32.mrb[18].mxu1 }
 0x837   :  { %v4733_v29 = vpop.f32.mrb[19].mxu1  ;;  %4743 = vmatmul.mubr.msk.f32.vlgmr.msra.gmra.mrb[32].mxu0 %vm270_vm6, %v1133_v28 }
 0x838   :  { %4745 = vmatprep.mubr.msk.f32.mxu0 %vm5550_vm0, %v5549_v0 }
 0x83a   :  { %v1138_v31 = vpop.f32.mrb[20].mxu1 }
 0x83b   :  { %v4736_v33 = vpop.f32.mrb[21].mxu1  ;;  %4746 = vmatmul.mubr.msk.f32.gmra.mrb[34].mxu0 %vm270_vm6, %v1138_v31 }
 0x83c   :  { %4748 = vmatprep.mubr.msk.f32.mxu0 %vm5550_vm0, %v5549_v0 }
 0x86b   :  { %v1143_v35 = vpop.f32.mrb[22].mxu1 }
 0x86c   :  { %v4739_v36 = vpop.f32.mrb[23].mxu1  ;;  %4749 = vmatmul.mubr.msk.f32.gmra.mrb[36].mxu0 %vm270_vm6, %v1143_v35 }
 0x86d   :  { %4772 = vmatprep.mubr.msk.f32.mxu0 %vm5550_vm0, %v5549_v0 }
 0x86f   :  { %v1329_v37 = vpop.f32.mrb[24].mxu1 }
 0x870   :  { %v1330_v38 = vadd.f32 %v1329_v37, %v5707_v62  ;;  %v4759_v39 = vpop.f32.mrb[25].mxu1 }
 0x872   :  { %v1343_v42 = vsel %vm363_vm8, %v1330_v38, -inf }
 0x873   :  { %1344 = vmax.xlane.f32.xlu1 %v1343_v42  ;;  %v1334_v44 = vpop.f32.mrb[26].mxu1 }
 0x874   :  { %v1335_v45 = vadd.f32 %v1334_v44, %v5710_v3  ;;  %v4762_v46 = vpop.f32.mrb[27].mxu1 }
 0x876   :  { %v1346_v48 = vsel %vm363_vm8, %v1335_v45, -inf }
 0x877   :  { %1347 = vmax.xlane.f32.xlu0 %v1346_v48  ;;  %v1339_v49 = vpop.f32.mrb[28].mxu1 }
 0x878   :  { %v1340_v50 = vadd.f32 %v1339_v49, %v5714_v8  ;;  %v4765_v52 = vpop.f32.mrb[29].mxu1 }
 0x87a   :  { %v1349_v53 = vsel %vm370_vm9, %v1340_v50, -inf }
 0x87b   :  { %1350 = vmax.xlane.f32.xlu0 %v1349_v53 }
 0x900   :  { %v1345_v54 = vpop.xlane.xlu1 %1344 }
 0x901   :  { %v1352_v62 = vsub.f32 %v1330_v38, %v1345_v54  ;;  %v5918_v38 = vld [vmem:[#allocation2 + $0xf0] sm:$0x7f] }
 0x902   :  { %v1570_v39 = vrot.slane %v5918_v38, %v5622_v16 }
 0x903   :  { %v1355_v55 = vmul.f32 1.442695, %v1352_v62 }
 0x904   :  { %v1348_v56 = vpop.xlane.xlu0 %1347 }
 0x905   :  { %5436 = vpow2.f32 %v1355_v55  ;;  %v1353_v57 = vsub.f32 %v1335_v45, %v1348_v56 }
 0x907   :  { %v1357_v58 = vmul.f32 1.442695, %v1353_v57 }
 0x908   :  { %v1351_v59 = vpop.xlane.xlu0 %1350 }
 0x909   :  { %5438 = vpow2.f32 %v1357_v58  ;;  %v1354_v3 = vsub.f32 %v1340_v50, %v1351_v59 }
 0x90a   :  { %v1222_v60 = vpop.f32.mrb[32].mxu0 }
 0x90b   :  { %v1359_v61 = vmul.f32 1.442695, %v1354_v3  ;;  %v5883_v63 = vadd.f32 %v1222_v60, %v5811_v18  ;;  %v4744_v8 = vpop.f32.mrb[33].mxu0  ;;  %v157_v18 = vld [vmem:[#allocation2 + $0x88] sm:$0xff] }
 0x90c   :  { %4782 = vmatpush3.msra.mxu1 %v157_v18  ;;  %v158_v18 = vld [vmem:[#allocation2 + $0x90] sm:$0xff] }
 0x90d   :  { %5440 = vpow2.f32 %v1359_v61  ;;  %5197 = vmatprep.subr.bf16.mxu1 %v5552_v9 }
 0x90e   :  { %v1227_v1 = vpop.f32.mrb[34].mxu0 }
 0x90f   :  { %v5437_v2 = vpop.eup %5436  ;;  %v5886_v4 = vadd.f32 %v1227_v1, %v5813_v21  ;;  %v4747_v5 = vpop.f32.mrb[35].mxu0 }
 0x910   :  { %v1361_v6 = vsel %vm363_vm8, %v5437_v2, 0.0 }
 0x911   :  { %1362 = vadd.xlane.f32.xlu1 %v1361_v6 }
 0x913   :  { %v5439_v7 = vpop.eup %5438 }
 0x914   :  { %v1364_v41 = vsel %vm363_vm8, %v5439_v7, 0.0 }
 0x915   :  { %1365 = vadd.xlane.f32.xlu0 %v1364_v41 }
 0x917   :  { %v5441_v10 = vpop.eup %5440 }
 0x918   :  { %v1367_v11 = vsel %vm370_vm9, %v5441_v10, 0.0 }
 0x919   :  { %1368 = vadd.xlane.f32.xlu1 %v1367_v11 }
 0x92a   :  { %1380 = vrot.lane.b32.xlu1 %v5658_v47, %s5563_s13 }
 0x92b   :  { %5356 = vrot.lane.b32.xlu0 %v5652_v43, %s5563_s13 }
 0x93f   :  { %v1232_v21 = vpop.f32.mrb[36].mxu0 }
 0x940   :  { %v1238_v12 = vadd.f32 %v1232_v21, %v5815_v24  ;;  %v4750_v13 = vpop.f32.mrb[37].mxu0  ;;  %v159_v21 = vld [vmem:[#allocation2 + $0x98] sm:$0xff] }
 0x941   :  { %v160_v13 = vld [vmem:[#allocation2 + $0xa0] sm:$0xff] }
 0x99e   :  { %v1363_v40 = vpop.xlane.xlu1 %1362 }
 0x99f   :  { %5442 = vrcp.f32 %v1363_v40  ;;  %v161_v40 = vld [vmem:[#allocation2 + $0xa8] sm:$0xff] }
 0x9a2   :  { %v1366_v14 = vpop.xlane.xlu0 %1365 }
 0x9a3   :  { %5444 = vrcp.f32 %v1366_v14  ;;  %v5177_v14 = vpack.c.bf16 %v161_v40, %v160_v13 }
 0x9a6   :  { %v1369_v17 = vpop.xlane.xlu1 %1368  ;;  %v5357_v19 = vpop.permute.xlu0 %5356 }
 0x9a7   :  { %v5359_v20 = vunpack.i.h.bf16 %v5357_v19  ;;  %v5358_v22 = vunpack.i.l.bf16 %v5357_v19  ;;  %5446 = vrcp.f32 %v1369_v17 }
 0x9a9   :  { %v5171_v47 = vpack.c.bf16 %v5359_v20, %v5358_v22  ;;  %v5443_v23 = vpop.eup %5442 }
 0x9aa   :  { %v1373_v43 = vmul.f32 %v5443_v23, %v5437_v2  ;;  %v1381_v25 = vpop.permute.xlu1 %1380 }
 0x9ab   :  { %5172 = vmatpush3.bf16.msra.mxu0 %v5171_v47 }
 0x9ac   :  { %4770 = vmatprep.subr.mxu0 %v5549_v0 }
 0x9ad   :  { %v5445_v26 = vpop.eup %5444 }
 0x9ae   :  { %v1374_v24 = vmul.f32 %v5445_v26, %v5439_v7  ;;  %v1620_v26 = vsub.s32 3, %v5619_v15 }
 0x9af   :  { %4771 = vmatpush3.msk.msra.mxu0 %vm142_vm4, %v1381_v25 }
 0x9b0   :  { %4773 = vmatmul.mubr.msk.f32.vlgmr.msra.gmra.mrb[38].mxu0 %vm363_vm8, %v1373_v43  ;;  %5173 = vmatprep.subr.bf16.mxu0 %v5552_v9 }
 0x9b1   :  { %4775 = vmatprep.mubr.msk.f32.mxu0 %vm5550_vm0, %v5549_v0  ;;  %v5447_v27 = vpop.eup %5446 }
 0x9b2   :  { %v1375_v28 = vmul.f32 %v5447_v27, %v5441_v10  ;;  %v1627_v27 = vsub.s32 4, %v5619_v15 }
 0x9b4   :  { %4776 = vmatmul.mubr.msk.f32.gmra.mrb[40].mxu0 %vm363_vm8, %v1374_v24 }
 0x9b5   :  { %4778 = vmatprep.mubr.msk.f32.mxu0 %vm5550_vm0, %v5549_v0 }
 0x9b8   :  { %4779 = vmatmul.mubr.msk.f32.gmra.mrb[42].mxu0 %vm363_vm8, %v1375_v28  ;;  %v1621_v28 = vrot.slane %v5918_v38, %v1620_v26 }
 0x9b9   :  { %4800 = vmatprep.mubr.msk.f32.mxu0 %vm5550_vm0, %v5549_v0 }
 0xa83   :  { %v1461_v29 = vpop.f32.mrb[38].mxu0 }
 0xa84   :  { %v4774_v31 = vpop.f32.mrb[39].mxu0  ;;  %4784 = vmatmul.mubr.msk.f32.vlgmr.msra.gmra.mrb[30].mxu1 %vm270_vm6, %v1461_v29 }
 0xa85   :  { %4786 = vmatprep.mubr.msk.f32.mxu1 %vm5550_vm0, %v5549_v0  ;;  %v1628_v31 = vrot.slane %v5918_v38, %v1627_v27 }
 0xa87   :  { %v1466_v33 = vpop.f32.mrb[40].mxu0 }
 0xa88   :  { %v4777_v35 = vpop.f32.mrb[41].mxu0  ;;  %4787 = vmatmul.mubr.msk.f32.gmra.mrb[32].mxu1 %vm270_vm6, %v1466_v33 }
 0xa89   :  { %4789 = vmatprep.mubr.msk.f32.mxu1 %vm5550_vm0, %v5549_v0  ;;  %v162_v35 = vld [vmem:[#allocation2 + $0xb0] sm:$0xff] }
 0xa8b   :  { %v1471_v36 = vpop.f32.mrb[42].mxu0 }
 0xa8c   :  { %v4780_v37 = vpop.f32.mrb[43].mxu0  ;;  %4790 = vmatmul.mubr.msk.f32.gmra.mrb[34].mxu1 %vm270_vm6, %v1471_v36  ;;  %v163_v36 = vld [vmem:[#allocation2 + $0xb8] sm:$0xff] }
 0xa8d   :  { %4857 = vmatprep.mubr.msk.f32.mxu1 %vm5550_vm0, %v5549_v0 }
 0xb57   :  { %v1550_v42 = vpop.f32.mrb[30].mxu1 }
 0xb58   :  { %v1564_v44 = vadd.f32 %v1550_v42, %v5883_v63  ;;  %v4785_v45 = vpop.f32.mrb[31].mxu1  ;;  %v5180_v42 = vpack.c.bf16 %v163_v36, %v162_v35 }
 0xb5a   :  { %v1571_v46 = vadd.f32 %v1570_v39, %v1564_v44 }
 0xb5b   :  { %v1555_v48 = vpop.f32.mrb[32].mxu1 }
 0xb5c   :  { %v1565_v49 = vadd.f32 %v1555_v48, %v5886_v4  ;;  %v4788_v50 = vpop.f32.mrb[33].mxu1  ;;  %v1574_v52 = vadd.f32 %v1571_v46, %v5628_v30  ;;  %v164_v46 = vld [vmem:[#allocation2 + $0xc0] sm:$0xff]  ;;  %v165_v48 = vld [vmem:[#allocation2 + $0xc8] sm:$0xff] }
 0xb5e   :  { %v1572_v53 = vadd.f32 %v1570_v39, %v1565_v49  ;;  %v1577_v54 = vsel %vm171_vm5, %v1574_v52, 0.0 }
 0xb5f   :  { %1578 = vadd.xlane.f32.xlu1 %v1577_v54  ;;  %v1560_v62 = vpop.f32.mrb[34].mxu1 }
 0xb60   :  { %v1566_v55 = vadd.f32 %v1560_v62, %v1238_v12  ;;  %v4791_v56 = vpop.f32.mrb[35].mxu1  ;;  %v1575_v57 = vadd.f32 %v1572_v53, %v5634_v32  ;;  %v5174_v12 = vpack.c.bf16 %v159_v21, %v158_v18  ;;  %v166_v62 = vld [vmem:[#allocation2 + $0xd0] sm:$0xff] }
 0xb62   :  { %v1573_v58 = vadd.f32 %v1570_v39, %v1566_v55  ;;  %v1580_v59 = vsel %vm171_vm5, %v1575_v57, 0.0  ;;  %5175 = vmatpush3.bf16.msra.mxu0 %v5174_v12  ;;  %v167_v55 = vld [vmem:[#allocation2 + $0xd8] sm:$0xff] }
 0xb63   :  { %1581 = vadd.xlane.f32.xlu0 %v1580_v59  ;;  %5176 = vmatprep.subr.bf16.mxu0 %v5552_v9  ;;  %v168_v59 = vld [vmem:[#allocation2 + $0xe0] sm:$0xff] }
 0xb64   :  { %v1576_v3 = vadd.f32 %v1573_v58, %v5640_v34 }
 0xb66   :  { %v1584_v60 = vsel %vm1583_vm10, %v1576_v3, 0.0  ;;  %5178 = vmatpush3.bf16.msra.mxu0 %v5177_v14 }
 0xb67   :  { %1585 = vadd.xlane.f32.xlu0 %v1584_v60  ;;  %5179 = vmatprep.subr.bf16.mxu0 %v5552_v9 }
 0xbec   :  { %v1579_v30 = vpop.xlane.xlu1 %1578 }
 0xbed   :  { %v1588_v61 = vmul.f32 0.03125, %v1579_v30  ;;  %v1634_v30 = vsub.s32 1, %v5619_v15 }
 0xbef   :  { %v1591_v63 = vsub.f32 %v1574_v52, %v1588_v61  ;;  %v5183_v52 = vpack.c.bf16 %v165_v48, %v164_v46  ;;  %v1635_v61 = vrot.slane %v5918_v38, %v1634_v30 }
 0xbf0   :  { %v1582_v8 = vpop.xlane.xlu0 %1581 }
 0xbf1   :  { %v1589_v1 = vmul.f32 0.03125, %v1582_v8  ;;  %v1594_v2 = vmul.f32 %v1591_v63, %v1591_v63 }
 0xbf3   :  { %v1592_v4 = vsub.f32 %v1575_v57, %v1589_v1  ;;  %v1597_v5 = vsel %vm171_vm5, %v1594_v2, 0.0  ;;  %v5186_v57 = vpack.c.bf16 %v167_v55, %v166_v62  ;;  %v1880_v55 = vld [vmem:[#allocation2 + $0x108] sm:$0xff] }
 0xbf4   :  { %1598 = vadd.xlane.f32.xlu1 %v1597_v5  ;;  %v1586_v32 = vpop.xlane.xlu0 %1585 }
 0xbf5   :  { %v1590_v6 = vmul.f32 0.03125, %v1586_v32  ;;  %v1595_v7 = vmul.f32 %v1592_v4, %v1592_v4 }
 0xbf7   :  { %v1593_v41 = vsub.f32 %v1576_v3, %v1590_v6  ;;  %v1600_v10 = vsel %vm171_vm5, %v1595_v7, 0.0  ;;  %v169_v3 = vld [vmem:[#allocation2 + $0xe8] sm:$0xff] }
 0xbf8   :  { %1601 = vadd.xlane.f32.xlu0 %v1600_v10  ;;  %v5189_v60 = vpack.c.bf16 %v169_v3, %v168_v59 }
 0xbf9   :  { %v1596_v34 = vmul.f32 %v1593_v41, %v1593_v41 }
 0xbfb   :  { %v1603_v11 = vsel %vm1583_vm10, %v1596_v34, 0.0 }
 0xbfc   :  { %1604 = vadd.xlane.f32.xlu1 %v1603_v11  ;;  %v1730_v11 = vsub.s32 2, %v5619_v15 }
 0xbfe   :  { %v1731_v18 = vrot.slane %v5918_v38, %v1730_v11 }
 0xc81   :  { %v1599_v17 = vpop.xlane.xlu1 %1598 }
 0xc82   :  { %v1606_v19 = vmul.f32 0.03125, %v1599_v17 }
 0xc84   :  { %v1609_v20 = vadd.f32 1e-05, %v1606_v19 }
 0xc85   :  { %v1602_v22 = vpop.xlane.xlu0 %1601 }
 0xc86   :  { %5448 = vrsqrt.f32 %v1609_v20  ;;  %v1607_v47 = vmul.f32 0.03125, %v1602_v22 }
 0xc88   :  { %v1610_v23 = vadd.f32 1e-05, %v1607_v47 }
 0xc89   :  { %v1605_v43 = vpop.xlane.xlu1 %1604 }
 0xc8a   :  { %5450 = vrsqrt.f32 %v1610_v23  ;;  %v1608_v25 = vmul.f32 0.03125, %v1605_v43 }
 0xc8c   :  { %v1611_v24 = vadd.f32 1e-05, %v1608_v25 }
 0xc8e   :  { %5452 = vrsqrt.f32 %v1611_v24 }
 0xc90   :  { %v5449_v29 = vpop.eup %5448 }
 0xc91   :  { %v1615_v33 = vmul.f32 %v5449_v29, %v1591_v63 }
 0xc93   :  { %v1622_v37 = vmul.f32 %v1621_v28, %v1615_v33 }
 0xc94   :  { %v5451_v39 = vpop.eup %5450 }
 0xc95   :  { %v1629_v44 = vadd.f32 %v1628_v31, %v1622_v37  ;;  %v1616_v45 = vmul.f32 %v5451_v39, %v1592_v4 }
 0xc97   :  { %4801 = vmatmul.mubr.msk.f32.vlgmr.msra.gmra.mrb[44].mxu0 %vm171_vm5, %v1629_v44  ;;  %v1623_v49 = vmul.f32 %v1621_v28, %v1616_v45 }
 0xc98   :  { %v5453_v50 = vpop.eup %5452  ;;  %4803 = vmatprep.mubr.msk.f32.mxu0 %vm5550_vm0, %v5549_v0  ;;  %5181 = vmatpush3.bf16.msra.mxu0 %v5180_v42 }
 0xc99   :  { %v1630_v53 = vadd.f32 %v1628_v31, %v1623_v49  ;;  %v1617_v54 = vmul.f32 %v5453_v50, %v1593_v41  ;;  %5182 = vmatprep.subr.bf16.mxu0 %v5552_v9 }
 0xc9b   :  { %4804 = vmatmul.mubr.msk.f32.gmra.mrb[46].mxu0 %vm171_vm5, %v1630_v53  ;;  %v1624_v56 = vmul.f32 %v1621_v28, %v1617_v54  ;;  %v1879_v54 = vld [vmem:[#allocation2 + $0x100] sm:$0xff] }
 0xc9c   :  { %4806 = vmatprep.mubr.msk.f32.mxu0 %vm5550_vm0, %v5549_v0  ;;  %5184 = vmatpush3.bf16.msra.mxu0 %v5183_v52 }
 0xc9d   :  { %v1631_v58 = vadd.f32 %v1628_v31, %v1624_v56  ;;  %5185 = vmatprep.subr.bf16.mxu0 %v5552_v9  ;;  %v1881_v56 = vld [vmem:[#allocation2 + $0x110] sm:$0xff] }
 0xc9f   :  { %4807 = vmatmul.mubr.msk.f32.gmra.mrb[48].mxu0 %vm171_vm5, %v1631_v58 }
 0xca0   :  { %5187 = vmatpush3.bf16.msra.mxu0 %v5186_v57  ;;  %4825 = vmatprep.mubr.msk.f32.mxu0 %vm5550_vm0, %v5549_v0  ;;  %v5195_v57 = vpack.c.bf16 %v1881_v56, %v1880_v55  ;;  %v6062_v55 = vld [vmem:[#allocation2 + $0x20] sm:$0xff] }
 0xca1   :  { %5188 = vmatprep.subr.bf16.mxu0 %v5552_v9 }
 0xca4   :  { %5190 = vmatpush3.bf16.msra.mxu0 %v5189_v60 }
 0xca5   :  { %5191 = vmatprep.subr.bf16.mxu0 %v5552_v9 }
 0xd6a   :  { %v1711_v63 = vpop.f32.mrb[44].mxu0 }
 0xd6b   :  { %v1712_v8 = vadd.f32 %v1711_v63, %v1635_v61  ;;  %v4802_v1 = vpop.f32.mrb[45].mxu0 }
 0xd6d   :  { %v1725_v2 = vmax.f32 %v1712_v8, 0.0 }
 0xd6e   :  { %v1716_v4 = vpop.f32.mrb[46].mxu0 }
 0xd6f   :  { %v1717_v5 = vadd.f32 %v1716_v4, %v1635_v61  ;;  %v4805_v32 = vpop.f32.mrb[47].mxu0  ;;  %4826 = vmatmul.mubr.msk.f32.vlgmr.msra.gmra.mrb[50].mxu0 %vm1732_vm11, %v1725_v2  ;;  %v1866_v2 = vsub.s32 5, %v5619_v15 }
 0xd70   :  { %4828 = vmatprep.mubr.msk.f32.mxu0 %vm5550_vm0, %v5549_v0 }
 0xd71   :  { %v1726_v6 = vmax.f32 %v1717_v5, 0.0  ;;  %v1873_v5 = vsub.s32 6, %v5619_v15  ;;  %v1867_v32 = vrot.slane %v5918_v38, %v1866_v2 }
 0xd72   :  { %v1721_v7 = vpop.f32.mrb[48].mxu0 }
 0xd73   :  { %v1722_v41 = vadd.f32 %v1721_v7, %v1635_v61  ;;  %v4808_v10 = vpop.f32.mrb[49].mxu0  ;;  %4829 = vmatmul.mubr.msk.f32.gmra.mrb[52].mxu0 %vm1732_vm11, %v1726_v6  ;;  %v1874_v7 = vrot.slane %v5918_v38, %v1873_v5 }
 0xd74   :  { %4831 = vmatprep.mubr.msk.f32.mxu0 %vm5550_vm0, %v5549_v0 }
 0xd75   :  { %v1727_v34 = vmax.f32 %v1722_v41, 0.0 }
 0xd77   :  { %4832 = vmatmul.mubr.msk.f32.gmra.mrb[54].mxu0 %vm1732_vm11, %v1727_v34 }
 0xd78   :  { %4842 = vmatprep.mubr.msk.f32.mxu0 %vm5550_vm0, %v5549_v0 }
 0xe42   :  { %v1808_v21 = vpop.f32.mrb[50].mxu0 }
 0xe43   :  { %v1809_v12 = vadd.f32 %v1808_v21, %v1731_v18  ;;  %v4827_v13 = vpop.f32.mrb[51].mxu0 }
 0xe45   :  { %v1822_v40 = vadd.f32 %v1809_v12, %v1629_v44 }
 0xe46   :  { %v1813_v14 = vpop.f32.mrb[52].mxu0 }
 0xe47   :  { %v1814_v17 = vadd.f32 %v1813_v14, %v1731_v18  ;;  %v4830_v19 = vpop.f32.mrb[53].mxu0  ;;  %v1825_v20 = vsel %vm171_vm5, %v1822_v40, 0.0 }
 0xe48   :  { %1826 = vadd.xlane.f32.xlu0 %v1825_v20 }
 0xe49   :  { %v1823_v22 = vadd.f32 %v1814_v17, %v1630_v53  ;;  %v1878_v53 = vld [vmem:[#allocation2 + $0xf8] sm:$0xff] }
 0xe4a   :  { %v1818_v47 = vpop.f32.mrb[54].mxu0  ;;  %v5192_v62 = vpack.c.bf16 %v1879_v54, %v1878_v53 }
 0xe4b   :  { %v1819_v23 = vadd.f32 %v1818_v47, %v1731_v18  ;;  %v4833_v43 = vpop.f32.mrb[55].mxu0  ;;  %v1828_v25 = vsel %vm171_vm5, %v1823_v22, 0.0  ;;  %v1883_v47 = vld [vmem:[#allocation2 + $0x120] sm:$0xff] }
 0xe4c   :  { %1829 = vadd.xlane.f32.xlu1 %v1828_v25  ;;  %5193 = vmatpush3.bf16.msra.mxu0 %v5192_v62 }
 0xe4d   :  { %v1824_v24 = vadd.f32 %v1819_v23, %v1631_v58  ;;  %5194 = vmatprep.subr.bf16.mxu0 %v5552_v9 }
 0xe4f   :  { %v1831_v28 = vsel %vm1583_vm10, %v1824_v24, 0.0 }
 0xe50   :  { %1832 = vadd.xlane.f32.xlu0 %v1831_v28  ;;  %5196 = vmatpush3.bf16.msra.mxu0 %v5195_v57  ;;  %v1884_v28 = vld [vmem:[#allocation2 + $0x128] sm:$0x3] }
 0xe51   :  { %5201 = vmatprep.subr.bf16.mxu0 %v5552_v9 }
 0xed5   :  { %v1827_v29 = vpop.xlane.xlu0 %1826 }
 0xed6   :  { %v1834_v31 = vmul.f32 0.03125, %v1827_v29 }
 0xed8   :  { %v1837_v33 = vsub.f32 %v1822_v40, %v1834_v31 }
 0xed9   :  { %v1830_v35 = vpop.xlane.xlu1 %1829 }
 0xeda   :  { %v1835_v36 = vmul.f32 0.03125, %v1830_v35  ;;  %v1840_v37 = vmul.f32 %v1837_v33, %v1837_v33 }
 0xedc   :  { %v1838_v39 = vsub.f32 %v1823_v22, %v1835_v36  ;;  %v1843_v42 = vsel %vm171_vm5, %v1840_v37, 0.0  ;;  %v1882_v22 = vld [vmem:[#allocation2 + $0x118] sm:$0xff] }
 0xedd   :  { %1844 = vadd.xlane.f32.xlu1 %v1843_v42  ;;  %v1833_v44 = vpop.xlane.xlu0 %1832 }
 0xede   :  { %v1836_v45 = vmul.f32 0.03125, %v1833_v44  ;;  %v1841_v46 = vmul.f32 %v1838_v39, %v1838_v39 }
 0xee0   :  { %v1839_v48 = vsub.f32 %v1824_v24, %v1836_v45  ;;  %v1846_v49 = vsel %vm171_vm5, %v1841_v46, 0.0 }
 0xee1   :  { %1847 = vadd.xlane.f32.xlu0 %v1846_v49 }
 0xee2   :  { %v1842_v50 = vmul.f32 %v1839_v48, %v1839_v48 }
 0xee4   :  { %v1849_v52 = vsel %vm1583_vm10, %v1842_v50, 0.0 }
 0xee5   :  { %1850 = vadd.xlane.f32.xlu1 %v1849_v52 }
 0xf6a   :  { %v1845_v58 = vpop.xlane.xlu1 %1844 }
 0xf6b   :  { %v1852_v59 = vmul.f32 0.03125, %v1845_v58 }
 0xf6d   :  { %v1855_v3 = vadd.f32 1e-05, %v1852_v59 }
 0xf6e   :  { %v1848_v60 = vpop.xlane.xlu0 %1847 }
 0xf6f   :  { %5454 = vrsqrt.f32 %v1855_v3  ;;  %v1853_v61 = vmul.f32 0.03125, %v1848_v60  ;;  %v6066_v3 = vld [vmem:[#allocation2 + $0x28] sm:$0xff] }
 0xf71   :  { %v1856_v63 = vadd.f32 1e-05, %v1853_v61 }
 0xf72   :  { %v1851_v8 = vpop.xlane.xlu1 %1850 }
 0xf73   :  { %5456 = vrsqrt.f32 %v1856_v63  ;;  %v1854_v1 = vmul.f32 0.03125, %v1851_v8 }
 0xf75   :  { %v1857_v4 = vadd.f32 1e-05, %v1854_v1  ;;  %v6070_v1 = vld [vmem:[#allocation2 + $0x30] sm:$0x3] }
 0xf77   :  { %5458 = vrsqrt.f32 %v1857_v4 }
 0xf79   :  { %v5455_v6 = vpop.eup %5454 }
 0xf7a   :  { %v1861_v41 = vmul.f32 %v5455_v6, %v1837_v33 }
 0xf7c   :  { %v1868_v10 = vmul.f32 %v1867_v32, %v1861_v41 }
 0xf7d   :  { %v5457_v34 = vpop.eup %5456 }
 0xf7e   :  { %v5989_v18 = vadd.f32 %v1874_v7, %v1868_v10  ;;  %v1862_v21 = vmul.f32 %v5457_v34, %v1838_v39 }
 0xf80   :  { %4843 = vmatmul.mubr.msk.f32.vlgmr.msra.gmra.mrb[56].mxu0 %vm171_vm5, %v5989_v18  ;;  %v1869_v12 = vmul.f32 %v1867_v32, %v1862_v21 }
 0xf81   :  { %v5459_v13 = vpop.eup %5458  ;;  %4845 = vmatprep.mubr.msk.f32.mxu0 %vm5550_vm0, %v5549_v0 }
 0xf82   :  { %v5995_v40 = vadd.f32 %v1874_v7, %v1869_v12  ;;  %v1863_v14 = vmul.f32 %v5459_v13, %v1839_v48 }
 0xf84   :  { %4846 = vmatmul.mubr.msk.f32.gmra.mrb[58].mxu0 %vm171_vm5, %v5995_v40  ;;  %v1870_v38 = vmul.f32 %v1867_v32, %v1863_v14 }
 0xf85   :  { %4848 = vmatprep.mubr.msk.f32.mxu0 %vm5550_vm0, %v5549_v0 }
 0xf86   :  { %v6001_v17 = vadd.f32 %v1874_v7, %v1870_v38 }
 0xf88   :  { %4849 = vmatmul.mubr.msk.f32.gmra.mrb[60].mxu0 %vm171_vm5, %v6001_v17 }
 0xf89   :  { %4872 = vmatprep.mubr.msk.f32.mxu0 %vm5550_vm0, %v5549_v0 }
0x1053   :  { %v1977_v19 = vpop.f32.mrb[56].mxu0 }
0x1054   :  { %v4844_v20 = vpop.f32.mrb[57].mxu0  ;;  %v6007_v43 = vadd.f32 %v1977_v19, %v1882_v22 }
0x1057   :  { %v1982_v23 = vpop.f32.mrb[58].mxu0 }
0x1058   :  { %v6009_v25 = vadd.f32 %v1982_v23, %v1883_v47  ;;  %v4847_v24 = vpop.f32.mrb[59].mxu0 }
0x105a   :  { %v6013_v29 = vpack.i.bf16 %v6009_v25, %v6007_v43 }
0x105b   :  { %v1987_v31 = vpop.f32.mrb[60].mxu0 }
0x105c   :  { %v6015_v33 = vadd.f32 %v1987_v31, %v1884_v28  ;;  %5361 = vrot.lane.b32.xlu0 %v6013_v29, %s5554_s4  ;;  %v4850_v35 = vpop.f32.mrb[61].mxu0 }
0x105e   :  { %1998 = vrot.lane.b32.xlu1 %v6015_v33, %s5554_s4 }
0x1060   :  { %2234 = vrot.lane.b32.xlu0 %v6015_v33, %s5553_s0 }
0x1062   :  { %5366 = vrot.lane.b32.xlu1 %v6013_v29, %s5553_s0 }
0x1064   :  { %2226 = vrot.lane.b32.xlu0 %v6009_v25, %s5555_s5 }
0x1066   :  { %2224 = vrot.lane.b32.xlu1 %v6007_v43, %s5555_s5 }
0x106a   :  { %2228 = vrot.lane.b32.xlu1 %v6015_v33, %s5555_s5 }
0x10ce   :  { %v5362_v36 = vpop.permute.xlu0 %5361 }
0x10cf   :  { %v5364_v37 = vunpack.i.h.bf16 %v5362_v36  ;;  %v5363_v39 = vunpack.i.l.bf16 %v5362_v36 }
0x10d0   :  { %v1999_v42 = vpop.permute.xlu1 %1998 }
0x10d1   :  { %v5198_v44 = vpack.c.bf16 %v5364_v37, %v5363_v39 }
0x10d2   :  { %v2235_v50 = vpop.permute.xlu0 %2234 }
0x10d3   :  { %5200 = vmatpush3.bf16.xpose.msk.msra.mxu1 %vm5672_vm7, %v5198_v44 }
0x10d4   :  { %4855 = vmatprep.subr.mxu1 %v5549_v0  ;;  %v5367_v45 = vpop.permute.xlu1 %5366 }
0x10d5   :  { %v5369_v46 = vunpack.i.h.bf16 %v5367_v45  ;;  %v5368_v48 = vunpack.i.l.bf16 %v5367_v45 }
0x10d6   :  { %v2227_v53 = vpop.permute.xlu0 %2226 }
0x10d7   :  { %v5205_v49 = vpack.c.bf16 %v5369_v46, %v5368_v48 }
0x10d8   :  { %v2225_v52 = vpop.permute.xlu1 %2224 }
0x10db   :  { %4856 = vmatpush3.xpose.msk.msra.mxu1 %vm270_vm6, %v1999_v42 }
0x10dc   :  { %5204 = vmatprep.subr.bf16.mxu1 %v5552_v9  ;;  %v2229_v54 = vpop.permute.xlu1 %2228 }
0x10de   :  { %4858 = vmatmul.mubr.msk.f32.vlgmr.msra.gmra.mrb[36].mxu1 %vm270_vm6, %v6007_v43 }
0x10df   :  { %5207 = vmatpush3.bf16.xpose.msk.msra.mxu1 %vm5672_vm7, %v5205_v49  ;;  %4860 = vmatprep.mubr.msk.f32.mxu1 %vm5550_vm0, %v5549_v0 }
0x10e0   :  { %4885 = vmatprep.subr.mxu1 %v5549_v0 }
0x10e2   :  { %4861 = vmatmul.mubr.msk.f32.gmra.mrb[38].mxu1 %vm270_vm6, %v6009_v25 }
0x10e3   :  { %4863 = vmatprep.mubr.msk.f32.mxu1 %vm5550_vm0, %v5549_v0 }
0x10e6   :  { %4864 = vmatmul.mubr.msk.f32.gmra.mrb[40].mxu1 %vm270_vm6, %v6015_v33 }
0x10e7   :  { %4886 = vmatpush3.xpose.msk.msra.mxu1 %vm270_vm6, %v2235_v50  ;;  %4887 = vmatprep.mubr.msk.f32.mxu1 %vm5550_vm0, %v5549_v0 }
0x10e8   :  { %4911 = vmatprep.subr.mxu1 %v5549_v0 }
0x10ea   :  { %4888 = vmatmul.mubr.msk.f32.vlgmr.msra.gmra.mrb[42].mxu1 %vm270_vm6, %v2225_v52 }
0x10eb   :  { %4890 = vmatprep.mubr.msk.f32.mxu1 %vm5550_vm0, %v5549_v0 }
0x10ee   :  { %4891 = vmatmul.mubr.msk.f32.gmra.mrb[44].mxu1 %vm270_vm6, %v2227_v53 }
0x10ef   :  { %4893 = vmatprep.mubr.msk.f32.mxu1 %vm5550_vm0, %v5549_v0 }
0x10f2   :  { %4894 = vmatmul.mubr.msk.f32.gmra.mrb[46].mxu1 %vm270_vm6, %v2229_v54 }
0x10f3   :  { %4913 = vmatprep.mubr.msk.f32.mxu1 %vm5550_vm0, %v5549_v0 }
0x11b1   :  { %v2078_v62 = vpop.f32.mrb[36].mxu1 }
0x11b2   :  { %v2079_v56 = vadd.f32 %v6062_v55, %v2078_v62  ;;  %v4859_v57 = vpop.f32.mrb[37].mxu1 }
0x11b4   :  { %v2092_v58 = vsel %vm363_vm8, %v2079_v56, -inf }
0x11b5   :  { %2093 = vmax.xlane.f32.xlu0 %v2092_v58  ;;  %v2083_v59 = vpop.f32.mrb[38].mxu1 }
0x11b6   :  { %v2084_v60 = vadd.f32 %v6066_v3, %v2083_v59  ;;  %v4862_v61 = vpop.f32.mrb[39].mxu1 }
0x11b8   :  { %v2095_v63 = vsel %vm363_vm8, %v2084_v60, -inf }
0x11b9   :  { %2096 = vmax.xlane.f32.xlu1 %v2095_v63  ;;  %v2088_v8 = vpop.f32.mrb[40].mxu1 }
0x11ba   :  { %v2089_v4 = vadd.f32 %v6070_v1, %v2088_v8  ;;  %v4865_v32 = vpop.f32.mrb[41].mxu1 }
0x11bc   :  { %v2098_v6 = vsel %vm370_vm9, %v2089_v4, -inf }
0x11bd   :  { %2099 = vmax.xlane.f32.xlu0 %v2098_v6  ;;  %v2314_v7 = vpop.f32.mrb[42].mxu1 }
0x11be   :  { %v2315_v41 = vadd.f32 %v6062_v55, %v2314_v7  ;;  %v4889_v10 = vpop.f32.mrb[43].mxu1 }
0x11c0   :  { %v2328_v34 = vsel %vm363_vm8, %v2315_v41, -inf }
0x11c1   :  { %2329 = vmax.xlane.f32.xlu0 %v2328_v34  ;;  %v2319_v21 = vpop.f32.mrb[44].mxu1 }
0x11c2   :  { %v2320_v12 = vadd.f32 %v6066_v3, %v2319_v21  ;;  %v4892_v13 = vpop.f32.mrb[45].mxu1 }
0x11c4   :  { %v2331_v14 = vsel %vm363_vm8, %v2320_v12, -inf }
0x11c5   :  { %2332 = vmax.xlane.f32.xlu1 %v2331_v14  ;;  %v2324_v38 = vpop.f32.mrb[46].mxu1 }
0x11c6   :  { %v2325_v19 = vadd.f32 %v6070_v1, %v2324_v38  ;;  %v4895_v20 = vpop.f32.mrb[47].mxu1 }
0x11c8   :  { %v2334_v22 = vsel %vm370_vm9, %v2325_v19, -inf }
0x11c9   :  { %2335 = vmax.xlane.f32.xlu0 %v2334_v22 }
0x11d6   :  { %2129 = vrot.lane.b32.xlu1 %v6015_v33, %s5556_s6 }
0x11df   :  { %5371 = vrot.lane.b32.xlu0 %v6013_v29, %s5556_s6 }
0x1242   :  { %v2094_v47 = vpop.xlane.xlu0 %2093 }
0x1243   :  { %v2101_v23 = vsub.f32 %v2079_v56, %v2094_v47 }
0x1245   :  { %v2104_v24 = vmul.f32 1.442695, %v2101_v23 }
0x1246   :  { %v2097_v28 = vpop.xlane.xlu1 %2096 }
0x1247   :  { %5460 = vpow2.f32 %v2104_v24  ;;  %v2102_v31 = vsub.f32 %v2084_v60, %v2097_v28 }
0x1249   :  { %v2106_v35 = vmul.f32 1.442695, %v2102_v31 }
0x124a   :  { %v2100_v36 = vpop.xlane.xlu0 %2099 }
0x124b   :  { %5462 = vpow2.f32 %v2106_v35  ;;  %v2103_v37 = vsub.f32 %v2089_v4, %v2100_v36 }
0x124d   :  { %v2108_v39 = vmul.f32 1.442695, %v2103_v37 }
0x124e   :  { %v2330_v42 = vpop.xlane.xlu0 %2329 }
0x124f   :  { %5464 = vpow2.f32 %v2108_v39  ;;  %v2337_v44 = vsub.f32 %v2315_v41, %v2330_v42 }
0x1251   :  { %v5461_v45 = vpop.eup %5460  ;;  %v2340_v46 = vmul.f32 1.442695, %v2337_v44 }
0x1252   :  { %v2333_v48 = vpop.xlane.xlu1 %2332  ;;  %v2110_v49 = vsel %vm363_vm8, %v5461_v45, 0.0 }
0x1253   :  { %5466 = vpow2.f32 %v2340_v46  ;;  %v2338_v50 = vsub.f32 %v2320_v12, %v2333_v48  ;;  %2111 = vadd.xlane.f32.xlu1 %v2110_v49 }
0x1255   :  { %v5463_v52 = vpop.eup %5462  ;;  %v2342_v53 = vmul.f32 1.442695, %v2338_v50  ;;  %v1885_v50 = vld [vmem:[#allocation2 + $0x130] sm:$0xff] }
0x1256   :  { %v2336_v54 = vpop.xlane.xlu0 %2335  ;;  %v2113_v62 = vsel %vm363_vm8, %v5463_v52, 0.0  ;;  %v2130_v7 = vpop.permute.xlu1 %2129 }
0x1257   :  { %5468 = vpow2.f32 %v2342_v53  ;;  %v2339_v56 = vsub.f32 %v2325_v19, %v2336_v54  ;;  %2114 = vadd.xlane.f32.xlu0 %v2113_v62 }
0x1259   :  { %v5465_v57 = vpop.eup %5464  ;;  %v2344_v58 = vmul.f32 1.442695, %v2339_v56 }
0x125a   :  { %v5372_v59 = vpop.permute.xlu0 %5371  ;;  %v2116_v60 = vsel %vm370_vm9, %v5465_v57, 0.0 }
0x125b   :  { %5470 = vpow2.f32 %v2344_v58  ;;  %v5374_v61 = vunpack.i.h.bf16 %v5372_v59  ;;  %v5373_v63 = vunpack.i.l.bf16 %v5372_v59  ;;  %2117 = vadd.xlane.f32.xlu1 %v2116_v60 }
0x125d   :  { %v5467_v8 = vpop.eup %5466  ;;  %v5202_v4 = vpack.c.bf16 %v5374_v61, %v5373_v63 }
0x125e   :  { %v2346_v32 = vsel %vm363_vm8, %v5467_v8, 0.0 }
0x125f   :  { %2347 = vadd.xlane.f32.xlu0 %v2346_v32  ;;  %5203 = vmatpush3.bf16.msra.mxu0 %v5202_v4 }
0x1260   :  { %4870 = vmatprep.subr.mxu0 %v5549_v0 }
0x1261   :  { %v5469_v6 = vpop.eup %5468 }
0x1262   :  { %v2349_v41 = vsel %vm363_vm8, %v5469_v6, 0.0 }
0x1263   :  { %2350 = vadd.xlane.f32.xlu1 %v2349_v41  ;;  %4871 = vmatpush3.msk.msra.mxu0 %vm142_vm4, %v2130_v7 }
0x1264   :  { %5208 = vmatprep.subr.bf16.mxu0 %v5552_v9 }
0x1265   :  { %v5471_v10 = vpop.eup %5470 }
0x1266   :  { %v2352_v34 = vsel %vm370_vm9, %v5471_v10, 0.0 }
0x1267   :  { %2353 = vadd.xlane.f32.xlu1 %v2352_v34 }
0x1275   :  { %5376 = vrot.lane.b32.xlu0 %v6013_v29, %s5557_s7 }
0x1278   :  { %2365 = vrot.lane.b32.xlu1 %v6015_v33, %s5557_s7 }
0x1279   :  { %5381 = vrot.lane.b32.xlu0 %v6013_v29, %s5558_s8 }
0x127c   :  { %2648 = vrot.lane.b32.xlu1 %v6015_v33, %s5558_s8 }
0x127d   :  { %2638 = vrot.lane.b32.xlu0 %v6007_v43, %s5559_s9 }
0x1280   :  { %2640 = vrot.lane.b32.xlu1 %v6009_v25, %s5559_s9 }
0x1281   :  { %2642 = vrot.lane.b32.xlu0 %v6015_v33, %s5559_s9 }
0x12e0   :  { %v2112_v21 = vpop.xlane.xlu1 %2111 }
0x12e1   :  { %5472 = vrcp.f32 %v2112_v21 }
0x12e4   :  { %v2115_v12 = vpop.xlane.xlu0 %2114 }
0x12e5   :  { %5474 = vrcp.f32 %v2115_v12 }
0x12e8   :  { %v2118_v13 = vpop.xlane.xlu1 %2117 }
0x12e9   :  { %5476 = vrcp.f32 %v2118_v13 }
0x12eb   :  { %v5473_v14 = vpop.eup %5472 }
0x12ec   :  { %v2122_v38 = vmul.f32 %v5473_v14, %v5461_v45  ;;  %v2348_v19 = vpop.xlane.xlu0 %2347 }
0x12ed   :  { %5478 = vrcp.f32 %v2348_v19 }
0x12ee   :  { %4873 = vmatmul.mubr.msk.f32.vlgmr.msra.gmra.mrb[62].mxu0 %vm363_vm8, %v2122_v38 }
0x12ef   :  { %v5475_v20 = vpop.eup %5474  ;;  %4875 = vmatprep.mubr.msk.f32.mxu0 %vm5550_vm0, %v5549_v0 }
0x12f0   :  { %v2351_v22 = vpop.xlane.xlu1 %2350  ;;  %v5377_v47 = vpop.permute.xlu0 %5376  ;;  %v2123_v23 = vmul.f32 %v5475_v20, %v5463_v52  ;;  %v1886_v52 = vld [vmem:[#allocation2 + $0x138] sm:$0xff] }
0x12f1   :  { %5480 = vrcp.f32 %v2351_v22  ;;  %v5379_v24 = vunpack.i.h.bf16 %v5377_v47  ;;  %v5378_v28 = vunpack.i.l.bf16 %v5377_v47  ;;  %4912 = vmatpush3.msra.mxu1 %v1886_v52 }
0x12f2   :  { %4876 = vmatmul.mubr.msk.f32.gmra.mrb[64].mxu0 %vm363_vm8, %v2123_v23  ;;  %5211 = vmatprep.subr.bf16.mxu1 %v5552_v9 }
0x12f3   :  { %v5477_v31 = vpop.eup %5476  ;;  %v5209_v35 = vpack.c.bf16 %v5379_v24, %v5378_v28  ;;  %4878 = vmatprep.mubr.msk.f32.mxu0 %vm5550_vm0, %v5549_v0 }
0x12f4   :  { %v2354_v36 = vpop.xlane.xlu1 %2353  ;;  %v2124_v37 = vmul.f32 %v5477_v31, %v5465_v57  ;;  %v5382_v56 = vpop.permute.xlu0 %5381 }
0x12f5   :  { %5482 = vrcp.f32 %v2354_v36  ;;  %5210 = vmatpush3.bf16.msra.mxu0 %v5209_v35  ;;  %v5384_v58 = vunpack.i.h.bf16 %v5382_v56  ;;  %v5383_v59 = vunpack.i.l.bf16 %v5382_v56 }
0x12f6   :  { %4879 = vmatmul.mubr.msk.f32.gmra.mrb[66].mxu0 %vm363_vm8, %v2124_v37  ;;  %4900 = vmatprep.subr.mxu0 %v5549_v0 }
0x12f7   :  { %v5479_v39 = vpop.eup %5478  ;;  %4902 = vmatprep.mubr.msk.f32.mxu0 %vm5550_vm0, %v5549_v0  ;;  %v5212_v63 = vpack.c.bf16 %v5384_v58, %v5383_v59 }
0x12f8   :  { %v2358_v42 = vmul.f32 %v5479_v39, %v5467_v8  ;;  %v2366_v44 = vpop.permute.xlu1 %2365  ;;  %v2639_v34 = vpop.permute.xlu0 %2638 }
0x12f9   :  { %4901 = vmatpush3.msk.msra.mxu0 %vm142_vm4, %v2366_v44 }
0x12fa   :  { %4903 = vmatmul.mubr.msk.f32.vlgmr.msra.gmra.mrb[68].mxu0 %vm363_vm8, %v2358_v42  ;;  %4922 = vmatprep.subr.mxu0 %v5549_v0 }
0x12fb   :  { %v5481_v45 = vpop.eup %5480  ;;  %4905 = vmatprep.mubr.msk.f32.mxu0 %vm5550_vm0, %v5549_v0  ;;  %4923 = vmatpush3.msra.mxu0 %v1885_v50 }
0x12fc   :  { %v2359_v46 = vmul.f32 %v5481_v45, %v5469_v6  ;;  %5215 = vmatprep.subr.bf16.mxu0 %v5552_v9  ;;  %v2649_v41 = vpop.permute.xlu1 %2648  ;;  %v2643_v12 = vpop.permute.xlu0 %2642 }
0x12fe   :  { %4906 = vmatmul.mubr.msk.f32.gmra.mrb[70].mxu0 %vm363_vm8, %v2359_v46 }
0x12ff   :  { %v5483_v48 = vpop.eup %5482  ;;  %4908 = vmatprep.mubr.msk.f32.mxu0 %vm5550_vm0, %v5549_v0 }
0x1300   :  { %v2360_v49 = vmul.f32 %v5483_v48, %v5471_v10  ;;  %v2641_v21 = vpop.permute.xlu1 %2640 }
0x1302   :  { %4909 = vmatmul.mubr.msk.f32.gmra.mrb[72].mxu0 %vm363_vm8, %v2360_v49 }
0x1303   :  { %4924 = vmatprep.mubr.msk.f32.mxu0 %vm5550_vm0, %v5549_v0 }
0x13c1   :  { %v2210_v53 = vpop.f32.mrb[62].mxu0 }
0x13c2   :  { %v4874_v54 = vpop.f32.mrb[63].mxu0  ;;  %4925 = vmatmul.mubr.msk.f32.vlgmr.msra.gmra.mrb[74].mxu0 %vm270_vm6, %v2210_v53 }
0x13c3   :  { %4927 = vmatprep.mubr.msk.f32.mxu0 %vm5550_vm0, %v5549_v0 }
0x13c5   :  { %v2215_v62 = vpop.f32.mrb[64].mxu0 }
0x13c6   :  { %v4877_v57 = vpop.f32.mrb[65].mxu0  ;;  %4928 = vmatmul.mubr.msk.f32.gmra.mrb[76].mxu0 %vm270_vm6, %v2215_v62 }
0x13c7   :  { %4930 = vmatprep.mubr.msk.f32.mxu0 %vm5550_vm0, %v5549_v0 }
0x13c9   :  { %v2220_v60 = vpop.f32.mrb[66].mxu0 }
0x13ca   :  { %v4880_v61 = vpop.f32.mrb[67].mxu0  ;;  %4931 = vmatmul.mubr.msk.f32.gmra.mrb[78].mxu0 %vm270_vm6, %v2220_v60 }
0x13cb   :  { %4954 = vmatprep.mubr.msk.f32.mxu0 %vm5550_vm0, %v5549_v0 }
0x13cd   :  { %v2446_v8 = vpop.f32.mrb[68].mxu0 }
0x13ce   :  { %v4904_v4 = vpop.f32.mrb[69].mxu0  ;;  %4914 = vmatmul.mubr.msk.f32.vlgmr.msra.gmra.mrb[48].mxu1 %vm270_vm6, %v2446_v8 }
0x13cf   :  { %5214 = vmatpush3.bf16.xpose.msk.msra.mxu1 %vm5672_vm7, %v5212_v63  ;;  %4916 = vmatprep.mubr.msk.f32.mxu1 %vm5550_vm0, %v5549_v0 }
0x13d0   :  { %4937 = vmatprep.subr.mxu1 %v5549_v0 }
0x13d1   :  { %v2451_v32 = vpop.f32.mrb[70].mxu0 }
0x13d2   :  { %v4907_v6 = vpop.f32.mrb[71].mxu0  ;;  %4917 = vmatmul.mubr.msk.f32.gmra.mrb[50].mxu1 %vm270_vm6, %v2451_v32 }
0x13d3   :  { %4919 = vmatprep.mubr.msk.f32.mxu1 %vm5550_vm0, %v5549_v0 }
0x13d5   :  { %v2456_v7 = vpop.f32.mrb[72].mxu0 }
0x13d6   :  { %v4910_v10 = vpop.f32.mrb[73].mxu0  ;;  %4920 = vmatmul.mubr.msk.f32.gmra.mrb[52].mxu1 %vm270_vm6, %v2456_v7 }
0x13d7   :  { %4938 = vmatpush3.xpose.msk.msra.mxu1 %vm270_vm6, %v2649_v41  ;;  %4939 = vmatprep.mubr.msk.f32.mxu1 %vm5550_vm0, %v5549_v0 }
0x13d8   :  { %4963 = vmatprep.subr.mxu1 %v5549_v0 }
0x13da   :  { %4940 = vmatmul.mubr.msk.f32.vlgmr.msra.gmra.mrb[54].mxu1 %vm270_vm6, %v2639_v34 }
0x13db   :  { %4942 = vmatprep.mubr.msk.f32.mxu1 %vm5550_vm0, %v5549_v0 }
0x13de   :  { %4943 = vmatmul.mubr.msk.f32.gmra.mrb[56].mxu1 %vm270_vm6, %v2641_v21 }
0x13df   :  { %4945 = vmatprep.mubr.msk.f32.mxu1 %vm5550_vm0, %v5549_v0 }
0x13e2   :  { %4946 = vmatmul.mubr.msk.f32.gmra.mrb[58].mxu1 %vm270_vm6, %v2643_v12 }
0x13e3   :  { %4965 = vmatprep.mubr.msk.f32.mxu1 %vm5550_vm0, %v5549_v0 }
0x1495   :  { %v2624_v13 = vpop.f32.mrb[74].mxu0 }
0x1496   :  { %v4926_v14 = vpop.f32.mrb[75].mxu0 }
0x1499   :  { %v2629_v38 = vpop.f32.mrb[76].mxu0 }
0x149a   :  { %v4929_v19 = vpop.f32.mrb[77].mxu0 }
0x149d   :  { %v2634_v20 = vpop.f32.mrb[78].mxu0 }
0x149e   :  { %v4932_v22 = vpop.f32.mrb[79].mxu0 }
0x14a1   :  { %v2535_v47 = vpop.f32.mrb[48].mxu1 }
0x14a2   :  { %v6162_v23 = vadd.f32 %v2624_v13, %v2535_v47  ;;  %v4915_v24 = vpop.f32.mrb[49].mxu1 }
0x14a5   :  { %v2540_v28 = vpop.f32.mrb[50].mxu1 }
0x14a6   :  { %v6164_v31 = vadd.f32 %v2629_v38, %v2540_v28  ;;  %v4918_v35 = vpop.f32.mrb[51].mxu1 }
0x14a9   :  { %v2545_v36 = vpop.f32.mrb[52].mxu1 }
0x14aa   :  { %v6166_v37 = vadd.f32 %v2634_v20, %v2545_v36  ;;  %v4921_v39 = vpop.f32.mrb[53].mxu1 }
0x14ad   :  { %v2728_v42 = vpop.f32.mrb[54].mxu1 }
0x14ae   :  { %v2729_v44 = vadd.f32 %v6062_v55, %v2728_v42  ;;  %v4941_v45 = vpop.f32.mrb[55].mxu1 }
0x14b0   :  { %v2742_v46 = vsel %vm363_vm8, %v2729_v44, -inf }
0x14b1   :  { %2743 = vmax.xlane.f32.xlu1 %v2742_v46  ;;  %v2733_v48 = vpop.f32.mrb[56].mxu1 }
0x14b2   :  { %v2734_v49 = vadd.f32 %v6066_v3, %v2733_v48  ;;  %v4944_v50 = vpop.f32.mrb[57].mxu1 }
0x14b4   :  { %v2745_v52 = vsel %vm363_vm8, %v2734_v49, -inf }
0x14b5   :  { %2746 = vmax.xlane.f32.xlu0 %v2745_v52  ;;  %v2738_v53 = vpop.f32.mrb[58].mxu1 }
0x14b6   :  { %v2739_v54 = vadd.f32 %v6070_v1, %v2738_v53  ;;  %v4947_v62 = vpop.f32.mrb[59].mxu1 }
0x14b8   :  { %v2748_v56 = vsel %vm370_vm9, %v2739_v54, -inf }
0x14b9   :  { %2749 = vmax.xlane.f32.xlu0 %v2748_v56 }
0x153e   :  { %v2744_v57 = vpop.xlane.xlu1 %2743 }
0x153f   :  { %v2751_v58 = vsub.f32 %v2729_v44, %v2744_v57 }
0x1541   :  { %v2754_v59 = vmul.f32 1.442695, %v2751_v58 }
0x1542   :  { %v2747_v60 = vpop.xlane.xlu0 %2746 }
0x1543   :  { %5484 = vpow2.f32 %v2754_v59  ;;  %v2752_v61 = vsub.f32 %v2734_v49, %v2747_v60  ;;  %v1887_v49 = vld [vmem:[#allocation2 + $0x140] sm:$0xff] }
0x1544   :  { %4964 = vmatpush3.msra.mxu1 %v1887_v49 }
0x1545   :  { %v2756_v63 = vmul.f32 1.442695, %v2752_v61  ;;  %5222 = vmatprep.subr.bf16.mxu1 %v5552_v9 }
0x1546   :  { %v2750_v7 = vpop.xlane.xlu0 %2749 }
0x1547   :  { %5486 = vpow2.f32 %v2756_v63  ;;  %v2753_v41 = vsub.f32 %v2739_v54, %v2750_v7 }
0x1549   :  { %v2758_v10 = vmul.f32 1.442695, %v2753_v41 }
0x154b   :  { %5488 = vpow2.f32 %v2758_v10 }
0x154d   :  { %v5485_v8 = vpop.eup %5484 }
0x154e   :  { %v2760_v4 = vsel %vm363_vm8, %v5485_v8, 0.0 }
0x154f   :  { %2761 = vadd.xlane.f32.xlu1 %v2760_v4 }
0x1551   :  { %v5487_v32 = vpop.eup %5486 }
0x1552   :  { %v2763_v6 = vsel %vm363_vm8, %v5487_v32, 0.0 }
0x1553   :  { %2764 = vadd.xlane.f32.xlu0 %v2763_v6 }
0x1555   :  { %v5489_v34 = vpop.eup %5488 }
0x1556   :  { %v2766_v21 = vsel %vm370_vm9, %v5489_v34, 0.0 }
0x1560   :  { %2779 = vrot.lane.b32.xlu1 %v6015_v33, %s5560_s10 }
0x1564   :  { %5391 = vrot.lane.b32.xlu1 %v6013_v29, %s5561_s11 }
0x1569   :  { %5386 = vrot.lane.b32.xlu0 %v6013_v29, %s5560_s10 }
0x156d   :  { %2976 = vrot.lane.b32.xlu0 %v6015_v33, %s5561_s11 }
0x1571   :  { %2968 = vrot.lane.b32.xlu0 %v6009_v25, %s5562_s12 }
0x1588   :  { %2767 = vadd.xlane.f32.xlu1 %v2766_v21 }
0x1599   :  { %2966 = vrot.lane.b32.xlu1 %v6007_v43, %s5562_s12 }
0x15dc   :  { %v2762_v12 = vpop.xlane.xlu1 %2761 }
0x15dd   :  { %5490 = vrcp.f32 %v2762_v12 }
0x15e0   :  { %v2765_v13 = vpop.xlane.xlu0 %2764  ;;  %v2780_v38 = vpop.permute.xlu1 %2779 }
0x15e1   :  { %5492 = vrcp.f32 %v2765_v13 }
0x15e4   :  { %v5387_v14 = vpop.permute.xlu0 %5386  ;;  %v5392_v47 = vpop.permute.xlu1 %5391 }
0x15e5   :  { %v5389_v19 = vunpack.i.h.bf16 %v5387_v14  ;;  %v5388_v20 = vunpack.i.l.bf16 %v5387_v14  ;;  %v5394_v35 = vunpack.i.h.bf16 %v5392_v47  ;;  %v5393_v43 = vunpack.i.l.bf16 %v5392_v47 }
0x15e7   :  { %v5216_v22 = vpack.c.bf16 %v5389_v19, %v5388_v20  ;;  %v5491_v25 = vpop.eup %5490  ;;  %v5219_v39 = vpack.c.bf16 %v5394_v35, %v5393_v43 }
0x15e8   :  { %v2772_v24 = vmul.f32 %v5491_v25, %v5485_v8  ;;  %v2977_v42 = vpop.permute.xlu0 %2976 }
0x15e9   :  { %5217 = vmatpush3.bf16.msra.mxu0 %v5216_v22 }
0x15ea   :  { %4952 = vmatprep.subr.mxu0 %v5549_v0 }
0x15eb   :  { %v5493_v28 = vpop.eup %5492 }
0x15ec   :  { %v2773_v36 = vmul.f32 %v5493_v28, %v5487_v32  ;;  %v2969_v51 = vpop.permute.xlu0 %2968 }
0x15ed   :  { %4953 = vmatpush3.msk.msra.mxu0 %vm142_vm4, %v2780_v38 }
0x15ee   :  { %4955 = vmatmul.mubr.msk.f32.vlgmr.msra.gmra.mrb[80].mxu0 %vm363_vm8, %v2772_v24  ;;  %5218 = vmatprep.subr.bf16.mxu0 %v5552_v9 }
0x15ef   :  { %4957 = vmatprep.mubr.msk.f32.mxu0 %vm5550_vm0, %v5549_v0 }
0x15f2   :  { %4958 = vmatmul.mubr.msk.f32.gmra.mrb[82].mxu0 %vm363_vm8, %v2773_v36 }
0x15f3   :  { %4960 = vmatprep.mubr.msk.f32.mxu0 %vm5550_vm0, %v5549_v0 }
0x15f4   :  { %5221 = vmatpush3.bf16.xpose.msk.msra.mxu0 %vm5672_vm7, %v5219_v39 }
0x15f5   :  { %4978 = vmatprep.subr.mxu0 %v5549_v0 }
0x15fc   :  { %4979 = vmatpush3.xpose.msk.msra.mxu0 %vm270_vm6, %v2977_v42 }
0x15fd   :  { %5004 = vmatprep.subr.mxu0 %v5549_v0 }
0x1615   :  { %v2768_v44 = vpop.xlane.xlu1 %2767 }
0x1616   :  { %5494 = vrcp.f32 %v2768_v44 }
0x1619   :  { %v2967_v48 = vpop.permute.xlu1 %2966 }
0x1620   :  { %v5495_v45 = vpop.eup %5494 }
0x1621   :  { %v2774_v46 = vmul.f32 %v5495_v45, %v5489_v34 }
0x1623   :  { %4961 = vmatmul.mubr.msk.f32.gmra.mrb[84].mxu0 %vm363_vm8, %v2774_v46 }
0x1624   :  { %4980 = vmatprep.mubr.msk.f32.mxu0 %vm5550_vm0, %v5549_v0 }
0x1627   :  { %4981 = vmatmul.mubr.msk.f32.vlgmr.msra.gmra.mrb[86].mxu0 %vm270_vm6, %v2967_v48 }
0x1628   :  { %4983 = vmatprep.mubr.msk.f32.mxu0 %vm5550_vm0, %v5549_v0 }
0x162b   :  { %4984 = vmatmul.mubr.msk.f32.gmra.mrb[88].mxu0 %vm270_vm6, %v2969_v51 }
0x162c   :  { %4986 = vmatprep.mubr.msk.f32.mxu0 %vm5550_vm0, %v5549_v0 }
0x16c1   :  { %v2860_v50 = vpop.f32.mrb[80].mxu0 }
0x16c2   :  { %v4956_v52 = vpop.f32.mrb[81].mxu0  ;;  %4966 = vmatmul.mubr.msk.f32.vlgmr.msra.gmra.mrb[60].mxu1 %vm270_vm6, %v2860_v50 }
0x16c3   :  { %4968 = vmatprep.mubr.msk.f32.mxu1 %vm5550_vm0, %v5549_v0 }
0x16c5   :  { %v2865_v53 = vpop.f32.mrb[82].mxu0 }
0x16c6   :  { %v4959_v54 = vpop.f32.mrb[83].mxu0  ;;  %4969 = vmatmul.mubr.msk.f32.gmra.mrb[62].mxu1 %vm270_vm6, %v2865_v53 }
0x16c7   :  { %4971 = vmatprep.mubr.msk.f32.mxu1 %vm5550_vm0, %v5549_v0 }
0x16f6   :  { %v2870_v62 = vpop.f32.mrb[84].mxu0 }
0x16f7   :  { %v4962_v56 = vpop.f32.mrb[85].mxu0  ;;  %4972 = vmatmul.mubr.msk.f32.gmra.mrb[64].mxu1 %vm270_vm6, %v2870_v62 }
0x16f8   :  { %4995 = vmatprep.mubr.msk.f32.mxu1 %vm5550_vm0, %v5549_v0 }
0x16fa   :  { %v3056_v57 = vpop.f32.mrb[86].mxu0 }
0x16fb   :  { %v3057_v58 = vadd.f32 %v6062_v55, %v3056_v57  ;;  %v4982_v59 = vpop.f32.mrb[87].mxu0 }
0x16fc   :  { %v6265_v59 = vld [vmem:[#allocation2 + $0x1b0] sm:$0x7f] }
0x16fd   :  { %v3070_v60 = vsel %vm363_vm8, %v3057_v58, -inf }
0x16fe   :  { %3071 = vmax.xlane.f32.xlu1 %v3070_v60  ;;  %v3061_v61 = vpop.f32.mrb[88].mxu0  ;;  %v6269_v60 = vrot.slane %v6265_v59, %v5622_v16 }
0x16ff   :  { %v3062_v63 = vadd.f32 %v6066_v3, %v3061_v61  ;;  %v4985_v8 = vpop.f32.mrb[89].mxu0 }
0x1701   :  { %v3073_v4 = vsel %vm363_vm8, %v3062_v63, -inf }
0x1702   :  { %3074 = vmax.xlane.f32.xlu0 %v3073_v4 }
0x178b   :  { %v3072_v32 = vpop.xlane.xlu1 %3071 }
0x178c   :  { %v3079_v6 = vsub.f32 %v3057_v58, %v3072_v32 }
0x178e   :  { %v3082_v7 = vmul.f32 1.442695, %v3079_v6 }
0x178f   :  { %v3075_v41 = vpop.xlane.xlu0 %3074 }
0x1790   :  { %5496 = vpow2.f32 %v3082_v7  ;;  %v3080_v10 = vsub.f32 %v3062_v63, %v3075_v41 }
0x1792   :  { %v3084_v34 = vmul.f32 1.442695, %v3080_v10 }
0x1794   :  { %5498 = vpow2.f32 %v3084_v34 }
0x1795   :  { %v2949_v55 = vpop.f32.mrb[60].mxu1 }
0x1796   :  { %v6227_v21 = vadd.f32 %v2949_v55, %v6162_v23  ;;  %v4967_v12 = vpop.f32.mrb[61].mxu1  ;;  %v1888_v23 = vld [vmem:[#allocation2 + $0x148] sm:$0xff] }
0x1797   :  { %5005 = vmatpush3.msra.mxu0 %v1888_v23 }
0x1798   :  { %5231 = vmatprep.subr.bf16.mxu0 %v5552_v9 }
0x1799   :  { %v2954_v13 = vpop.f32.mrb[62].mxu1 }
0x179a   :  { %v5497_v14 = vpop.eup %5496  ;;  %v6230_v3 = vadd.f32 %v2954_v13, %v6164_v31  ;;  %v4970_v38 = vpop.f32.mrb[63].mxu1 }
0x179b   :  { %v3088_v19 = vsel %vm363_vm8, %v5497_v14, 0.0 }
0x179c   :  { %3089 = vadd.xlane.f32.xlu0 %v3088_v19 }
0x179e   :  { %v5499_v20 = vpop.eup %5498 }
0x179f   :  { %v3091_v22 = vsel %vm363_vm8, %v5499_v20, 0.0 }
0x17a0   :  { %3092 = vadd.xlane.f32.xlu1 %v3091_v22 }
0x17b1   :  { %3107 = vrot.lane.b32.xlu1 %v6015_v33, %s5563_s13 }
0x17b2   :  { %5396 = vrot.lane.b32.xlu0 %v6013_v29, %s5563_s13 }
0x17b5   :  { %2970 = vrot.lane.b32.xlu1 %v6015_v33, %s5562_s12 }
0x17ca   :  { %v2959_v31 = vpop.f32.mrb[64].mxu1 }
0x17cb   :  { %v6242_v25 = vadd.f32 %v2959_v31, %v6166_v37  ;;  %v4973_v47 = vpop.f32.mrb[65].mxu1 }
0x17cc   :  { %v1889_v47 = vld [vmem:[#allocation2 + $0x150] sm:$0xff] }
0x1829   :  { %v3090_v24 = vpop.xlane.xlu0 %3089 }
0x182a   :  { %5500 = vrcp.f32 %v3090_v24  ;;  %v1890_v24 = vld [vmem:[#allocation2 + $0x158] sm:$0xff] }
0x182d   :  { %v3093_v28 = vpop.xlane.xlu1 %3092  ;;  %v5397_v35 = vpop.permute.xlu0 %5396 }
0x182e   :  { %5502 = vrcp.f32 %v3093_v28  ;;  %v5399_v43 = vunpack.i.h.bf16 %v5397_v35  ;;  %v5398_v36 = vunpack.i.l.bf16 %v5397_v35  ;;  %v5226_v28 = vpack.c.bf16 %v1890_v24, %v1889_v47  ;;  %v1891_v35 = vld [vmem:[#allocation2 + $0x160] sm:$0xff] }
0x1830   :  { %v5223_v29 = vpack.c.bf16 %v5399_v43, %v5398_v36  ;;  %v1892_v43 = vld [vmem:[#allocation2 + $0x168] sm:$0xff] }
0x1831   :  { %v3108_v39 = vpop.permute.xlu1 %3107  ;;  %v5229_v36 = vpack.c.bf16 %v1892_v43, %v1891_v35 }
0x1832   :  { %5224 = vmatpush3.bf16.msra.mxu1 %v5223_v29  ;;  %v1893_v29 = vld [vmem:[#allocation2 + $0x170] sm:$0xff] }
0x1833   :  { %4993 = vmatprep.subr.mxu1 %v5549_v0 }
0x1834   :  { %v5501_v33 = vpop.eup %5500 }
0x1835   :  { %v3100_v42 = vmul.f32 %v5501_v33, %v5497_v14  ;;  %v2971_v44 = vpop.permute.xlu1 %2970  ;;  %v1895_v33 = vld [vmem:[#allocation2 + $0x180] sm:$0xff] }
0x1836   :  { %4987 = vmatmul.mubr.msk.f32.gmra.mrb[90].mxu0 %vm270_vm6, %v2971_v44  ;;  %4994 = vmatpush3.msk.msra.mxu1 %vm142_vm4, %v3108_v39  ;;  %v1894_v39 = vld [vmem:[#allocation2 + $0x178] sm:$0xff]  ;;  %v1896_v44 = vld [vmem:[#allocation2 + $0x188] sm:$0xff] }
0x1837   :  { %4996 = vmatmul.mubr.msk.f32.vlgmr.msra.gmra.mrb[66].mxu1 %vm363_vm8, %v3100_v42  ;;  %5006 = vmatprep.mubr.msk.f32.mxu0 %vm5550_vm0, %v5549_v0  ;;  %v5232_v42 = vpack.c.bf16 %v1894_v39, %v1893_v29 }
0x1838   :  { %v5503_v37 = vpop.eup %5502  ;;  %4998 = vmatprep.mubr.msk.f32.mxu1 %vm5550_vm0, %v5549_v0  ;;  %5225 = vmatprep.subr.bf16.mxu1 %v5552_v9 }
0x1839   :  { %v3101_v45 = vmul.f32 %v5503_v37, %v5499_v20  ;;  %5227 = vmatpush3.bf16.msra.mxu1 %v5226_v28  ;;  %v5235_v37 = vpack.c.bf16 %v1896_v44, %v1895_v33 }
0x183a   :  { %5228 = vmatprep.subr.bf16.mxu1 %v5552_v9 }
0x183b   :  { %4999 = vmatmul.mubr.msk.f32.gmra.mrb[68].mxu1 %vm363_vm8, %v3101_v45 }
0x183c   :  { %5001 = vmatprep.mubr.msk.f32.mxu1 %vm5550_vm0, %v5549_v0 }
0x183d   :  { %5230 = vmatpush3.bf16.msra.mxu1 %v5229_v36 }
0x183e   :  { %5057 = vmatprep.subr.mxu1 %v5549_v0 }
0x1909   :  { %v3066_v46 = vpop.f32.mrb[90].mxu0 }
0x190a   :  { %v3067_v48 = vadd.f32 %v6070_v1, %v3066_v46  ;;  %v4988_v51 = vpop.f32.mrb[91].mxu0  ;;  %v3188_v49 = vpop.f32.mrb[66].mxu1 }
0x190b   :  { %v4997_v50 = vpop.f32.mrb[67].mxu1  ;;  %5007 = vmatmul.mubr.msk.f32.vlgmr.msra.gmra.mrb[92].mxu0 %vm270_vm6, %v3188_v49 }
0x190c   :  { %v3076_v52 = vsel %vm370_vm9, %v3067_v48, -inf  ;;  %5009 = vmatprep.mubr.msk.f32.mxu0 %vm5550_vm0, %v5549_v0  ;;  %5233 = vmatpush3.bf16.msra.mxu0 %v5232_v42 }
0x190d   :  { %3077 = vmax.xlane.f32.xlu0 %v3076_v52  ;;  %5234 = vmatprep.subr.bf16.mxu0 %v5552_v9  ;;  %v6291_v52 = vrot.slane %v6265_v59, %v1620_v26 }
0x190e   :  { %v3193_v53 = vpop.f32.mrb[68].mxu1 }
0x190f   :  { %v5000_v54 = vpop.f32.mrb[69].mxu1  ;;  %5010 = vmatmul.mubr.msk.f32.gmra.mrb[94].mxu0 %vm270_vm6, %v3193_v53 }
0x1910   :  { %5012 = vmatprep.mubr.msk.f32.mxu0 %vm5550_vm0, %v5549_v0  ;;  %5236 = vmatpush3.bf16.msra.mxu0 %v5235_v37  ;;  %v6296_v54 = vrot.slane %v6265_v59, %v1627_v27 }
0x1911   :  { %5237 = vmatprep.subr.bf16.mxu0 %v5552_v9 }
0x199a   :  { %v3078_v62 = vpop.xlane.xlu0 %3077 }
0x199b   :  { %v3081_v1 = vsub.f32 %v3067_v48, %v3078_v62 }
0x199d   :  { %v3086_v56 = vmul.f32 1.442695, %v3081_v1 }
0x199f   :  { %5504 = vpow2.f32 %v3086_v56 }
0x19a9   :  { %v5505_v57 = vpop.eup %5504 }
0x19aa   :  { %v3094_v58 = vsel %vm370_vm9, %v5505_v57, 0.0 }
0x19ab   :  { %3095 = vadd.xlane.f32.xlu1 %v3094_v58 }
0x19de   :  { %v3277_v61 = vpop.f32.mrb[92].mxu0 }
0x19df   :  { %v3291_v63 = vadd.f32 %v3277_v61, %v6227_v21  ;;  %v5008_v8 = vpop.f32.mrb[93].mxu0 }
0x19e0   :  { %v1897_v8 = vld [vmem:[#allocation2 + $0x190] sm:$0xff] }
0x19e1   :  { %v3298_v4 = vadd.f32 %v6269_v60, %v3291_v63 }
0x19e2   :  { %v3282_v32 = vpop.f32.mrb[94].mxu0 }
0x19e3   :  { %v3292_v6 = vadd.f32 %v3282_v32, %v6230_v3  ;;  %v5011_v7 = vpop.f32.mrb[95].mxu0  ;;  %v3301_v41 = vadd.f32 %v3298_v4, %v5989_v18  ;;  %v1898_v4 = vld [vmem:[#allocation2 + $0x198] sm:$0xff] }
0x19e4   :  { %v5238_v32 = vpack.c.bf16 %v1898_v4, %v1897_v8  ;;  %v1900_v7 = vld [vmem:[#allocation2 + $0x1a8] sm:$0xff]  ;;  %v6346_v8 = vld [vmem:[%s6424_s1] sm:$0x3]  ;;  %s5564_s1 = smov 7  }
0x19e5   :  { %v3299_v10 = vadd.f32 %v6269_v60, %v3292_v6  ;;  %v3304_v34 = vsel %vm171_vm5, %v3301_v41, 0.0  ;;  %v1899_v6 = vld [vmem:[#allocation2 + $0x1a0] sm:$0xff]  ;;  %v3666_v4 = vld [vmem:[#allocation2 + $0x1c8] sm:$0xff] }
0x19e6   :  { %3305 = vadd.xlane.f32.xlu0 %v3304_v34  ;;  %5239 = vmatpush3.bf16.msra.mxu0 %v5238_v32  ;;  %v3667_v32 = vld [vmem:[#allocation2 + $0x1d0] sm:$0xff] }
0x19e7   :  { %v3302_v16 = vadd.f32 %v3299_v10, %v5995_v40  ;;  %5240 = vmatprep.subr.bf16.mxu0 %v5552_v9 }
0x19e9   :  { %v3307_v55 = vsel %vm171_vm5, %v3302_v16, 0.0 }
0x19ea   :  { %3308 = vadd.xlane.f32.xlu0 %v3307_v55  ;;  %v6316_v55 = vrot.slane %v6265_v59, %v1634_v30 }
0x1a38   :  { %v3096_v21 = vpop.xlane.xlu1 %3095 }
0x1a39   :  { %5506 = vrcp.f32 %v3096_v21 }
0x1a43   :  { %v5507_v12 = vpop.eup %5506 }
0x1a44   :  { %v3102_v13 = vmul.f32 %v5507_v12, %v5505_v57 }
0x1a46   :  { %5002 = vmatmul.mubr.msk.f32.gmra.mrb[70].mxu1 %vm363_vm8, %v3102_v13 }
0x1a47   :  { %5023 = vmatprep.mubr.msk.f32.mxu1 %vm5550_vm0, %v5549_v0 }
0x1a73   :  { %v3306_v18 = vpop.xlane.xlu0 %3305 }
0x1a74   :  { %v3313_v14 = vmul.f32 0.03125, %v3306_v18 }
0x1a76   :  { %v3316_v3 = vsub.f32 %v3301_v41, %v3313_v14  ;;  %v5241_v41 = vpack.c.bf16 %v1900_v7, %v1899_v6  ;;  %v5247_v6 = vpack.c.bf16 %v3667_v32, %v3666_v4  ;;  %v4079_v32 = vld [vmem:[#allocation2 + $0x268] sm:$0xff] }
0x1a77   :  { %v3309_v38 = vpop.xlane.xlu0 %3308 }
0x1a78   :  { %v3314_v19 = vmul.f32 0.03125, %v3309_v38  ;;  %v3319_v20 = vmul.f32 %v3316_v3, %v3316_v3  ;;  %5242 = vmatpush3.bf16.msra.mxu0 %v5241_v41 }
0x1a7a   :  { %v3317_v22 = vsub.f32 %v3302_v16, %v3314_v19  ;;  %v3322_v40 = vsel %vm171_vm5, %v3319_v20, 0.0 }
0x1a7b   :  { %3323 = vadd.xlane.f32.xlu1 %v3322_v40 }
0x1a7c   :  { %v3320_v23 = vmul.f32 %v3317_v22, %v3317_v22 }
0x1a7e   :  { %v3325_v31 = vsel %vm171_vm5, %v3320_v23, 0.0 }
0x1a7f   :  { %3326 = vadd.xlane.f32.xlu0 %v3325_v31  ;;  %v3456_v31 = vrot.slane %v6265_v59, %v1730_v11 }
0x1b08   :  { %v3324_v45 = vpop.xlane.xlu1 %3323 }
0x1b09   :  { %v3331_v46 = vmul.f32 0.03125, %v3324_v45 }
0x1b0b   :  { %v3334_v48 = vadd.f32 1e-05, %v3331_v46 }
0x1b0c   :  { %v3327_v51 = vpop.xlane.xlu0 %3326 }
0x1b0d   :  { %5508 = vrsqrt.f32 %v3334_v48  ;;  %v3332_v49 = vmul.f32 0.03125, %v3327_v51 }
0x1b0f   :  { %v3335_v50 = vadd.f32 1e-05, %v3332_v49 }
0x1b11   :  { %5510 = vrsqrt.f32 %v3335_v50 }
0x1b17   :  { %v5509_v53 = vpop.eup %5508 }
0x1b18   :  { %v3340_v62 = vmul.f32 %v5509_v53, %v3316_v3 }
0x1b19   :  { %v3198_v1 = vpop.f32.mrb[70].mxu1 }
0x1b1a   :  { %v3347_v56 = vmul.f32 %v6291_v52, %v3340_v62  ;;  %v5003_v57 = vpop.f32.mrb[71].mxu1  ;;  %5013 = vmatmul.mubr.msk.f32.gmra.mrb[96].mxu0 %vm270_vm6, %v3198_v1 }
0x1b1b   :  { %v5511_v58 = vpop.eup %5510  ;;  %5048 = vmatprep.mubr.msk.f32.mxu0 %vm5550_vm0, %v5549_v0 }
0x1b1c   :  { %v3354_v26 = vadd.f32 %v6296_v54, %v3347_v56  ;;  %v3341_v61 = vmul.f32 %v5511_v58, %v3317_v22 }
0x1b1e   :  { %5024 = vmatmul.mubr.msk.f32.vlgmr.msra.gmra.mrb[72].mxu1 %vm171_vm5, %v3354_v26  ;;  %v3348_v63 = vmul.f32 %v6291_v52, %v3341_v61  ;;  %v3664_v61 = vld [vmem:[#allocation2 + $0x1b8] sm:$0xff] }
0x1b1f   :  { %5026 = vmatprep.mubr.msk.f32.mxu1 %vm5550_vm0, %v5549_v0 }
0x1b20   :  { %v3355_v27 = vadd.f32 %v6296_v54, %v3348_v63  ;;  %v3665_v63 = vld [vmem:[#allocation2 + $0x1c0] sm:$0xff] }
0x1b22   :  { %5027 = vmatmul.mubr.msk.f32.gmra.mrb[74].mxu1 %vm171_vm5, %v3355_v27 }
0x1b23   :  { %5029 = vmatprep.mubr.msk.f32.mxu1 %vm5550_vm0, %v5549_v0 }
0x1bed   :  { %v3287_v10 = vpop.f32.mrb[96].mxu0 }
0x1bee   :  { %v3293_v34 = vadd.f32 %v3287_v10, %v6242_v25  ;;  %v5014_v16 = vpop.f32.mrb[97].mxu0 }
0x1bf0   :  { %v3300_v21 = vadd.f32 %v6269_v60, %v3293_v34 }
0x1bf1   :  { %v3436_v12 = vpop.f32.mrb[72].mxu1 }
0x1bf2   :  { %v3437_v13 = vadd.f32 %v3436_v12, %v6316_v55  ;;  %v5025_v18 = vpop.f32.mrb[73].mxu1  ;;  %v3303_v14 = vadd.f32 %v3300_v21, %v6001_v17 }
0x1bf3   :  { %v3576_v18 = vrot.slane %v6265_v59, %v1866_v2 }
0x1bf4   :  { %v3450_v3 = vmax.f32 %v3437_v13, 0.0  ;;  %v3310_v38 = vsel %vm1583_vm10, %v3303_v14, 0.0 }
0x1bf5   :  { %v3441_v19 = vpop.f32.mrb[74].mxu1  ;;  %3311 = vadd.xlane.f32.xlu1 %v3310_v38 }
0x1bf6   :  { %v3442_v25 = vadd.f32 %v3441_v19, %v6316_v55  ;;  %v5028_v20 = vpop.f32.mrb[75].mxu1  ;;  %5049 = vmatmul.mubr.msk.f32.vlgmr.msra.gmra.mrb[98].mxu0 %vm1732_vm11, %v3450_v3 }
0x1bf7   :  { %5051 = vmatprep.mubr.msk.f32.mxu0 %vm5550_vm0, %v5549_v0  ;;  %v3582_v20 = vrot.slane %v6265_v59, %v1873_v5  ;;  %v3828_v59 = vld [vmem:[#allocation2 + $0x1f8] sm:$0xff] }
0x1bf8   :  { %v3451_v30 = vmax.f32 %v3442_v25, 0.0 }
0x1bfa   :  { %5052 = vmatmul.mubr.msk.f32.gmra.mrb[100].mxu0 %vm1732_vm11, %v3451_v30 }
0x1bfb   :  { %5054 = vmatprep.mubr.msk.f32.mxu0 %vm5550_vm0, %v5549_v0 }
0x1c82   :  { %v3312_v17 = vpop.xlane.xlu1 %3311 }
0x1c83   :  { %v3315_v60 = vmul.f32 0.03125, %v3312_v17 }
0x1c85   :  { %v3318_v22 = vsub.f32 %v3303_v14, %v3315_v60  ;;  %v3743_v60 = vld [vmem:[#allocation2 + $0x1d8] sm:$0xff] }
0x1c87   :  { %v3321_v40 = vmul.f32 %v3318_v22, %v3318_v22 }
0x1c89   :  { %v3328_v23 = vsel %vm1583_vm10, %v3321_v40, 0.0 }
0x1c8a   :  { %3329 = vadd.xlane.f32.xlu0 %v3328_v23 }
0x1cc9   :  { %v3532_v47 = vpop.f32.mrb[98].mxu0 }
0x1cca   :  { %v3533_v24 = vadd.f32 %v3532_v47, %v3456_v31  ;;  %v5050_v28 = vpop.f32.mrb[99].mxu0  ;;  %v3746_v47 = vld [vmem:[#allocation2 + $0x1f0] sm:$0xff] }
0x1ccc   :  { %v3545_v35 = vadd.f32 %v3533_v24, %v3354_v26  ;;  %v3829_v24 = vld [vmem:[#allocation2 + $0x200] sm:$0xff] }
0x1ccd   :  { %v3537_v43 = vpop.f32.mrb[100].mxu0 }
0x1cce   :  { %v3538_v36 = vadd.f32 %v3537_v43, %v3456_v31  ;;  %v5053_v29 = vpop.f32.mrb[101].mxu0  ;;  %v3547_v39 = vsel %vm171_vm5, %v3545_v35, 0.0  ;;  %v5256_v43 = vpack.c.bf16 %v3829_v24, %v3828_v59 }
0x1ccf   :  { %3548 = vadd.xlane.f32.xlu1 %v3547_v39  ;;  %v3831_v29 = vld [vmem:[#allocation2 + $0x210] sm:$0xff] }
0x1cd0   :  { %v3546_v33 = vadd.f32 %v3538_v36, %v3355_v27  ;;  %v5244_v27 = vpack.c.bf16 %v3665_v63, %v3664_v61  ;;  %v3830_v36 = vld [vmem:[#allocation2 + $0x208] sm:$0xff]  ;;  %v4078_v61 = vld [vmem:[#allocation2 + $0x260] sm:$0xff] }
0x1cd2   :  { %v3550_v42 = vsel %vm171_vm5, %v3546_v33, 0.0 }
0x1cd3   :  { %3551 = vadd.xlane.f32.xlu0 %v3550_v42  ;;  %v3911_v42 = vld [vmem:[#allocation2 + $0x218] sm:$0xff] }
0x1d17   :  { %v3330_v44 = vpop.xlane.xlu0 %3329 }
0x1d18   :  { %v3333_v37 = vmul.f32 0.03125, %v3330_v44  ;;  %v3912_v44 = vld [vmem:[#allocation2 + $0x220] sm:$0xff] }
0x1d1a   :  { %v3336_v45 = vadd.f32 1e-05, %v3333_v37 }
0x1d1c   :  { %5512 = vrsqrt.f32 %v3336_v45 }
0x1d26   :  { %v5513_v46 = vpop.eup %5512 }
0x1d27   :  { %v3342_v11 = vmul.f32 %v5513_v46, %v3318_v22  ;;  %v3744_v22 = vld [vmem:[#allocation2 + $0x1e0] sm:$0xff]  ;;  %v5262_v46 = vpack.c.bf16 %v3912_v44, %v3911_v42 }
0x1d28   :  { %v5250_v31 = vpack.c.bf16 %v3744_v22, %v3743_v60 }
0x1d29   :  { %v3349_v48 = vmul.f32 %v6291_v52, %v3342_v11  ;;  %v3913_v11 = vld [vmem:[#allocation2 + $0x228] sm:$0xff] }
0x1d2b   :  { %v3356_v51 = vadd.f32 %v6296_v54, %v3349_v48  ;;  %v3585_v54 = vld [vmem:[#allocation2 + $0x298] sm:$0x7f]  ;;  %v3914_v48 = vld [vmem:[#allocation2 + $0x230] sm:$0xff] }
0x1d2c   :  { %5058 = vmatpush3.msk.msra.mxu1 %vm42_vm1, %v3585_v54  ;;  %v4077_v54 = vld [vmem:[#allocation2 + $0x258] sm:$0xff] }
0x1d2d   :  { %5030 = vmatmul.mubr.msk.f32.gmra.mrb[76].mxu1 %vm171_vm5, %v3356_v51  ;;  %5243 = vmatprep.subr.bf16.mxu1 %v5552_v9  ;;  %v5274_v4 = vpack.c.bf16 %v4078_v61, %v4077_v54 }
0x1d2e   :  { %5059 = vmatprep.mubr.msk.f32.mxu1 %vm5550_vm0, %v5549_v0 }
0x1d31   :  { %5060 = vmatmul.mubr.msk.f32.vlgmr.msra.gmra.mrb[78].mxu1 %vm38_vm2, %v6346_v8 }
0x1d32   :  { %5245 = vmatpush3.bf16.msra.mxu1 %v5244_v27  ;;  %5070 = vmatprep.mubr.msk.f32.mxu1 %vm5550_vm0, %v5549_v0 }
0x1d33   :  { %5246 = vmatprep.subr.bf16.mxu1 %v5552_v9 }
0x1d36   :  { %5248 = vmatpush3.bf16.msra.mxu1 %v5247_v6  ;;  %v4080_v6 = vld [vmem:[#allocation2 + $0x270] sm:$0xff] }
0x1d37   :  { %5249 = vmatprep.subr.bf16.mxu1 %v5552_v9 }
0x1d5c   :  { %v3549_v49 = vpop.xlane.xlu1 %3548 }
0x1d5d   :  { %v3553_v50 = vmul.f32 0.03125, %v3549_v49  ;;  %v5265_v49 = vpack.c.bf16 %v3914_v48, %v3913_v11 }
0x1d5f   :  { %v3555_v53 = vsub.f32 %v3545_v35, %v3553_v50  ;;  %v3994_v50 = vld [vmem:[#allocation2 + $0x238] sm:$0xff] }
0x1d60   :  { %v3552_v62 = vpop.xlane.xlu0 %3551 }
0x1d61   :  { %v3554_v1 = vmul.f32 0.03125, %v3552_v62  ;;  %v3557_v56 = vmul.f32 %v3555_v53, %v3555_v53 }
0x1d63   :  { %v3556_v57 = vsub.f32 %v3546_v33, %v3554_v1  ;;  %v3559_v58 = vsel %vm171_vm5, %v3557_v56, 0.0  ;;  %v5259_v33 = vpack.c.bf16 %v3831_v29, %v3830_v36 }
0x1d64   :  { %3560 = vadd.xlane.f32.xlu1 %v3559_v58  ;;  %v3997_v58 = vld [vmem:[#allocation2 + $0x250] sm:$0xff] }
0x1d65   :  { %v3558_v26 = vmul.f32 %v3556_v57, %v3556_v57 }
0x1d67   :  { %v3562_v52 = vsel %vm171_vm5, %v3558_v26, 0.0 }
0x1d68   :  { %3563 = vadd.xlane.f32.xlu0 %v3562_v52 }
0x1df1   :  { %v3561_v7 = vpop.xlane.xlu1 %3560 }
0x1df2   :  { %v3565_v41 = vmul.f32 0.03125, %v3561_v7 }
0x1df4   :  { %v3567_v10 = vadd.f32 1e-05, %v3565_v41  ;;  %v5277_v41 = vpack.c.bf16 %v4080_v6, %v4079_v32 }
0x1df5   :  { %v3564_v34 = vpop.xlane.xlu0 %3563 }
0x1df6   :  { %5514 = vrsqrt.f32 %v3567_v10  ;;  %v3566_v16 = vmul.f32 0.03125, %v3564_v34  ;;  %v4160_v10 = vld [vmem:[#allocation2 + $0x278] sm:$0xff]  ;;  %v4161_v34 = vld [vmem:[#allocation2 + $0x280] sm:$0xff] }
0x1df8   :  { %v3568_v21 = vadd.f32 1e-05, %v3566_v16 }
0x1dfa   :  { %5516 = vrsqrt.f32 %v3568_v21 }
0x1e00   :  { %v5515_v12 = vpop.eup %5514  ;;  %v3446_v13 = vpop.f32.mrb[76].mxu1 }
0x1e01   :  { %v3571_v14 = vmul.f32 %v5515_v12, %v3555_v53  ;;  %v3447_v3 = vadd.f32 %v3446_v13, %v6316_v55  ;;  %v5031_v38 = vpop.f32.mrb[77].mxu1  ;;  %v3745_v55 = vld [vmem:[#allocation2 + $0x1e8] sm:$0xff]  ;;  %v3995_v53 = vld [vmem:[#allocation2 + $0x240] sm:$0xff]  ;;  %v5280_v12 = vpack.c.bf16 %v4161_v34, %v4160_v10 }
0x1e02   :  { %v5253_v5 = vpack.c.bf16 %v3746_v47, %v3745_v55  ;;  %v5268_v56 = vpack.c.bf16 %v3995_v53, %v3994_v50  ;;  %v4162_v13 = vld [vmem:[#allocation2 + $0x288] sm:$0xff] }
0x1e03   :  { %v3452_v19 = vmax.f32 %v3447_v3, 0.0  ;;  %v3577_v30 = vmul.f32 %v3576_v18, %v3571_v14 }
0x1e04   :  { %v5517_v25 = vpop.eup %5516 }
0x1e05   :  { %v3572_v17 = vmul.f32 %v5517_v25, %v3556_v57  ;;  %5055 = vmatmul.mubr.msk.f32.gmra.mrb[102].mxu0 %vm1732_vm11, %v3452_v19  ;;  %v6363_v23 = vadd.f32 %v3582_v20, %v3577_v30  ;;  %v3996_v57 = vld [vmem:[#allocation2 + $0x248] sm:$0xff] }
0x1e06   :  { %v5271_v52 = vpack.c.bf16 %v3997_v58, %v3996_v57 }
0x1e07   :  { %v3578_v40 = vmul.f32 %v3576_v18, %v3572_v17  ;;  %v3748_v35 = vrot.slane %v6363_v23, 1  ;;  %v3832_v45 = vrot.slane %v6363_v23, 2  ;;  %v3915_v1 = vrot.slane %v6363_v23, 3  ;;  %v4163_v18 = vld [vmem:[#allocation2 + $0x290] sm:$0xff]  ;;  %v4379_v17 = vld [vmem:[#allocation2 + $0x2a0] ss:$0 sm:$0xff] }
0x1e08   :  { %v3998_v27 = vrot.slane %v6363_v23, 4  ;;  %v4081_v21 = vrot.slane %v6363_v23, 5  ;;  %v5283_v3 = vpack.c.bf16 %v4163_v18, %v4162_v13  ;;  %v4164_v19 = vrot.slane %v6363_v23, 6 }
0x1e09   :  { %v6365_v2 = vadd.f32 %v3582_v20, %v3578_v40 }
0x1e0b   :  { %v3668_v15 = vsel %vm139_vm3, %v6363_v23, %v6365_v2  ;;  %v3751_v28 = vrot.slane %v6365_v2, 1  ;;  %v3834_v37 = vrot.slane %v6365_v2, 2  ;;  %v3917_v62 = vrot.slane %v6365_v2, 3 }
0x1e0c   :  { %5071 = vmatmul.mubr.msk.f32.vlgmr.msra.gmra.mrb[78].mxu1 %vm171_vm5, %v3668_v15  ;;  %v4000_v63 = vrot.slane %v6365_v2, 4  ;;  %v4083_v16 = vrot.slane %v6365_v2, 5  ;;  %v4166_v38 = vrot.slane %v6365_v2, 6 }
0x1e0d   :  { %5251 = vmatpush3.bf16.msra.mxu1 %v5250_v31  ;;  %5081 = vmatprep.mubr.msk.f32.mxu1 %vm5550_vm0, %v5549_v0  ;;  %v3753_v39 = vsel %vm139_vm3, %v3748_v35, %v3751_v28  ;;  %v3836_v51 = vsel %vm139_vm3, %v3832_v45, %v3834_v37  ;;  %v3919_v26 = vsel %vm139_vm3, %v3915_v1, %v3917_v62 }
0x1e0e   :  { %5252 = vmatprep.subr.bf16.mxu1 %v5552_v9  ;;  %v4002_v7 = vsel %vm139_vm3, %v3998_v27, %v4000_v63  ;;  %v4085_v14 = vsel %vm139_vm3, %v4081_v21, %v4083_v16  ;;  %v4168_v25 = vsel %vm139_vm3, %v4164_v19, %v4166_v38 }
0x1e11   :  { %5254 = vmatpush3.bf16.msra.mxu1 %v5253_v5 }
0x1e12   :  { %5255 = vmatprep.subr.bf16.mxu1 %v5552_v9 }
0x1e14   :  { %5082 = vmatmul.mubr.msk.f32.vlgmr.msra.gmra.mrb[78].mxu1 %vm171_vm5, %v3753_v39 }
0x1e15   :  { %5257 = vmatpush3.bf16.msra.mxu1 %v5256_v43  ;;  %5092 = vmatprep.mubr.msk.f32.mxu1 %vm5550_vm0, %v5549_v0 }
0x1e16   :  { %5258 = vmatprep.subr.bf16.mxu1 %v5552_v9 }
0x1e19   :  { %5260 = vmatpush3.bf16.msra.mxu1 %v5259_v33 }
0x1e1a   :  { %5261 = vmatprep.subr.bf16.mxu1 %v5552_v9 }
0x1e1c   :  { %5093 = vmatmul.mubr.msk.f32.vlgmr.msra.gmra.mrb[78].mxu1 %vm171_vm5, %v3836_v51 }
0x1e1d   :  { %5263 = vmatpush3.bf16.msra.mxu1 %v5262_v46  ;;  %5103 = vmatprep.mubr.msk.f32.mxu1 %vm5550_vm0, %v5549_v0 }
0x1e1e   :  { %5264 = vmatprep.subr.bf16.mxu1 %v5552_v9 }
0x1e21   :  { %5266 = vmatpush3.bf16.msra.mxu1 %v5265_v49 }
0x1e22   :  { %5267 = vmatprep.subr.bf16.mxu1 %v5552_v9 }
0x1e24   :  { %5104 = vmatmul.mubr.msk.f32.vlgmr.msra.gmra.mrb[78].mxu1 %vm171_vm5, %v3919_v26 }
0x1e25   :  { %5269 = vmatpush3.bf16.msra.mxu1 %v5268_v56  ;;  %5114 = vmatprep.mubr.msk.f32.mxu1 %vm5550_vm0, %v5549_v0 }
0x1e26   :  { %5270 = vmatprep.subr.bf16.mxu1 %v5552_v9 }
0x1e29   :  { %5272 = vmatpush3.bf16.msra.mxu1 %v5271_v52 }
0x1e2a   :  { %5273 = vmatprep.subr.bf16.mxu1 %v5552_v9 }
0x1e2c   :  { %5115 = vmatmul.mubr.msk.f32.vlgmr.msra.gmra.mrb[78].mxu1 %vm171_vm5, %v4002_v7 }
0x1e2d   :  { %5275 = vmatpush3.bf16.msra.mxu1 %v5274_v4  ;;  %5125 = vmatprep.mubr.msk.f32.mxu1 %vm5550_vm0, %v5549_v0 }
0x1e2e   :  { %5276 = vmatprep.subr.bf16.mxu1 %v5552_v9 }
0x1e31   :  { %5278 = vmatpush3.bf16.msra.mxu1 %v5277_v41 }
0x1e32   :  { %5279 = vmatprep.subr.bf16.mxu1 %v5552_v9 }
0x1e34   :  { %5126 = vmatmul.mubr.msk.f32.vlgmr.msra.gmra.mrb[78].mxu1 %vm171_vm5, %v4085_v14 }
0x1e35   :  { %5281 = vmatpush3.bf16.msra.mxu1 %v5280_v12  ;;  %5136 = vmatprep.mubr.msk.f32.mxu1 %vm5550_vm0, %v5549_v0 }
0x1e36   :  { %5282 = vmatprep.subr.bf16.mxu1 %v5552_v9 }
0x1e39   :  { %5284 = vmatpush3.bf16.msra.mxu1 %v5283_v3 }
0x1e3c   :  { %5137 = vmatmul.mubr.msk.f32.vlgmr.msra.gmra.mrb[78].mxu1 %vm171_vm5, %v4168_v25 }
0x1ed8   :  { %v3542_v20 = vpop.f32.mrb[102].mxu0 }
0x1ed9   :  { %v5056_v30 = vpop.f32.mrb[103].mxu0 }
0x1f0f   :  { %v4238_v60 = vpop.f32.mrb[78].mxu1 }
0x1f10   :  { %v5285_v22 = vadd.f32 %v4379_v17, %v4238_v60  ;;  %v5138_v40 = vpop.f32.mrb[79].mxu1 }
0x1f12   :  { %4244 = vrot.lane.b32.xlu1 %v5285_v22, %s5564_s1 }
0x1f84   :  { %v4245_v0 = vpop.permute.xlu1 %4244 }
0x1f85   :  { %v4247_v9 = vsel %vm38_vm2, %v6346_v8, %v4245_v0 }
0x1f86   :  { %4249 = vst.msk [vmem:[%s6426_s3] sm:$0x3] %vm4248_vm12, %v4247_v9 }
0x1f87   :  { %4254 = vsyncpa [#allocation3], 1 }

</bundles_post_ra>
